<compile_context>
chip_gen: v5e
topology: v5e:2x2
jax: 0.10.0
libtpu: 0.0.40
codegen_flags: <defaults>
</compile_context>

<pallas_src>
import functools
import math

import jax
import jax.numpy as jnp
from jax.experimental import pallas as pl
from jax.experimental.pallas import tpu as pltpu

_MASK_VALUE = -1e30


# ----------------------------- tiled matmul --------------------------------

def _matmul_kernel(x_ref, w_ref, o_ref, acc_ref):
    @pl.when(pl.program_id(2) == 0)
    def _init():
        acc_ref[...] = jnp.zeros_like(acc_ref)

    acc_ref[...] += jnp.dot(
        x_ref[...].astype(jnp.bfloat16),      # bf16 into the MXU,
        w_ref[...],                            # weights already bf16,
        preferred_element_type=jnp.float32)    # f32 accumulation.

    @pl.when(pl.program_id(2) == pl.num_programs(2) - 1)
    def _store():
        o_ref[...] = acc_ref[...].astype(o_ref.dtype)


def linear(x2d, w, *, tm=512, tn=512, tk=512):
    """x2d: [M, K] f32, w: [K, N] (transposed vs. torch Linear.weight)."""
    M, K = x2d.shape
    Kw, N = w.shape
    assert K == Kw
    tm, tn, tk = min(tm, M), min(tn, N), min(tk, K)
    assert M % tm == 0 and N % tn == 0 and K % tk == 0
    w_bf16 = w.astype(jnp.bfloat16)            # MXU-native operand, half the DMA
    return pl.pallas_call(
        _matmul_kernel,
        out_shape=jax.ShapeDtypeStruct((M, N), x2d.dtype),
        grid=(M // tm, N // tn, K // tk),
        in_specs=[
            pl.BlockSpec((tm, tk), lambda i, j, k: (i, k)),
            pl.BlockSpec((tk, tn), lambda i, j, k: (k, j)),
        ],
        out_specs=pl.BlockSpec((tm, tn), lambda i, j, k: (i, j)),
        scratch_shapes=[pltpu.VMEM((tm, tn), jnp.float32)],
        compiler_params=pltpu.CompilerParams(
            dimension_semantics=("parallel", "parallel", "arbitrary"),
            vmem_limit_bytes=48 * 1024 * 1024,
        ),
    )(x2d, w_bf16)


# ------------------------------- RoPE helpers --------------------------------

def _rope(x, cos_full, sin_signed, even):
    """Interleaved-pair RoPE (torch.view_as_complex semantics) on [rows, hd] f32.

    cos_full[r, 2i] = cos_full[r, 2i+1] = cos(theta_i(r));
    sin_signed[r, 2i] = -sin(theta_i(r)); sin_signed[r, 2i+1] = +sin(theta_i(r)).
    out = x * cos_full + swap_adjacent_pairs(x) * sin_signed.
    `even` is the precomputed lane-parity mask (hoisted by callers).
    """
    hd = x.shape[-1]
    x_next = pltpu.roll(x, hd - 1, 1)   # x_next[j] = x[(j + 1) % hd]
    x_prev = pltpu.roll(x, 1, 1)        # x_prev[j] = x[(j - 1) % hd]
    x_swap = jnp.where(even, x_next, x_prev)
    return x * cos_full + x_swap * sin_signed


def _k_rope_kernel(qkv_ref, cos_ref, sin_ref, o_ref, *, ts, hd, num_kv_heads):
    cos = cos_ref[...]
    sin = sin_ref[...]
    even = jax.lax.broadcasted_iota(jnp.int32, (ts, hd), 1) % 2 == 0
    for h in range(num_kv_heads):
        k_h = qkv_ref[0, :, h * hd:(h + 1) * hd].astype(jnp.float32)
        o_ref[0, :, h * hd:(h + 1) * hd] = _rope(k_h, cos, sin, even).astype(o_ref.dtype)


def rope_rotate_k(qkv, cos_full, sin_signed, num_heads, num_kv_heads, *, ts=512):
    """Pre-pass: rotate the K section of the fused qkv slab once; emits bf16 K."""
    B, S, _ = qkv.shape
    hd = cos_full.shape[-1]
    kv_dim = num_kv_heads * hd
    group = num_heads // num_kv_heads          # E / kv_dim, integer
    ts = min(ts, S)
    assert S % ts == 0
    kernel = functools.partial(_k_rope_kernel, ts=ts, hd=hd, num_kv_heads=num_kv_heads)
    return pl.pallas_call(
        kernel,
        out_shape=jax.ShapeDtypeStruct((B, S, kv_dim), jnp.bfloat16),
        grid=(B, S // ts),
        in_specs=[
            # K columns of qkv: block offset `group` in units of kv_dim == column E.
            pl.BlockSpec((1, ts, kv_dim), lambda b, s: (b, s, group)),
            pl.BlockSpec((ts, hd), lambda b, s: (s, 0)),
            pl.BlockSpec((ts, hd), lambda b, s: (s, 0)),
        ],
        out_specs=pl.BlockSpec((1, ts, kv_dim), lambda b, s: (b, s, 0)),
        compiler_params=pltpu.CompilerParams(
            dimension_semantics=("parallel", "parallel"),
        ),
    )(qkv, cos_full, sin_signed)


# --------------------------- flash attention --------------------------------

def _flash_attn_kernel(qi_ref, ki_ref, q_ref, k_ref, v_ref, qcos_ref, qsin_ref,
                       o_ref, q_sc, m_sc, l_sc, acc_sc, *, tq, tk, group, hd):
    t = pl.program_id(2)
    qi = qi_ref[t]
    ki = ki_ref[t]
    q_start = qi * tq
    k_start = ki * tk
    last_k = (q_start + tq - 1) // tk          # last kv tile with unmasked work

    @pl.when(ki == 0)
    def _init():
        m_sc[...] = jnp.full_like(m_sc, -jnp.inf)
        l_sc[...] = jnp.zeros_like(l_sc)
        acc_sc[...] = jnp.zeros_like(acc_sc)
        # Rotate (and pre-scale via the tables) the whole Q group once per q tile.
        qc = qcos_ref[...]
        qs = qsin_ref[...]
        even = jax.lax.broadcasted_iota(jnp.int32, (tq, hd), 1) % 2 == 0
        for h in range(group):
            q_h = q_ref[0, :, h * hd:(h + 1) * hd].astype(jnp.float32)
            q_sc[h * tq:(h + 1) * tq, :] = _rope(q_h, qc, qs, even).astype(q_sc.dtype)

    def _tile(apply_mask):
        q = q_sc[...]                              # (group*tq, hd) bf16, pre-scaled
        k = k_ref[0]                               # (tk, hd) bf16, pre-rotated
        v = v_ref[0].astype(jnp.bfloat16)          # (tk, hd)
        # One big QK^T for the whole GQA group (better MXU fill than per-head).
        s = jax.lax.dot_general(
            q, k, (((1,), (1,)), ((), ())),
            preferred_element_type=jnp.float32)    # (group*tq, tk) f32
        if apply_mask:
            row = q_start + (jax.lax.broadcasted_iota(jnp.int32, (group * tq, tk), 0) % tq)
            col = k_start + jax.lax.broadcasted_iota(jnp.int32, (group * tq, tk), 1)
            s = jnp.where(row >= col, s, _MASK_VALUE)
        m_prev = m_sc[...]
        m_new = jnp.maximum(m_prev, jnp.max(s, axis=-1, keepdims=True))
        alpha = jnp.exp(m_prev - m_new)
        p = jnp.exp(s - m_new)
        l_sc[...] = alpha * l_sc[...] + jnp.sum(p, axis=-1, keepdims=True)
        acc_sc[...] = alpha * acc_sc[...] + jax.lax.dot_general(
            p.astype(jnp.bfloat16), v, (((1,), (0,)), ((), ())),
            preferred_element_type=jnp.float32)
        m_sc[...] = m_new

    # Grid only contains causal-valid (qi, ki) pairs -> every step does work.
    @pl.when(k_start + tk - 1 <= q_start)
    def _interior():
        _tile(apply_mask=False)

    @pl.when(k_start + tk - 1 > q_start)
    def _diagonal():
        _tile(apply_mask=True)

    @pl.when(ki == last_k)
    def _finalize():
        inv_l = 1.0 / l_sc[...]                    # exact; cold path
        o = acc_sc[...] * inv_l
        for h in range(group):                     # 128-lane-aligned column stores
            o_ref[0, :, h * hd:(h + 1) * hd] = o[h * tq:(h + 1) * tq, :].astype(o_ref.dtype)


def flash_gqa_attention(qkv, k_rot, qcos, qsin, num_heads, num_kv_heads,
                        *, tq=256, tk=256):
    """qkv: [B, S, E + 2*KV] fused projection output (f32); k_rot: [B, S, KV] bf16
    pre-rotated keys; returns [B, S, E] (= attention out in [B, S, H, hd] layout,
    flattened over the last two dims)."""
    B, S, _ = qkv.shape
    hd = qcos.shape[-1]
    E = num_heads * hd
    group = num_heads // num_kv_heads
    tq, tk = min(tq, S), min(tk, S)
    assert S % tq == 0 and S % tk == 0

    # Flatten the causal lower-triangular (qi, ki) space into one grid axis.
    qi_list, ki_list = [], []
    for q_idx in range(S // tq):
        last = (q_idx * tq + tq - 1) // tk
        for k_idx in range(last + 1):
            qi_list.append(q_idx)
            ki_list.append(k_idx)
    qi_tab = jnp.asarray(qi_list, dtype=jnp.int32)
    ki_tab = jnp.asarray(ki_list, dtype=jnp.int32)
    n_steps = len(qi_list)

    kernel = functools.partial(_flash_attn_kernel, tq=tq, tk=tk, group=group, hd=hd)

    grid_spec = pltpu.PrefetchScalarGridSpec(
        num_scalar_prefetch=2,
        grid=(B, num_kv_heads, n_steps),
        in_specs=[
            # Q: the group's heads, read straight out of the qkv slab.
            pl.BlockSpec((1, tq, group * hd),
                         lambda b, g, t, qi_t, ki_t: (b, qi_t[t], g)),
            # K: pre-rotated bf16 keys for this KV head.
            pl.BlockSpec((1, tk, hd),
                         lambda b, g, t, qi_t, ki_t: (b, ki_t[t], g)),
            # V: read straight out of the qkv slab (column offset E + kv_dim + g*hd).
            pl.BlockSpec((1, tk, hd),
                         lambda b, g, t, qi_t, ki_t:
                         (b, ki_t[t], num_heads + num_kv_heads + g)),
            # Q-side RoPE tables (scale folded in).
            pl.BlockSpec((tq, hd), lambda b, g, t, qi_t, ki_t: (qi_t[t], 0)),
            pl.BlockSpec((tq, hd), lambda b, g, t, qi_t, ki_t: (qi_t[t], 0)),
        ],
        out_specs=pl.BlockSpec((1, tq, group * hd),
                               lambda b, g, t, qi_t, ki_t: (b, qi_t[t], g)),
        scratch_shapes=[
            pltpu.VMEM((group * tq, hd), jnp.bfloat16),   # rotated + scaled Q
            pltpu.VMEM((group * tq, 1), jnp.float32),     # m
            pltpu.VMEM((group * tq, 1), jnp.float32),     # l
            pltpu.VMEM((group * tq, hd), jnp.float32),    # acc
        ],
    )
    return pl.pallas_call(
        kernel,
        out_shape=jax.ShapeDtypeStruct((B, S, E), qkv.dtype),
        grid_spec=grid_spec,
        compiler_params=pltpu.CompilerParams(
            dimension_semantics=("parallel", "parallel", "arbitrary"),
            vmem_limit_bytes=48 * 1024 * 1024,
        ),
    )(qi_tab, ki_tab, qkv, k_rot, qkv, qcos, qsin)


# ------------------------------- forward ------------------------------------

def attention_forward(x, cos, sin, w_in, w_out, num_heads, num_kv_heads):
    B, S, E = x.shape
    hd = E // num_heads
    kv_dim = hd * num_kv_heads
    scale = 1.0 / math.sqrt(hd)

    qkv = linear(x.reshape(B * S, E), w_in).reshape(B, S, E + 2 * kv_dim)

    # Full-width interleaved RoPE tables (tiny, built once in XLA).
    cos_full = jnp.repeat(cos, 2, axis=-1)                       # c0,c0,c1,c1,...
    sin_signed = jnp.stack([-sin, sin], axis=-1).reshape(S, hd)  # -s0,s0,-s1,s1,...

    # K RoPE once, in a small pre-pass kernel (bf16 output).
    k_rot = rope_rotate_k(qkv, cos_full, sin_signed, num_heads, num_kv_heads)

    # Fold the 1/sqrt(hd) softmax scale into the Q-side tables.
    qcos = cos_full * scale
    qsin = sin_signed * scale

    o = flash_gqa_attention(qkv, k_rot, qcos, qsin, num_heads, num_kv_heads)
    return linear(o.reshape(B * S, E), w_out).reshape(B, S, E)


# ------------------------- pure-JAX reference --------------------------------

def _rope_ref(x, cos, sin):
    xf = x.astype(jnp.float32)
    xr, xi = xf[..., 0::2], xf[..., 1::2]
    c, s = cos[None, None], sin[None, None]
    out = jnp.stack([xr * c - xi * s, xr * s + xi * c], axis=-1).reshape(xf.shape)
    return out.astype(x.dtype)


def attention_reference(x, cos, sin, w_in, w_out, num_heads, num_kv_heads):
    B, S, E = x.shape
    hd = E // num_heads
    kv_dim = hd * num_kv_heads
    group = num_heads // num_kv_heads

    qkv = x @ w_in
    q, k, v = qkv[..., :E], qkv[..., E:E + kv_dim], qkv[..., E + kv_dim:]
    q = q.reshape(B, S, num_heads, hd).transpose(0, 2, 1, 3)
    k = k.reshape(B, S, num_kv_heads, hd).transpose(0, 2, 1, 3)
    v = v.reshape(B, S, num_kv_heads, hd).transpose(0, 2, 1, 3)
    q, k = _rope_ref(q, cos, sin), _rope_ref(k, cos, sin)
    k = jnp.repeat(k, group, axis=1)
    v = jnp.repeat(v, group, axis=1)
    s = jnp.einsum("bhqd,bhkd->bhqk", q, k) / math.sqrt(hd)
    mask = jnp.tril(jnp.ones((S, S), dtype=bool))
    s = jnp.where(mask[None, None], s, -jnp.inf)
    p = jax.nn.softmax(s, axis=-1)
    o = jnp.einsum("bhqk,bhkd->bhqd", p, v)
    o = o.transpose(0, 2, 1, 3).reshape(B, S, E)
    return o @ w_out


# --------------------------------- main --------------------------------------

if __name__ == "__main__":
    B, S = 2, 128
    E, H, Hkv = 512, 4, 2
    hd = E // H                 # 128
    kv_dim = E * Hkv // H       # 256

    key = jax.random.PRNGKey(0)
    kx, kwi, kwo = jax.random.split(key, 3)

    x = jax.random.normal(kx, (B, S, E), dtype=jnp.float32)
    # nn.Linear weights stored transposed so kernels compute x @ w.
    w_in = (0.02 * jax.random.normal(kwi, (E + 2 * kv_dim, E), jnp.float32)).T
    w_out = (0.02 * jax.random.normal(kwo, (E, E), jnp.float32)).T

    # RoPE freqs_cis equivalent: [S, hd//2] cos/sin tables.
    inv_freq = 1.0 / (10000.0 ** (jnp.arange(0, hd, 2, dtype=jnp.float32) / hd))
    angles = jnp.arange(S, dtype=jnp.float32)[:, None] * inv_freq[None, :]
    cos, sin = jnp.cos(angles), jnp.sin(angles)

    out = attention_forward(x, cos, sin, w_in, w_out, H, Hkv)
    out = jax.block_until_ready(out)

    ref = attention_reference(x, cos, sin, w_in, w_out, H, Hkv)
    assert out.shape == (B, S, E)
    max_err = float(jnp.max(jnp.abs(out - ref)))
    # bf16 operands feed the MXU (f32 accumulation), so allow bf16-class error
    # vs. the f32 reference.
    assert jnp.allclose(out, ref, atol=2e-2, rtol=2e-2), (
        f"mismatch vs reference, max abs err {max_err}")

    print("KERNEL_OK")
</pallas_src>

<mosaic_0001>
module attributes {stable_mosaic.version = 11 : i64} {
  func.func @_matmul_kernel(%arg0: i32, %arg1: i32, %arg2: i32, %arg3: memref<256x512xf32, #tpu.memory_space<vmem>>, %arg4: memref<512x512xbf16, #tpu.memory_space<vmem>>, %arg5: memref<256x512xf32, #tpu.memory_space<vmem>>, %arg6: memref<256x512xf32, #tpu.memory_space<vmem>>) attributes {dimension_semantics = [#tpu.dimension_semantics<parallel>, #tpu.dimension_semantics<parallel>, #tpu.dimension_semantics<arbitrary>], iteration_bounds = array<i64: 1, 2, 1>, scalar_prefetch = 0 : i64, scratch_operands = 1 : i64, tpu.core_type = #tpu.core_type<tc>, window_params = [{transform_indices = @transform_0, window_bounds = array<i64: 256, 512>}, {transform_indices = @transform_1, window_bounds = array<i64: 512, 512>}, {transform_indices = @transform_2, window_bounds = array<i64: 256, 512>}]} {
    %c0_i32 = arith.constant 0 : i32
    %0 = arith.cmpi eq, %arg2, %c0_i32 : i32
    %1 = arith.extui %0 : i1 to i32
    %c0_i32_0 = arith.constant 0 : i32
    %2 = arith.cmpi ne, %1, %c0_i32_0 : i32
    scf.if %2 {
      %cst_10 = arith.constant 0.000000e+00 : f32
      %13 = vector.broadcast %cst_10 : f32 to vector<256x512xf32>
      %c0_11 = arith.constant 0 : index
      %c0_12 = arith.constant 0 : index
      %14 = vector.load %arg6[%c0_11, %c0_12] : memref<256x512xf32, #tpu.memory_space<vmem>>, vector<256x512xf32>
      tpu.vector_store %arg6[%c0_11, %c0_12], %13 {strides = array<i32>} : memref<256x512xf32, #tpu.memory_space<vmem>>, vector<256x512xf32>,
    } else {
    }
    %c0 = arith.constant 0 : index
    %c0_1 = arith.constant 0 : index
    %3 = vector.load %arg6[%c0, %c0_1] : memref<256x512xf32, #tpu.memory_space<vmem>>, vector<256x512xf32>
    %c0_2 = arith.constant 0 : index
    %c0_3 = arith.constant 0 : index
    %4 = vector.load %arg3[%c0_2, %c0_3] : memref<256x512xf32, #tpu.memory_space<vmem>>, vector<256x512xf32>
    %5 = arith.truncf %4 : vector<256x512xf32> to vector<256x512xbf16>
    %c0_4 = arith.constant 0 : index
    %c0_5 = arith.constant 0 : index
    %6 = vector.load %arg4[%c0_4, %c0_5] : memref<512x512xbf16, #tpu.memory_space<vmem>>, vector<512x512xbf16>
    %cst = arith.constant dense<0.000000e+00> : vector<256x512xf32>
    %7 = tpu.matmul %5, %6, %cst {dimension_numbers = #tpu.dot_dimension_numbers<[1], [0], [0], [1], [0, 0, 1, 1], [], []>} : vector<256x512xbf16>, vector<512x512xbf16>, vector<256x512xf32> -> vector<256x512xf32>
    %8 = arith.addf %3, %7 : vector<256x512xf32>
    %c0_6 = arith.constant 0 : index
    %c0_7 = arith.constant 0 : index
    %9 = vector.load %arg6[%c0_6, %c0_7] : memref<256x512xf32, #tpu.memory_space<vmem>>, vector<256x512xf32>
    tpu.vector_store %arg6[%c0_6, %c0_7], %8 {strides = array<i32>} : memref<256x512xf32, #tpu.memory_space<vmem>>, vector<256x512xf32>,
    %c0_i32_8 = arith.constant 0 : i32
    %10 = arith.cmpi eq, %arg2, %c0_i32_8 : i32
    %11 = arith.extui %10 : i1 to i32
    %c0_i32_9 = arith.constant 0 : i32
    %12 = arith.cmpi ne, %11, %c0_i32_9 : i32
    scf.if %12 {
      %c0_10 = arith.constant 0 : index
      %c0_11 = arith.constant 0 : index
      %13 = vector.load %arg6[%c0_10, %c0_11] : memref<256x512xf32, #tpu.memory_space<vmem>>, vector<256x512xf32>
      %c0_12 = arith.constant 0 : index
      %c0_13 = arith.constant 0 : index
      %14 = vector.load %arg5[%c0_12, %c0_13] : memref<256x512xf32, #tpu.memory_space<vmem>>, vector<256x512xf32>
      tpu.vector_store %arg5[%c0_12, %c0_13], %13 {strides = array<i32>} : memref<256x512xf32, #tpu.memory_space<vmem>>, vector<256x512xf32>,
    } else {
    }
    return
  }
  func.func @transform_0(%arg0: i32, %arg1: i32, %arg2: i32) -> (i32, i32) {
    %c0_i32 = arith.constant 0 : i32
    return %arg0, %arg2 : i32, i32
  }
  func.func @transform_1(%arg0: i32, %arg1: i32, %arg2: i32) -> (i32, i32) {
    %c0_i32 = arith.constant 0 : i32
    return %arg2, %arg1 : i32, i32
  }
  func.func @transform_2(%arg0: i32, %arg1: i32, %arg2: i32) -> (i32, i32) {
    %c0_i32 = arith.constant 0 : i32
    return %arg0, %arg1 : i32, i32
  }
}

</mosaic_0001>

<bundles_post_ra>
// kernel: tpu_custom_call.1
= control target key start
LH: loop header
LB: loop body
LE: loop exit
PB: predicated region body
PF: predicated region fallthrough
CT: control target
= control target key end

     0   :  { %7 = vsyncpa [#allocation4], 0  ;;  %s5350_s0 = inlined_call_operand.hbm [shape: f32[256,512], index: 0, kind: input, shape index: {}]   ;;  %s5351_s1 = inlined_call_operand.hbm [shape: bf16[512,1024], index: 1, kind: input, shape index: {}]   ;;  %s5352_s2 = inlined_call_operand.hbm [shape: f32[256,1024], index: 2, kind: output, shape index: {}]  }
   0x1   :  { %8 = vsyncpa [#allocation7], 0 }
   0x2   :  { %10 = vsyncpa [#allocation7 + $0x1], 0 }
   0x3   :  { %11 = vsyncpa [#allocation5], 0 }
   0x4   :  { %13 = vsyncpa [#allocation5 + $0x1], 0  ;;  %s4421_s9 = smov 0   ;;  %s4423_s10 = smov 0  }
   0x5   :  { %s4425_s11 = smov 0   ;;  %s4427_s12 = smov 0  }
   0x6   :  { %s4429_s13 = smov 0   ;;  %s4431_s14 = smov 0  }
   0x7 LB: > { %s3511_s15 = sadd.s32 4294967295, %s4396_s14   ;;  %s3512_s16 = sadd.s32 4294967294, %s4396_s14   ;;  %s4396_s14 = sphi %s4431_s14, %s19_s14   ;;  %s4392_s13 = sphi %s4429_s13, %s5481_s13   ;;  %s4388_s12 = sphi %s4427_s12, %s5480_s12   ;;  %s4384_s11 = sphi %s4425_s11, %s5479_s11   ;;  %s4380_s10 = sphi %s4423_s10, %s5478_s10   ;;  %s4376_s9 = sphi %s4421_s9, %s5477_s9  }
   0x8   : > { %p88_p0 = scmp.ne.s32.totalorder %s4380_s10, %s4376_s9  ;;  %p4455_p1 = scmp.eq.s32.totalorder %s3511_s15, 0 }
   0x9   : > { %p4459_p2 = scmp.eq.s32.totalorder %s3511_s15, 1  ;;  %p120_p3 = scmp.eq.s32.totalorder %s3512_s16, 1 }
   0xa   : > { %p4465_p4 = por %p4455_p1, %p88_p0  ;;  %p3513_p5 = scmp.ge.s32.totalorder %s4396_s14, 1 }
   0xb   : > { %p4470_p6 = por %p120_p3, %p88_p0  ;;  %p127_p7 = scmp.lt.s32.totalorder %s4396_s14, 3 }
   0xc   : > { %s144_s23 = sshll.u32 %s5350_s0, 4  ;;  %s4398_s25 = smov [#allocation3]   ;;  %s145_s23 = int_to_ptr.hbm [resolvable:$true] %s144_s23 }
   0xd   : > { %p4478_p8 = pnand %p3513_p5, %p127_p7  ;;  %s146_s26 = sshll.u32 %s4398_s25, 4  ;;  %s147_s26 = int_to_ptr.vmem [resolvable:$true] %s146_s26 }
   0xe   : > { %p3515_p11 = scmp.ge.s32.totalorder %s4396_s14, 2  ;;  %s5353_s27 = smov 512  }
   0xf   : > { %p4178_p9 = pneg %p4478_p8  ;;  %s4400_s28 = smov 32  }
  0x10   : > { %s34_s29 = sadd.s32 1, %s4392_s13  ;;  %s75_s30 = sadd.s32 1, %s4384_s11 }
  0x11   : > { %p4179_p10 = pnand %p4178_p9, %p4455_p1  ;;  %p36_p12 = scmp.ge.s32.totalorder %s34_s29, 2 }
  0x12   : > { %p82_p13 = scmp.ne.s32.totalorder %s4384_s11, %s4380_s10  ;;  %p83_p0 = scmp.eq.s32.totalorder %s4396_s14, 0 }
  0x13   : > { %4181 = dma.hbm_to_vmem [thread:$0]  (!%p4179_p10), %s145_s23, 16384, %s147_s26, [#allocation4], %s5353_s27, %s5353_s27, %s4400_s28  }
  0x14   : > { %s5483_s29 = smov (%p36_p12, %s34_s29), 0  ;;  %p4496_p3 = por %p83_p0, %p82_p13 }
  0x15   : > { %p4502_p5 = por %p4459_p2, %p82_p13  ;;  %s71_s5 = ssub.s32 %s4392_s13, %s5483_s29 }
  0x16   : > { %p4191_p7 = scmp.lt.s32.totalorder %s4396_s14, 2  ;;  %p73_p9 = scmp.eq.s32.totalorder %s71_s5, 0 }
  0x17   : > { %s160_s6 = sand.u32 1, %s4384_s11   ;;  %s4040_s15 = sshll.u32 %s4392_s13, 4 }
  0x18   : > { %s3516_s7 = sshll.u32 %s160_s6, 10  ;;  %s172_s22 = scalar_lea.hbm %s5351_s1, %s4040_s15 }
  0x19   : > { %s4511_s8 = scalar_select %p73_p9, %s4384_s11, %s75_s30  }
  0x1a   : > { %s164_s23 = scalar_lea.vmem [#allocation6], %s3516_s7  ;;  %s173_s18 = sshll.u32 %s172_s22, 4  ;;  %s174_s18 = int_to_ptr.hbm [resolvable:$true] %s173_s18 }
  0x1b   : > { %s175_s25 = sshll.u32 %s164_s23, 4  ;;  %p4183_p2 = pnand %p4191_p7, %p4496_p3  ;;  %s176_s25 = int_to_ptr.vmem [resolvable:$true] %s175_s25 }
  0x1c   : > { %s161_s26 = scalar_lea.sflag [#allocation7], %s160_s6  ;;  %s4401_s28 = smov 256  }
  0x1d   : > { %s4402_s27 = smov 16   ;;  %s5401_s5 = smov 512  }
  0x1e   : > { %4185 = dma.hbm_to_vmem [thread:$0]  (!%p4183_p2), %s174_s18, 16384, %s176_s25, %s161_s26, %s5401_s5, %s4401_s28, %s4402_s27  }
  0x1f   : > { %187 = sbr.rel (%p4478_p8) target bundleno = 1234 (0x4d2), region = 28 }
  0x24   : > { %4363 = dma.done.wait (%p4455_p1), [#allocation4], 16384  }
  0x25   : > { %4365 = vsyncadd (%p4455_p1), [#allocation4], 4294950912  ;;  %s4527_s30 = sand.u32 1, %s4380_s10  }
  0x26   : > { %s3521_s3 = sshll.u32 %s4527_s30, 10  ;;  %s195_s6 = scalar_lea.sflag [#allocation7], %s4527_s30 }
  0x27   : > { %s4533_s27 = scalar_lea.vmem [#allocation6], %s3521_s3 }
  0x28   : > { %4367 = dma.done.wait (%p4465_p4), %s195_s6, 16384  }
  0x29   : > { %4369 = vsyncadd (%p4465_p4), %s195_s6, 4294950912  ;;  %v3637_v0 = vld [vmem:[%s4533_s27 + $0xe0] sm:$0xf]  ;;  %v4071_v1 = vld [vmem:[%s4533_s27 + $0xec] sm:$0xf0]  ;;  %s4757_s17 = scalar_lea.vmem [#allocation8], %s3521_s3 }
  0x2a   : > { %v3765_v2 = vld [vmem:[%s4533_s27 + $0x1e0] sm:$0xf]  ;;  %v3638_v3 = vor.u32 %v4071_v1, %v3637_v0  ;;  %v4103_v4 = vld [vmem:[%s4533_s27 + $0x1ec] sm:$0xf0]  ;;  %s4169_s19 = sshll.u32 %s4388_s12, 5  ;;  %s3401_s16 = sshll.u32 %s4757_s17, 4  ;;  %s3402_s16 = int_to_ptr.vmem [resolvable:$true] %s3401_s16 }
  0x2b   : > { %v3893_v5 = vld [vmem:[%s4533_s27 + $0x2e0] sm:$0xf]  ;;  %v4135_v6 = vld [vmem:[%s4533_s27 + $0x2ec] sm:$0xf0]  ;;  %v3766_v7 = vor.u32 %v4103_v4, %v3765_v2  ;;  %s3400_s15 = scalar_lea.hbm %s5352_s2, %s4169_s19  ;;  %s3386_s12 = scalar_lea.sflag [#allocation5], %s4527_s30 }
  0x2c   : > { %v3894_v8 = vor.u32 %v4135_v6, %v3893_v5  ;;  %v4021_v9 = vld [vmem:[%s4533_s27 + $0x3e0] sm:$0xf]  ;;  %v4167_v10 = vld [vmem:[%s4533_s27 + $0x3ec] sm:$0xf0]  ;;  %1446 = vmatpush.bf16.msra.mxu0 %v3638_v3  ;;  %s3403_s21 = sshll.u32 %s3400_s15, 4  ;;  %s4330_s26 = scalar_lea.hbm %s5352_s2, 2048  ;;  %s3404_s21 = int_to_ptr.hbm [resolvable:$true] %s3403_s21 }
  0x2d   : > { %v3621_v11 = vld [vmem:[%s4533_s27 + $0xc0] sm:$0xf]  ;;  %v4022_v12 = vor.u32 %v4167_v10, %v4021_v9  ;;  %v4067_v13 = vld [vmem:[%s4533_s27 + $0xcc] sm:$0xf0]  ;;  %1535 = vmatpush.bf16.msra.mxu1 %v3766_v7  ;;  %s4324_s22 = sshra.s32 %s3404_s21, 4  ;;  %s4325_s22 = int_to_ptr.hbm [resolvable:$true] %s4324_s22 }
  0x2e   : > { %v3749_v14 = vld [vmem:[%s4533_s27 + $0x1c0] sm:$0xf]  ;;  %v4099_v15 = vld [vmem:[%s4533_s27 + $0x1cc] sm:$0xf0]  ;;  %1624 = vmatpush.bf16.msra.mxu2 %v3894_v8  ;;  %v3622_v16 = vor.u32 %v4067_v13, %v3621_v11  ;;  %s4326_s23 = scalar_lea.hbm %s4325_s22, 1024  ;;  %p4331_p10 = scmp.lt.s32.totalorder %s4325_s22, %s5352_s2 }
  0x2f   : > { %v3750_v17 = vor.u32 %v4099_v15, %v3749_v14  ;;  %v3877_v18 = vld [vmem:[%s4533_s27 + $0x2c0] sm:$0xf]  ;;  %v4131_v19 = vld [vmem:[%s4533_s27 + $0x2cc] sm:$0xf0]  ;;  %1713 = vmatpush.bf16.msra.mxu3 %v4022_v12  ;;  %p4327_p1 = scmp.ne.s32.totalorder %s4325_s22, %s4326_s23  ;;  %p4332_p12 = scmp.lt.s32.totalorder %s4330_s26, %s4326_s23 }
  0x30   : > { %v4005_v20 = vld [vmem:[%s4533_s27 + $0x3c0] sm:$0xf]  ;;  %v3878_v21 = vor.u32 %v4131_v19, %v3877_v18  ;;  %v4163_v22 = vld [vmem:[%s4533_s27 + $0x3cc] sm:$0xf0]  ;;  %1447 = vmatpush.bf16.msra.mxu0 %v3622_v16 }
  0x31   : > { %v3605_v23 = vld [vmem:[%s4533_s27 + $0xa0] sm:$0xf]  ;;  %v4063_v24 = vld [vmem:[%s4533_s27 + $0xac] sm:$0xf0]  ;;  %v4006_v25 = vor.u32 %v4163_v22, %v4005_v20  ;;  %1536 = vmatpush.bf16.msra.mxu1 %v3750_v17  ;;  %p4328_p4 = pnand %p4327_p1, %p4502_p5  ;;  %p4333_p13 = por %p4332_p12, %p4331_p10 }
  0x32   : > { %v3733_v26 = vld [vmem:[%s4533_s27 + $0x1a0] sm:$0xf]  ;;  %v4095_v27 = vld [vmem:[%s4533_s27 + $0x1ac] sm:$0xf0]  ;;  %v3606_v29 = vor.u32 %v4063_v24, %v3605_v23  ;;  %1625 = vmatpush.bf16.msra.mxu2 %v3878_v21 }
  0x33   : > { %v3861_v28 = vld [vmem:[%s4533_s27 + $0x2a0] sm:$0xf]  ;;  %v4127_v30 = vld [vmem:[%s4533_s27 + $0x2ac] sm:$0xf0]  ;;  %v3734_v33 = vor.u32 %v4095_v27, %v3733_v26  ;;  %1714 = vmatpush.bf16.msra.mxu3 %v4006_v25  ;;  %p4329_p8 = pneg %p4328_p4 }
  0x34   : > { %v3989_v31 = vld [vmem:[%s4533_s27 + $0x3a0] sm:$0xf]  ;;  %v4159_v32 = vld [vmem:[%s4533_s27 + $0x3ac] sm:$0xf0]  ;;  %v3862_v34 = vor.u32 %v4127_v30, %v3861_v28  ;;  %1448 = vmatpush.bf16.msra.mxu0 %v3606_v29  ;;  %v487_v30 = vld [vmem:[#allocation3 + $0x8] sm:$0xff] }
  0x35   : > { %v3589_v35 = vld [vmem:[%s4533_s27 + $0x80] sm:$0xf]  ;;  %v4059_v36 = vld [vmem:[%s4533_s27 + $0x8c] sm:$0xf0]  ;;  %v3990_v38 = vor.u32 %v4159_v32, %v3989_v31  ;;  %1537 = vmatpush.bf16.msra.mxu1 %v3734_v33  ;;  %v4133_v31 = vld [vmem:[%s4533_s27 + $0x2e4] sm:$0xf]  ;;  %p4334_p0 = pnand %p4333_p13, %p4329_p8 }
  0x36   : > { %v3717_v37 = vld [vmem:[%s4533_s27 + $0x180] sm:$0xf]  ;;  %v4091_v39 = vld [vmem:[%s4533_s27 + $0x18c] sm:$0xf0]  ;;  %v3590_v44 = vor.u32 %v4059_v36, %v3589_v35  ;;  %1626 = vmatpush.bf16.msra.mxu2 %v3862_v34  ;;  %v3895_v32 = vld [vmem:[%s4533_s27 + $0x2f0] sm:$0xf0] }
  0x37   : > { %v3845_v40 = vld [vmem:[%s4533_s27 + $0x280] sm:$0xf]  ;;  %v4123_v41 = vld [vmem:[%s4533_s27 + $0x28c] sm:$0xf0]  ;;  %v3718_v45 = vor.u32 %v4091_v39, %v3717_v37  ;;  %1715 = vmatpush.bf16.msra.mxu3 %v3990_v38  ;;  %v491_v34 = vld [vmem:[#allocation3 + $0x28] sm:$0xff] }
  0x38   : > { %v3973_v42 = vld [vmem:[%s4533_s27 + $0x380] sm:$0xf]  ;;  %v4155_v43 = vld [vmem:[%s4533_s27 + $0x38c] sm:$0xf0]  ;;  %v3846_v46 = vor.u32 %v4123_v41, %v3845_v40  ;;  %1449 = vmatpush.bf16.msra.mxu0 %v3590_v44  ;;  %v4165_v35 = vld [vmem:[%s4533_s27 + $0x3e4] sm:$0xf]  ;;  %v3898_v44 = vor.u32 %v4133_v31, %v3895_v32 }
  0x39   : > { %v3573_v47 = vld [vmem:[%s4533_s27 + $0x60] sm:$0xf]  ;;  %v4055_v48 = vld [vmem:[%s4533_s27 + $0x6c] sm:$0xf0]  ;;  %v3974_v50 = vor.u32 %v4155_v43, %v3973_v42  ;;  %1538 = vmatpush.bf16.msra.mxu1 %v3718_v45  ;;  %v4023_v36 = vld [vmem:[%s4533_s27 + $0x3f0] sm:$0xf0] }
  0x3a   : > { %v3701_v49 = vld [vmem:[%s4533_s27 + $0x160] sm:$0xf]  ;;  %v4087_v51 = vld [vmem:[%s4533_s27 + $0x16c] sm:$0xf0]  ;;  %v3574_v56 = vor.u32 %v4055_v48, %v3573_v47  ;;  %1627 = vmatpush.bf16.msra.mxu2 %v3846_v46  ;;  %v489_v41 = vld [vmem:[#allocation3 + $0x18] sm:$0xff]  ;;  %v4026_v48 = vor.u32 %v4165_v35, %v4023_v36 }
  0x3b   : > { %v3829_v52 = vld [vmem:[%s4533_s27 + $0x260] sm:$0xf]  ;;  %v4119_v53 = vld [vmem:[%s4533_s27 + $0x26c] sm:$0xf0]  ;;  %v3702_v57 = vor.u32 %v4087_v51, %v3701_v49  ;;  %1716 = vmatpush.bf16.msra.mxu3 %v3974_v50  ;;  %v493_v43 = vld [vmem:[#allocation3 + $0x38] sm:$0xff]  ;;  %v4613_v51 = vpack.c.bf16 %v491_v34, %v487_v30 }
  0x3c   : > { %v3957_v54 = vld [vmem:[%s4533_s27 + $0x360] sm:$0xf]  ;;  %v4151_v55 = vld [vmem:[%s4533_s27 + $0x36c] sm:$0xf0]  ;;  %v3830_v58 = vor.u32 %v4119_v53, %v3829_v52  ;;  %1450 = vmatpush.bf16.msra.mxu0 %v3574_v56  ;;  %v4069_v45 = vld [vmem:[%s4533_s27 + $0xe4] sm:$0xf]  ;;  %v4617_v53 = vpack.c.bf16 %v493_v43, %v489_v41 }
  0x3d   : > { %v3557_v59 = vld [vmem:[%s4533_s27 + $0x40] sm:$0xf]  ;;  %v4051_v60 = vld [vmem:[%s4533_s27 + $0x4c] sm:$0xf0]  ;;  %v3958_v62 = vor.u32 %v4151_v55, %v3957_v54  ;;  %1539 = vmatpush.bf16.msra.mxu1 %v3702_v57  ;;  %v3639_v46 = vld [vmem:[%s4533_s27 + $0xf0] sm:$0xf0] }
  0x3e   : > { %v3685_v61 = vld [vmem:[%s4533_s27 + $0x140] sm:$0xf]  ;;  %v4083_v63 = vld [vmem:[%s4533_s27 + $0x14c] sm:$0xf0]  ;;  %v3558_v4 = vor.u32 %v4051_v60, %v3557_v59  ;;  %1628 = vmatpush.bf16.msra.mxu2 %v3830_v58  ;;  %v4101_v49 = vld [vmem:[%s4533_s27 + $0x1e4] sm:$0xf]  ;;  %v3642_v54 = vor.u32 %v4069_v45, %v3639_v46 }
  0x3f   : > { %v3813_v0 = vld [vmem:[%s4533_s27 + $0x240] sm:$0xf]  ;;  %v4115_v1 = vld [vmem:[%s4533_s27 + $0x24c] sm:$0xf0]  ;;  %v3686_v5 = vor.u32 %v4083_v63, %v3685_v61  ;;  %1717 = vmatpush.bf16.msra.mxu3 %v3958_v62  ;;  %v3767_v50 = vld [vmem:[%s4533_s27 + $0x1f0] sm:$0xf0] }
  0x40   : > { %v3941_v2 = vld [vmem:[%s4533_s27 + $0x340] sm:$0xf]  ;;  %v4147_v3 = vld [vmem:[%s4533_s27 + $0x34c] sm:$0xf0]  ;;  %v3814_v6 = vor.u32 %v4115_v1, %v3813_v0  ;;  %1451 = vmatpush.bf16.msra.mxu0 %v3558_v4  ;;  %v3770_v55 = vor.u32 %v4101_v49, %v3767_v50  ;;  %v4129_v56 = vld [vmem:[%s4533_s27 + $0x2c4] sm:$0xf] }
  0x41   : > { %v3541_v7 = vld [vmem:[%s4533_s27 + $0x20] sm:$0xf]  ;;  %v4047_v8 = vld [vmem:[%s4533_s27 + $0x2c] sm:$0xf0]  ;;  %v3942_v10 = vor.u32 %v4147_v3, %v3941_v2  ;;  %1540 = vmatpush.bf16.msra.mxu1 %v3686_v5  ;;  %v3879_v57 = vld [vmem:[%s4533_s27 + $0x2d0] sm:$0xf0] }
  0x42   : > { %v3669_v9 = vld [vmem:[%s4533_s27 + $0x120] sm:$0xf]  ;;  %v4079_v11 = vld [vmem:[%s4533_s27 + $0x12c] sm:$0xf0]  ;;  %v3542_v17 = vor.u32 %v4047_v8, %v3541_v7  ;;  %1629 = vmatpush.bf16.msra.mxu2 %v3814_v6  ;;  %v4161_v58 = vld [vmem:[%s4533_s27 + $0x3c4] sm:$0xf]  ;;  %v3882_v59 = vor.u32 %v4129_v56, %v3879_v57 }
  0x43   : > { %v3797_v12 = vld [vmem:[%s4533_s27 + $0x220] sm:$0xf]  ;;  %v4111_v13 = vld [vmem:[%s4533_s27 + $0x22c] sm:$0xf0]  ;;  %v3670_v21 = vor.u32 %v4079_v11, %v3669_v9  ;;  %1718 = vmatpush.bf16.msra.mxu3 %v3942_v10  ;;  %v4007_v60 = vld [vmem:[%s4533_s27 + $0x3d0] sm:$0xf0] }
  0x44   : > { %v3925_v14 = vld [vmem:[%s4533_s27 + $0x320] sm:$0xf]  ;;  %v4143_v15 = vld [vmem:[%s4533_s27 + $0x32c] sm:$0xf0]  ;;  %v3798_v22 = vor.u32 %v4111_v13, %v3797_v12  ;;  %1452 = vmatpush.bf16.msra.mxu0 %v3542_v17  ;;  %v4065_v61 = vld [vmem:[%s4533_s27 + $0xc4] sm:$0xf]  ;;  %v4010_v63 = vor.u32 %v4161_v58, %v4007_v60 }
  0x45   : > { %v3525_v16 = vld [vmem:[%s4533_s27] sm:$0xf]  ;;  %v4043_v18 = vld [vmem:[%s4533_s27 + $0xc] sm:$0xf0]  ;;  %v3926_v26 = vor.u32 %v4143_v15, %v3925_v14  ;;  %1541 = vmatpush.bf16.msra.mxu1 %v3670_v21  ;;  %v3623_v62 = vld [vmem:[%s4533_s27 + $0xd0] sm:$0xf0] }
  0x46   : > { %v3653_v19 = vld [vmem:[%s4533_s27 + $0x100] sm:$0xf]  ;;  %v4075_v20 = vld [vmem:[%s4533_s27 + $0x10c] sm:$0xf0]  ;;  %v3526_v33 = vor.u32 %v4043_v18, %v3525_v16  ;;  %1630 = vmatpush.bf16.msra.mxu2 %v3798_v22  ;;  %v3626_v0 = vor.u32 %v4065_v61, %v3623_v62  ;;  %v4097_v1 = vld [vmem:[%s4533_s27 + $0x1c4] sm:$0xf] }
  0x47   : > { %v3781_v23 = vld [vmem:[%s4533_s27 + $0x200] sm:$0xf]  ;;  %v4107_v24 = vld [vmem:[%s4533_s27 + $0x20c] sm:$0xf0]  ;;  %v3654_v37 = vor.u32 %v4075_v20, %v3653_v19  ;;  %1719 = vmatpush.bf16.msra.mxu3 %v3926_v26  ;;  %v3751_v2 = vld [vmem:[%s4533_s27 + $0x1d0] sm:$0xf0] }
  0x48   : > { %v3909_v25 = vld [vmem:[%s4533_s27 + $0x300] sm:$0xf]  ;;  %v4139_v27 = vld [vmem:[%s4533_s27 + $0x30c] sm:$0xf0]  ;;  %v3782_v38 = vor.u32 %v4107_v24, %v3781_v23  ;;  %1453 = vmatpush.bf16.msra.mxu0 %v3526_v33  ;;  %v3754_v3 = vor.u32 %v4097_v1, %v3751_v2  ;;  %v495_v6 = vld [vmem:[#allocation3 + $0x48] sm:$0xff] }
  0x49   : > { %v486_v28 = vld [vmem:[#allocation3] sm:$0xff]  ;;  %v488_v39 = vld [vmem:[#allocation3 + $0x10] sm:$0xff]  ;;  %v3910_v42 = vor.u32 %v4139_v27, %v3909_v25  ;;  %1542 = vmatpush.bf16.msra.mxu1 %v3654_v37  ;;  %v499_v7 = vld [vmem:[#allocation3 + $0x68] sm:$0xff] }
  0x4a   : > { %v490_v29 = vld [vmem:[#allocation3 + $0x20] sm:$0xff]  ;;  %v492_v40 = vld [vmem:[#allocation3 + $0x30] sm:$0xff]  ;;  %1631 = vmatpush.bf16.msra.mxu2 %v3782_v38  ;;  %v497_v10 = vld [vmem:[#allocation3 + $0x58] sm:$0xff]  ;;  %v4633_v13 = vpack.c.bf16 %v499_v7, %v495_v6 }
  0x4b   : > { %v4609_v47 = vpack.c.bf16 %v490_v29, %v486_v28  ;;  %v4615_v52 = vpack.c.bf16 %v492_v40, %v488_v39  ;;  %1720 = vmatpush.bf16.msra.mxu3 %v3910_v42  ;;  %v494_v4 = vld [vmem:[#allocation3 + $0x40] sm:$0xff]  ;;  %v496_v8 = vld [vmem:[#allocation3 + $0x50] sm:$0xff]  ;;  %v501_v11 = vld [vmem:[#allocation3 + $0x78] sm:$0xff] }
  0x4c   : > { %1543 = vmatmul.bf16.vlgmr.msra.gmra.mxu1 %v4613_v51  ;;  %1802 = vmatpush.bf16.msrb.mxu0 %v3642_v54  ;;  %v498_v5 = vld [vmem:[#allocation3 + $0x60] sm:$0xff]  ;;  %v500_v9 = vld [vmem:[#allocation3 + $0x70] sm:$0xff]  ;;  %v4637_v15 = vpack.c.bf16 %v501_v11, %v497_v10  ;;  %v503_v18 = vld [vmem:[#allocation3 + $0x88] sm:$0xff] }
  0x4d   : > { %1454 = vmatmul.bf16.vlgmr.msra.gmra.mxu0 %v4609_v47  ;;  %1632 = vmatmul.bf16.vlgmr.msra.gmra.mxu2 %v4615_v52  ;;  %v4631_v12 = vpack.c.bf16 %v498_v5, %v494_v4  ;;  %v4635_v14 = vpack.c.bf16 %v500_v9, %v496_v8  ;;  %v502_v16 = vld [vmem:[#allocation3 + $0x80] sm:$0xff]  ;;  %v507_v19 = vld [vmem:[#allocation3 + $0xa8] sm:$0xff]  ;;  %v504_v20 = vld [vmem:[#allocation3 + $0x90] sm:$0xff] }
  0x4e   : > { %1980 = vmatpush.bf16.msrb.mxu2 %v3898_v44  ;;  %1721 = vmatmul.bf16.vlgmr.msra.gmra.mxu3 %v4617_v53  ;;  %v506_v17 = vld [vmem:[#allocation3 + $0xa0] sm:$0xff]  ;;  %v508_v21 = vld [vmem:[#allocation3 + $0xb0] sm:$0xff]  ;;  %v505_v22 = vld [vmem:[#allocation3 + $0x98] sm:$0xff]  ;;  %v4645_v25 = vpack.c.bf16 %v507_v19, %v503_v18 }
  0x4f   : > { %2069 = vmatpush.bf16.msrb.mxu3 %v4026_v48  ;;  %1891 = vmatpush.bf16.msrb.mxu1 %v3770_v55  ;;  %v509_v23 = vld [vmem:[#allocation3 + $0xb8] sm:$0xff]  ;;  %v4643_v24 = vpack.c.bf16 %v506_v17, %v502_v16  ;;  %v4647_v26 = vpack.c.bf16 %v508_v21, %v504_v20  ;;  %v4125_v28 = vld [vmem:[%s4533_s27 + $0x2a4] sm:$0xf]  ;;  %v3863_v29 = vld [vmem:[%s4533_s27 + $0x2b0] sm:$0xf0] }
  0x50   : > { %1803 = vmatpush.bf16.msrb.mxu0 %v3626_v0  ;;  %v4649_v27 = vpack.c.bf16 %v509_v23, %v505_v22  ;;  %v4157_v30 = vld [vmem:[%s4533_s27 + $0x3a4] sm:$0xf]  ;;  %v3866_v31 = vor.u32 %v4125_v28, %v3863_v29  ;;  %v3991_v32 = vld [vmem:[%s4533_s27 + $0x3b0] sm:$0xf0]  ;;  %v511_v42 = vld [vmem:[#allocation3 + $0xc8] sm:$0xff] }
  0x51   : > { %v4061_v33 = vld [vmem:[%s4533_s27 + $0xa4] sm:$0xf]  ;;  %v3607_v34 = vld [vmem:[%s4533_s27 + $0xb0] sm:$0xf0]  ;;  %v3994_v35 = vor.u32 %v4157_v30, %v3991_v32  ;;  %v515_v43 = vld [vmem:[#allocation3 + $0xe8] sm:$0xff] }
  0x52   : > { %1981 = vmatpush.bf16.msrb.mxu2 %v3882_v59  ;;  %v3610_v36 = vor.u32 %v4061_v33, %v3607_v34  ;;  %v4093_v37 = vld [vmem:[%s4533_s27 + $0x1a4] sm:$0xf]  ;;  %v3735_v38 = vld [vmem:[%s4533_s27 + $0x1b0] sm:$0xf0]  ;;  %v513_v46 = vld [vmem:[#allocation3 + $0xd8] sm:$0xff]  ;;  %v4665_v50 = vpack.c.bf16 %v515_v43, %v511_v42 }
  0x53   : > { %2070 = vmatpush.bf16.msrb.mxu3 %v4010_v63  ;;  %1892 = vmatpush.bf16.msrb.mxu1 %v3754_v3  ;;  %v3738_v39 = vor.u32 %v4093_v37, %v3735_v38  ;;  %v510_v40 = vld [vmem:[#allocation3 + $0xc0] sm:$0xff]  ;;  %v512_v44 = vld [vmem:[#allocation3 + $0xd0] sm:$0xff]  ;;  %v517_v48 = vld [vmem:[#allocation3 + $0xf8] sm:$0xff] }
  0x54   : > { %1804 = vmatpush.bf16.msrb.mxu0 %v3610_v36  ;;  %v514_v41 = vld [vmem:[#allocation3 + $0xe0] sm:$0xff]  ;;  %v516_v45 = vld [vmem:[#allocation3 + $0xf0] sm:$0xff]  ;;  %v4669_v55 = vpack.c.bf16 %v517_v48, %v513_v46  ;;  %v519_v58 = vld [vmem:[#allocation3 + $0x108] sm:$0xff] }
  0x55   : > { %v4663_v49 = vpack.c.bf16 %v514_v41, %v510_v40  ;;  %v4667_v54 = vpack.c.bf16 %v516_v45, %v512_v44  ;;  %v518_v56 = vld [vmem:[#allocation3 + $0x100] sm:$0xff]  ;;  %v523_v59 = vld [vmem:[#allocation3 + $0x128] sm:$0xff]  ;;  %v520_v60 = vld [vmem:[#allocation3 + $0x110] sm:$0xff] }
  0x56   : > { %1982 = vmatpush.bf16.msrb.mxu2 %v3866_v31  ;;  %v522_v57 = vld [vmem:[#allocation3 + $0x120] sm:$0xff]  ;;  %v524_v61 = vld [vmem:[#allocation3 + $0x130] sm:$0xff]  ;;  %v521_v62 = vld [vmem:[#allocation3 + $0x118] sm:$0xff]  ;;  %v4677_v1 = vpack.c.bf16 %v523_v59, %v519_v58 }
  0x57   : > { %2071 = vmatpush.bf16.msrb.mxu3 %v3994_v35  ;;  %1893 = vmatpush.bf16.msrb.mxu1 %v3738_v39  ;;  %v525_v63 = vld [vmem:[#allocation3 + $0x138] sm:$0xff]  ;;  %v4675_v0 = vpack.c.bf16 %v522_v57, %v518_v56  ;;  %v4679_v2 = vpack.c.bf16 %v524_v61, %v520_v60  ;;  %v4121_v4 = vld [vmem:[%s4533_s27 + $0x284] sm:$0xf]  ;;  %v3847_v5 = vld [vmem:[%s4533_s27 + $0x290] sm:$0xf0] }
  0x58   : > { %v4681_v3 = vpack.c.bf16 %v525_v63, %v521_v62  ;;  %v4153_v6 = vld [vmem:[%s4533_s27 + $0x384] sm:$0xf]  ;;  %v3850_v7 = vor.u32 %v4121_v4, %v3847_v5  ;;  %v3975_v8 = vld [vmem:[%s4533_s27 + $0x390] sm:$0xf0]  ;;  %v527_v22 = vld [vmem:[#allocation3 + $0x148] sm:$0xff] }
  0x59   : > { %v4057_v9 = vld [vmem:[%s4533_s27 + $0x84] sm:$0xf]  ;;  %v3591_v10 = vld [vmem:[%s4533_s27 + $0x90] sm:$0xf0]  ;;  %v3978_v11 = vor.u32 %v4153_v6, %v3975_v8  ;;  %v531_v23 = vld [vmem:[#allocation3 + $0x168] sm:$0xff] }
  0x5a   : > { %v3594_v16 = vor.u32 %v4057_v9, %v3591_v10  ;;  %v4089_v17 = vld [vmem:[%s4533_s27 + $0x184] sm:$0xf]  ;;  %v3719_v18 = vld [vmem:[%s4533_s27 + $0x190] sm:$0xf0]  ;;  %1983 = vmatpush.bf16.msrb.mxu2 %v3850_v7  ;;  %v529_v30 = vld [vmem:[#allocation3 + $0x158] sm:$0xff]  ;;  %v4697_v33 = vpack.c.bf16 %v531_v23, %v527_v22 }
  0x5b   : > { %v3722_v19 = vor.u32 %v4089_v17, %v3719_v18  ;;  %2072 = vmatpush.bf16.msrb.mxu3 %v3978_v11  ;;  %v526_v20 = vld [vmem:[#allocation3 + $0x140] sm:$0xff]  ;;  %v528_v28 = vld [vmem:[#allocation3 + $0x150] sm:$0xff]  ;;  %v533_v31 = vld [vmem:[#allocation3 + $0x178] sm:$0xff] }
  0x5c   : > { %1548 = vmatmul.bf16.gmra.mxu1 %v4633_v13  ;;  %1805 = vmatpush.bf16.msrb.mxu0 %v3594_v16  ;;  %v530_v21 = vld [vmem:[#allocation3 + $0x160] sm:$0xff]  ;;  %v532_v29 = vld [vmem:[#allocation3 + $0x170] sm:$0xff]  ;;  %v4701_v35 = vpack.c.bf16 %v533_v31, %v529_v30  ;;  %v535_v38 = vld [vmem:[#allocation3 + $0x188] sm:$0xff] }
  0x5d   : > { %1459 = vmatmul.bf16.gmra.mxu0 %v4631_v12  ;;  %1637 = vmatmul.bf16.gmra.mxu2 %v4635_v14  ;;  %v4695_v32 = vpack.c.bf16 %v530_v21, %v526_v20  ;;  %v4699_v34 = vpack.c.bf16 %v532_v29, %v528_v28  ;;  %v534_v36 = vld [vmem:[#allocation3 + $0x180] sm:$0xff]  ;;  %v539_v39 = vld [vmem:[#allocation3 + $0x1a8] sm:$0xff]  ;;  %v536_v40 = vld [vmem:[#allocation3 + $0x190] sm:$0xff] }
  0x5e   : > { %1726 = vmatmul.bf16.gmra.mxu3 %v4637_v15  ;;  %1894 = vmatpush.bf16.msrb.mxu1 %v3722_v19  ;;  %v538_v37 = vld [vmem:[#allocation3 + $0x1a0] sm:$0xff]  ;;  %v540_v41 = vld [vmem:[#allocation3 + $0x1b0] sm:$0xff]  ;;  %v537_v42 = vld [vmem:[#allocation3 + $0x198] sm:$0xff]  ;;  %v4709_v45 = vpack.c.bf16 %v539_v39, %v535_v38 }
  0x5f   : > { %v541_v43 = vld [vmem:[#allocation3 + $0x1b8] sm:$0xff]  ;;  %v4707_v44 = vpack.c.bf16 %v538_v37, %v534_v36  ;;  %v4711_v46 = vpack.c.bf16 %v540_v41, %v536_v40  ;;  %v4117_v56 = vld [vmem:[%s4533_s27 + $0x264] sm:$0xf]  ;;  %v3831_v57 = vld [vmem:[%s4533_s27 + $0x270] sm:$0xf0] }
  0x60   : > { %v4713_v48 = vpack.c.bf16 %v541_v43, %v537_v42  ;;  %v4149_v58 = vld [vmem:[%s4533_s27 + $0x364] sm:$0xf]  ;;  %v3834_v59 = vor.u32 %v4117_v56, %v3831_v57  ;;  %v3959_v60 = vld [vmem:[%s4533_s27 + $0x370] sm:$0xf0]  ;;  %v543_v4 = vld [vmem:[#allocation3 + $0x1c8] sm:$0xff] }
  0x61   : > { %v3962_v61 = vor.u32 %v4149_v58, %v3959_v60  ;;  %v542_v62 = vld [vmem:[#allocation3 + $0x1c0] sm:$0xff]  ;;  %v547_v5 = vld [vmem:[#allocation3 + $0x1e8] sm:$0xff]  ;;  %v3575_v7 = vld [vmem:[%s4533_s27 + $0x70] sm:$0xf0] }
  0x62   : > { %1984 = vmatpush.bf16.msrb.mxu2 %v3834_v59  ;;  %v546_v63 = vld [vmem:[#allocation3 + $0x1e0] sm:$0xff]  ;;  %v544_v9 = vld [vmem:[#allocation3 + $0x1d0] sm:$0xff]  ;;  %v545_v17 = vld [vmem:[#allocation3 + $0x1d8] sm:$0xff]  ;;  %v4729_v21 = vpack.c.bf16 %v547_v5, %v543_v4 }
  0x63   : > { %2073 = vmatpush.bf16.msrb.mxu3 %v3962_v61  ;;  %v4053_v6 = vld [vmem:[%s4533_s27 + $0x64] sm:$0xf]  ;;  %v548_v10 = vld [vmem:[#allocation3 + $0x1f0] sm:$0xff]  ;;  %v549_v18 = vld [vmem:[#allocation3 + $0x1f8] sm:$0xff]  ;;  %v4727_v20 = vpack.c.bf16 %v546_v63, %v542_v62 }
  0x64   : > { %v4085_v8 = vld [vmem:[%s4533_s27 + $0x164] sm:$0xf]  ;;  %v3578_v11 = vor.u32 %v4053_v6, %v3575_v7  ;;  %v3703_v16 = vld [vmem:[%s4533_s27 + $0x170] sm:$0xf0]  ;;  %v4731_v22 = vpack.c.bf16 %v548_v10, %v544_v9  ;;  %v4733_v23 = vpack.c.bf16 %v549_v18, %v545_v17  ;;  %v551_v30 = vld [vmem:[#allocation3 + $0x208] sm:$0xff] }
  0x65   : > { %v3706_v19 = vor.u32 %v4085_v8, %v3703_v16  ;;  %v550_v28 = vld [vmem:[#allocation3 + $0x200] sm:$0xff]  ;;  %v555_v31 = vld [vmem:[#allocation3 + $0x228] sm:$0xff]  ;;  %v552_v36 = vld [vmem:[#allocation3 + $0x210] sm:$0xff] }
  0x66   : > { %1806 = vmatpush.bf16.msrb.mxu0 %v3578_v11  ;;  %v554_v29 = vld [vmem:[#allocation3 + $0x220] sm:$0xff]  ;;  %v556_v37 = vld [vmem:[#allocation3 + $0x230] sm:$0xff]  ;;  %v553_v38 = vld [vmem:[#allocation3 + $0x218] sm:$0xff]  ;;  %v4741_v42 = vpack.c.bf16 %v555_v31, %v551_v30 }
  0x67   : > { %1895 = vmatpush.bf16.msrb.mxu1 %v3706_v19  ;;  %v557_v39 = vld [vmem:[#allocation3 + $0x238] sm:$0xff]  ;;  %v4739_v40 = vpack.c.bf16 %v554_v29, %v550_v28  ;;  %v4743_v43 = vpack.c.bf16 %v556_v37, %v552_v36  ;;  %v4113_v59 = vld [vmem:[%s4533_s27 + $0x244] sm:$0xf]  ;;  %v3815_v60 = vld [vmem:[%s4533_s27 + $0x250] sm:$0xf0] }
  0x68   : > { %v4745_v57 = vpack.c.bf16 %v557_v39, %v553_v38  ;;  %v4145_v61 = vld [vmem:[%s4533_s27 + $0x344] sm:$0xf]  ;;  %v3818_v62 = vor.u32 %v4113_v59, %v3815_v60  ;;  %v3943_v63 = vld [vmem:[%s4533_s27 + $0x350] sm:$0xf0]  ;;  %v559_v17 = vld [vmem:[#allocation3 + $0x248] sm:$0xff] }
  0x69   : > { %v3946_v5 = vor.u32 %v4145_v61, %v3943_v63  ;;  %v558_v11 = vld [vmem:[#allocation3 + $0x240] sm:$0xff]  ;;  %v563_v18 = vld [vmem:[#allocation3 + $0x268] sm:$0xff]  ;;  %v3559_v28 = vld [vmem:[%s4533_s27 + $0x50] sm:$0xf0] }
  0x6a   : > { %1985 = vmatpush.bf16.msrb.mxu2 %v3818_v62  ;;  %v562_v16 = vld [vmem:[#allocation3 + $0x260] sm:$0xff]  ;;  %v560_v30 = vld [vmem:[#allocation3 + $0x250] sm:$0xff]  ;;  %v561_v39 = vld [vmem:[#allocation3 + $0x258] sm:$0xff]  ;;  %v4766_v63 = vpack.c.bf16 %v563_v18, %v559_v17 }
  0x6b   : > { %2074 = vmatpush.bf16.msrb.mxu3 %v3946_v5  ;;  %v4049_v19 = vld [vmem:[%s4533_s27 + $0x44] sm:$0xf]  ;;  %v564_v31 = vld [vmem:[#allocation3 + $0x270] sm:$0xff]  ;;  %v4764_v59 = vpack.c.bf16 %v562_v16, %v558_v11 }
  0x6c   : > { %1553 = vmatmul.bf16.gmra.mxu1 %v4645_v25  ;;  %v4081_v29 = vld [vmem:[%s4533_s27 + $0x144] sm:$0xf]  ;;  %v3562_v36 = vor.u32 %v4049_v19, %v3559_v28  ;;  %v3687_v37 = vld [vmem:[%s4533_s27 + $0x150] sm:$0xf0] }
  0x6d   : > { %1464 = vmatmul.bf16.gmra.mxu0 %v4643_v24  ;;  %1642 = vmatmul.bf16.gmra.mxu2 %v4647_v26  ;;  %v566_v19 = vld [vmem:[#allocation3 + $0x280] sm:$0xff] }
  0x6e   : > { %1731 = vmatmul.bf16.gmra.mxu3 %v4649_v27  ;;  %1807 = vmatpush.bf16.msrb.mxu0 %v3562_v36  ;;  %v570_v28 = vld [vmem:[#allocation3 + $0x2a0] sm:$0xff]  ;;  %v572_v36 = vld [vmem:[#allocation3 + $0x2b0] sm:$0xff] }
  0x7c   : > { %1558 = vmatmul.bf16.gmra.mxu1 %v4665_v50 }
  0x7d   : > { %1469 = vmatmul.bf16.gmra.mxu0 %v4663_v49  ;;  %1647 = vmatmul.bf16.gmra.mxu2 %v4667_v54 }
  0x7e   : > { %1736 = vmatmul.bf16.gmra.mxu3 %v4669_v55 }
  0x8c   : > { %1563 = vmatmul.bf16.gmra.mxu1 %v4677_v1 }
  0x8d   : > { %1474 = vmatmul.bf16.gmra.mxu0 %v4675_v0  ;;  %1652 = vmatmul.bf16.gmra.mxu2 %v4679_v2 }
  0x8e   : > { %1741 = vmatmul.bf16.gmra.mxu3 %v4681_v3 }
  0x9c   : > { %1568 = vmatmul.bf16.gmra.mxu1 %v4697_v33 }
  0x9d   : > { %1479 = vmatmul.bf16.gmra.mxu0 %v4695_v32  ;;  %1657 = vmatmul.bf16.gmra.mxu2 %v4699_v34 }
  0x9e   : > { %1746 = vmatmul.bf16.gmra.mxu3 %v4701_v35 }
  0xac   : > { %1573 = vmatmul.bf16.gmra.mxu1 %v4709_v45 }
  0xad   : > { %1484 = vmatmul.bf16.gmra.mxu0 %v4707_v44  ;;  %1662 = vmatmul.bf16.gmra.mxu2 %v4711_v46 }
  0xae   : > { %1751 = vmatmul.bf16.gmra.mxu3 %v4713_v48 }
  0xbc   : > { %1578 = vmatmul.bf16.gmra.mxu1 %v4729_v21 }
  0xbd   : > { %1489 = vmatmul.bf16.gmra.mxu0 %v4727_v20  ;;  %1667 = vmatmul.bf16.gmra.mxu2 %v4731_v22 }
  0xbe   : > { %1756 = vmatmul.bf16.gmra.mxu3 %v4733_v23 }
  0xc9   : > { %v1544_v56 = vpop.f32.mrf.mxu1 }
  0xca   : > { %v1455_v41 = vpop.f32.mrf.mxu0 }
  0xcb   : > { %v1545_v58 = vadd.f32 %v1544_v56, %v1455_v41  ;;  %v565_v41 = vld [vmem:[#allocation3 + $0x278] sm:$0xff]  ;;  %v3690_v56 = vor.u32 %v4081_v29, %v3687_v37  ;;  %v567_v29 = vld [vmem:[#allocation3 + $0x288] sm:$0xff] }
  0xcc   : > { %1583 = vmatmul.bf16.gmra.mxu1 %v4741_v42 }
  0xcd   : > { %1494 = vmatmul.bf16.gmra.mxu0 %v4739_v40  ;;  %1672 = vmatmul.bf16.gmra.mxu2 %v4743_v43 }
  0xce   : > { %1761 = vmatmul.bf16.gmra.mxu3 %v4745_v57  ;;  %1896 = vmatpush.bf16.msrb.mxu1 %v3690_v56  ;;  %v4778_v56 = vpack.c.bf16 %v570_v28, %v566_v19  ;;  %v3927_v19 = vld [vmem:[%s4533_s27 + $0x330] sm:$0xf0] }
  0xd0   : > { %v1633_v4 = vpop.f32.mrf.mxu2  ;;  %5402 = vst [vmem:[#allocation12_spill] sm:$0xff] %v4778_v56 }
  0xd1   : > { %v1634_v6 = vadd.f32 %v1633_v4, %v1545_v58  ;;  %v1722_v7 = vpop.f32.mrf.mxu3  ;;  %v1546_v9 = vpop.f32.mrf.mxu1  ;;  %v4768_v4 = vpack.c.bf16 %v564_v31, %v560_v30  ;;  %v571_v30 = vld [vmem:[#allocation3 + $0x2a8] sm:$0xff]  ;;  %v568_v31 = vld [vmem:[#allocation3 + $0x290] sm:$0xff] }
  0xd2   : > { %v1457_v8 = vpop.f32.mrf.mxu0 }
  0xd3   : > { %v1723_v10 = vadd.f32 %v1722_v7, %v1634_v6  ;;  %v1547_v38 = vadd.f32 %v1546_v9, %v1457_v8  ;;  %v4770_v6 = vpack.c.bf16 %v565_v41, %v561_v39  ;;  %v573_v39 = vld [vmem:[#allocation3 + $0x2b8] sm:$0xff] }
  0xd5   : > { %3257 = vst [vmem:[%s4757_s17] sm:$0xff] %v1723_v10 }
  0xd8   : > { %v1635_v58 = vpop.f32.mrf.mxu2 }
  0xd9   : > { %v1636_v60 = vadd.f32 %v1635_v58, %v1547_v38  ;;  %v1724_v61 = vpop.f32.mrf.mxu3  ;;  %v1549_v5 = vpop.f32.mrf.mxu1  ;;  %v569_v38 = vld [vmem:[#allocation3 + $0x298] sm:$0xff] }
  0xda   : > { %v1460_v62 = vpop.f32.mrf.mxu0 }
  0xdb   : > { %v1725_v7 = vadd.f32 %v1724_v61, %v1636_v60  ;;  %v1550_v8 = vadd.f32 %v1549_v5, %v1460_v62  ;;  %v4780_v62 = vpack.c.bf16 %v571_v30, %v567_v29  ;;  %v4782_v5 = vpack.c.bf16 %v572_v36, %v568_v31 }
  0xdc   : > { %1588 = vmatmul.bf16.gmra.mxu1 %v4766_v63 }
  0xdd   : > { %1499 = vmatmul.bf16.gmra.mxu0 %v4764_v59  ;;  %3261 = vst [vmem:[%s4757_s17 + $0x20] sm:$0xff] %v1725_v7  ;;  %1677 = vmatmul.bf16.gmra.mxu2 %v4768_v4 }
  0xde   : > { %1766 = vmatmul.bf16.gmra.mxu3 %v4770_v6  ;;  %5403 = vst [vmem:[#allocation13_spill] sm:$0xff] %v4780_v62 }
  0xdf   : > { %5404 = vst [vmem:[#allocation14_spill] sm:$0xff] %v4782_v5 }
  0xe0   : > { %v1638_v9 = vpop.f32.mrf.mxu2 }
  0xe1   : > { %v1639_v10 = vadd.f32 %v1638_v9, %v1550_v8  ;;  %v1727_v11 = vpop.f32.mrf.mxu3  ;;  %v1551_v17 = vpop.f32.mrf.mxu1  ;;  %v4784_v8 = vpack.c.bf16 %v573_v39, %v569_v38  ;;  %v574_v39 = vld [vmem:[#allocation3 + $0x2c0] sm:$0xff] }
  0xe2   : > { %v1462_v16 = vpop.f32.mrf.mxu0 }
  0xe3   : > { %v1728_v18 = vadd.f32 %v1727_v11, %v1639_v10  ;;  %v1552_v37 = vadd.f32 %v1551_v17, %v1462_v16  ;;  %5405 = vst [vmem:[#allocation15_spill] sm:$0xff] %v4784_v8  ;;  %v4109_v11 = vld [vmem:[%s4533_s27 + $0x224] sm:$0xf]  ;;  %v3799_v16 = vld [vmem:[%s4533_s27 + $0x230] sm:$0xf0] }
  0xe4   : > { %v4141_v17 = vld [vmem:[%s4533_s27 + $0x324] sm:$0xf] }
  0xe5   : > { %3265 = vst [vmem:[%s4757_s17 + $0x40] sm:$0xff] %v1728_v18  ;;  %v3802_v18 = vor.u32 %v4109_v11, %v3799_v16  ;;  %v3930_v29 = vor.u32 %v4141_v17, %v3927_v19  ;;  %v580_v11 = vld [vmem:[#allocation3 + $0x2f0] sm:$0xff]  ;;  %v4077_v17 = vld [vmem:[%s4533_s27 + $0x124] sm:$0xf] }
  0xe7   : > { %1986 = vmatpush.bf16.msrb.mxu2 %v3802_v18  ;;  %2075 = vmatpush.bf16.msrb.mxu3 %v3930_v29 }
  0xe8   : > { %v1640_v41 = vpop.f32.mrf.mxu2 }
  0xe9   : > { %v1641_v58 = vadd.f32 %v1640_v41, %v1552_v37  ;;  %v1729_v60 = vpop.f32.mrf.mxu3  ;;  %v1554_v7 = vpop.f32.mrf.mxu1  ;;  %v578_v41 = vld [vmem:[#allocation3 + $0x2e0] sm:$0xff] }
  0xea   : > { %v1465_v61 = vpop.f32.mrf.mxu0  ;;  %v4800_v29 = vpack.c.bf16 %v578_v41, %v574_v39 }
  0xeb   : > { %v1730_v9 = vadd.f32 %v1729_v60, %v1641_v58  ;;  %v1555_v10 = vadd.f32 %v1554_v7, %v1465_v61  ;;  %v575_v58 = vld [vmem:[#allocation3 + $0x2c8] sm:$0xff]  ;;  %v576_v61 = vld [vmem:[#allocation3 + $0x2d0] sm:$0xff]  ;;  %v4045_v7 = vld [vmem:[%s4533_s27 + $0x24] sm:$0xf] }
  0xec   : > { %1593 = vmatmul.bf16.gmra.mxu1 %v4780_v62  ;;  %v579_v60 = vld [vmem:[#allocation3 + $0x2e8] sm:$0xff]  ;;  %5406 = vst [vmem:[#allocation16_spill] sm:$0xff] %v4800_v29 }
  0xed   : > { %1504 = vmatmul.bf16.gmra.mxu0 %v4778_v56  ;;  %3269 = vst [vmem:[%s4757_s17 + $0x60] sm:$0xff] %v1730_v9  ;;  %1682 = vmatmul.bf16.gmra.mxu2 %v4782_v5  ;;  %v3543_v9 = vld [vmem:[%s4533_s27 + $0x30] sm:$0xf0]  ;;  %v4804_v56 = vpack.c.bf16 %v580_v11, %v576_v61  ;;  %v586_v11 = vld [vmem:[#allocation3 + $0x320] sm:$0xff] }
  0xee   : > { %1771 = vmatmul.bf16.gmra.mxu3 %v4784_v8  ;;  %v3546_v16 = vor.u32 %v4045_v7, %v3543_v9  ;;  %v581_v8 = vld [vmem:[#allocation3 + $0x2f8] sm:$0xff] }
  0xef   : > { %5408 = vst [vmem:[#allocation18_spill] sm:$0xff] %v4804_v56 }
  0xf0   : > { %v1643_v28 = vpop.f32.mrf.mxu2  ;;  %1808 = vmatpush.bf16.msrb.mxu0 %v3546_v16  ;;  %v583_v16 = vld [vmem:[#allocation3 + $0x308] sm:$0xff] }
  0xf1   : > { %v1644_v30 = vadd.f32 %v1643_v28, %v1555_v10  ;;  %v1732_v31 = vpop.f32.mrf.mxu3  ;;  %v1556_v37 = vpop.f32.mrf.mxu1  ;;  %v3671_v10 = vld [vmem:[%s4533_s27 + $0x130] sm:$0xf0]  ;;  %v577_v28 = vld [vmem:[#allocation3 + $0x2d8] sm:$0xff] }
  0xf2   : > { %v1467_v36 = vpop.f32.mrf.mxu0  ;;  %v3674_v18 = vor.u32 %v4077_v17, %v3671_v10  ;;  %v4806_v9 = vpack.c.bf16 %v581_v8, %v577_v28  ;;  %v582_v8 = vld [vmem:[#allocation3 + $0x300] sm:$0xff]  ;;  %v587_v17 = vld [vmem:[#allocation3 + $0x328] sm:$0xff]  ;;  %v584_v10 = vld [vmem:[#allocation3 + $0x310] sm:$0xff] }
  0xf3   : > { %v1733_v38 = vadd.f32 %v1732_v31, %v1644_v30  ;;  %v1557_v19 = vadd.f32 %v1556_v37, %v1467_v36  ;;  %v585_v28 = vld [vmem:[#allocation3 + $0x318] sm:$0xff] }
  0xf4   : > { %1897 = vmatpush.bf16.msrb.mxu1 %v3674_v18  ;;  %5409 = vst [vmem:[#allocation19_spill] sm:$0xff] %v4806_v9  ;;  %v589_v18 = vld [vmem:[#allocation3 + $0x338] sm:$0xff] }
  0xf5   : > { %3273 = vst [vmem:[%s4757_s17 + $0x80] sm:$0xff] %v1733_v38  ;;  %v4802_v38 = vpack.c.bf16 %v579_v60, %v575_v58 }
  0xf7   : > { %5407 = vst [vmem:[#allocation17_spill] sm:$0xff] %v4802_v38 }
  0xf8   : > { %v1645_v5 = vpop.f32.mrf.mxu2 }
  0xf9   : > { %v1646_v30 = vadd.f32 %v1645_v5, %v1557_v19  ;;  %v1734_v31 = vpop.f32.mrf.mxu3  ;;  %v1559_v7 = vpop.f32.mrf.mxu1 }
  0xfa   : > { %v1470_v62 = vpop.f32.mrf.mxu0 }
  0xfb   : > { %v1735_v36 = vadd.f32 %v1734_v31, %v1646_v30  ;;  %v1560_v37 = vadd.f32 %v1559_v7, %v1470_v62  ;;  %v588_v62 = vld [vmem:[#allocation3 + $0x330] sm:$0xff]  ;;  %v4814_v31 = vpack.c.bf16 %v586_v11, %v582_v8  ;;  %v4105_v8 = vld [vmem:[%s4533_s27 + $0x204] sm:$0xf] }
  0xfc   : > { %1598 = vmatmul.bf16.gmra.mxu1 %v4802_v38  ;;  %v3783_v11 = vld [vmem:[%s4533_s27 + $0x210] sm:$0xf0] }
  0xfd   : > { %1509 = vmatmul.bf16.gmra.mxu0 %v4800_v29  ;;  %3277 = vst [vmem:[%s4757_s17 + $0xa0] sm:$0xff] %v1735_v36  ;;  %1687 = vmatmul.bf16.gmra.mxu2 %v4804_v56 }
  0xfe   : > { %1776 = vmatmul.bf16.gmra.mxu3 %v4806_v9  ;;  %5410 = vst [vmem:[#allocation20_spill] sm:$0xff] %v4814_v31  ;;  %v597_v9 = vld [vmem:[#allocation3 + $0x378] sm:$0xff] }
 0x100   : > { %v1648_v5 = vpop.f32.mrf.mxu2 }
 0x101   : > { %v1649_v39 = vadd.f32 %v1648_v5, %v1560_v37  ;;  %v1737_v41 = vpop.f32.mrf.mxu3  ;;  %v1561_v60 = vpop.f32.mrf.mxu1  ;;  %v4816_v5 = vpack.c.bf16 %v587_v17, %v583_v16  ;;  %v4137_v16 = vld [vmem:[%s4533_s27 + $0x304] sm:$0xf]  ;;  %v3786_v17 = vor.u32 %v4105_v8, %v3783_v11  ;;  %v592_v8 = vld [vmem:[#allocation3 + $0x350] sm:$0xff] }
 0x102   : > { %v1472_v58 = vpop.f32.mrf.mxu0  ;;  %v4041_v11 = vld [vmem:[%s4533_s27 + $0x4] sm:$0xf] }
 0x103   : > { %v1738_v61 = vadd.f32 %v1737_v41, %v1649_v39  ;;  %v1562_v19 = vadd.f32 %v1561_v60, %v1472_v58  ;;  %5411 = vst [vmem:[#allocation21_spill] sm:$0xff] %v4816_v5  ;;  %v4818_v39 = vpack.c.bf16 %v588_v62, %v584_v10  ;;  %v3911_v10 = vld [vmem:[%s4533_s27 + $0x310] sm:$0xf0]  ;;  %1987 = vmatpush.bf16.msrb.mxu2 %v3786_v17 }
 0x105   : > { %3281 = vst [vmem:[%s4757_s17 + $0xc0] sm:$0xff] %v1738_v61  ;;  %v4820_v61 = vpack.c.bf16 %v589_v18, %v585_v28 }
 0x106   : > { %5412 = vst [vmem:[#allocation22_spill] sm:$0xff] %v4818_v39 }
 0x107   : > { %5413 = vst [vmem:[#allocation23_spill] sm:$0xff] %v4820_v61 }
 0x108   : > { %v1650_v30 = vpop.f32.mrf.mxu2 }
 0x109   : > { %v1651_v7 = vadd.f32 %v1650_v30, %v1562_v19  ;;  %v1739_v36 = vpop.f32.mrf.mxu3  ;;  %v1564_v41 = vpop.f32.mrf.mxu1  ;;  %v3914_v19 = vor.u32 %v4137_v16, %v3911_v10  ;;  %v4073_v16 = vld [vmem:[%s4533_s27 + $0x104] sm:$0xf] }
 0x10a   : > { %v1475_v37 = vpop.f32.mrf.mxu0 }
 0x10b   : > { %v1740_v58 = vadd.f32 %v1739_v36, %v1651_v7  ;;  %v1565_v60 = vadd.f32 %v1564_v41, %v1475_v37  ;;  %2076 = vmatpush.bf16.msrb.mxu3 %v3914_v19  ;;  %v590_v37 = vld [vmem:[#allocation3 + $0x340] sm:$0xff] }
 0x10c   : > { %1603 = vmatmul.bf16.gmra.mxu1 %v4816_v5  ;;  %v594_v41 = vld [vmem:[#allocation3 + $0x360] sm:$0xff]  ;;  %v596_v5 = vld [vmem:[#allocation3 + $0x370] sm:$0xff] }
 0x10d   : > { %1514 = vmatmul.bf16.gmra.mxu0 %v4814_v31  ;;  %3285 = vst [vmem:[%s4757_s17 + $0xe0] sm:$0xff] %v1740_v58  ;;  %1692 = vmatmul.bf16.gmra.mxu2 %v4818_v39  ;;  %v591_v58 = vld [vmem:[#allocation3 + $0x348] sm:$0xff]  ;;  %v3527_v39 = vld [vmem:[%s4533_s27 + $0x10] sm:$0xf0]  ;;  %v4836_v19 = vpack.c.bf16 %v594_v41, %v590_v37  ;;  %v4840_v29 = vpack.c.bf16 %v596_v5, %v592_v8 }
 0x10e   : > { %1781 = vmatmul.bf16.gmra.mxu3 %v4820_v61  ;;  %v595_v61 = vld [vmem:[#allocation3 + $0x368] sm:$0xff]  ;;  %v3530_v31 = vor.u32 %v4041_v11, %v3527_v39 }
 0x10f   : > { %5414 = vst [vmem:[#allocation24_spill] sm:$0xff] %v4836_v19  ;;  %v599_v8 = vld [vmem:[#allocation3 + $0x388] sm:$0xff] }
 0x110   : > { %v1653_v62 = vpop.f32.mrf.mxu2  ;;  %1809 = vmatpush.bf16.msrb.mxu0 %v3530_v31  ;;  %5416 = vst [vmem:[#allocation26_spill] sm:$0xff] %v4840_v29 }
 0x111   : > { %v1654_v28 = vadd.f32 %v1653_v62, %v1565_v60  ;;  %v1742_v18 = vpop.f32.mrf.mxu3  ;;  %v1566_v7 = vpop.f32.mrf.mxu1  ;;  %v3655_v60 = vld [vmem:[%s4533_s27 + $0x110] sm:$0xf0]  ;;  %v593_v62 = vld [vmem:[#allocation3 + $0x358] sm:$0xff] }
 0x112   : > { %v1477_v30 = vpop.f32.mrf.mxu0  ;;  %v3658_v17 = vor.u32 %v4073_v16, %v3655_v60  ;;  %v4842_v11 = vpack.c.bf16 %v597_v9, %v593_v62  ;;  %v598_v9 = vld [vmem:[#allocation3 + $0x380] sm:$0xff]  ;;  %v603_v16 = vld [vmem:[#allocation3 + $0x3a8] sm:$0xff]  ;;  %v600_v60 = vld [vmem:[#allocation3 + $0x390] sm:$0xff] }
 0x113   : > { %v1743_v36 = vadd.f32 %v1742_v18, %v1654_v28  ;;  %v1567_v10 = vadd.f32 %v1566_v7, %v1477_v30  ;;  %v601_v62 = vld [vmem:[#allocation3 + $0x398] sm:$0xff] }
 0x114   : > { %1898 = vmatpush.bf16.msrb.mxu1 %v3658_v17  ;;  %5417 = vst [vmem:[#allocation27_spill] sm:$0xff] %v4842_v11  ;;  %v605_v17 = vld [vmem:[#allocation3 + $0x3b8] sm:$0xff] }
 0x115   : > { %3289 = vst [vmem:[%s4757_s17 + $0x100] sm:$0xff] %v1743_v36  ;;  %v4838_v36 = vpack.c.bf16 %v595_v61, %v591_v58  ;;  %v602_v58 = vld [vmem:[#allocation3 + $0x3a0] sm:$0xff] }
 0x117   : > { %5415 = vst [vmem:[#allocation25_spill] sm:$0xff] %v4838_v36 }
 0x118   : > { %v1655_v56 = vpop.f32.mrf.mxu2 }
 0x119   : > { %v1656_v28 = vadd.f32 %v1655_v56, %v1567_v10  ;;  %v1744_v18 = vpop.f32.mrf.mxu3  ;;  %v1569_v39 = vpop.f32.mrf.mxu1 }
 0x11a   : > { %v1480_v38 = vpop.f32.mrf.mxu0 }
 0x11b   : > { %v1745_v30 = vadd.f32 %v1744_v18, %v1656_v28  ;;  %v1570_v7 = vadd.f32 %v1569_v39, %v1480_v38  ;;  %v604_v38 = vld [vmem:[#allocation3 + $0x3b0] sm:$0xff]  ;;  %v4850_v18 = vpack.c.bf16 %v602_v58, %v598_v9  ;;  %v3901_v9 = vld [vmem:[%s4533_s27 + $0x2e8] sm:$0xf]  ;;  %v4136_v58 = vld [vmem:[%s4533_s27 + $0x2f4] sm:$0xf0] }
 0x11c   : > { %1608 = vmatmul.bf16.gmra.mxu1 %v4838_v36 }
 0x11d   : > { %1519 = vmatmul.bf16.gmra.mxu0 %v4836_v19  ;;  %3293 = vst [vmem:[%s4757_s17 + $0x120] sm:$0xff] %v1745_v30  ;;  %1697 = vmatmul.bf16.gmra.mxu2 %v4840_v29 }
 0x11e   : > { %1786 = vmatmul.bf16.gmra.mxu3 %v4842_v11  ;;  %5418 = vst [vmem:[#allocation28_spill] sm:$0xff] %v4850_v18  ;;  %v613_v11 = vld [vmem:[#allocation3 + $0x3f8] sm:$0xff] }
 0x120   : > { %v1658_v56 = vpop.f32.mrf.mxu2 }
 0x121   : > { %v1659_v31 = vadd.f32 %v1658_v56, %v1570_v7  ;;  %v1747_v5 = vpop.f32.mrf.mxu3  ;;  %v1571_v37 = vpop.f32.mrf.mxu1  ;;  %v4852_v56 = vpack.c.bf16 %v603_v16, %v599_v8  ;;  %v4029_v8 = vld [vmem:[%s4533_s27 + $0x3e8] sm:$0xf]  ;;  %v3902_v16 = vor.u32 %v4136_v58, %v3901_v9  ;;  %v608_v9 = vld [vmem:[#allocation3 + $0x3d0] sm:$0xff] }
 0x122   : > { %v1482_v61 = vpop.f32.mrf.mxu0  ;;  %v3645_v58 = vld [vmem:[%s4533_s27 + $0xe8] sm:$0xf] }
 0x123   : > { %v1748_v41 = vadd.f32 %v1747_v5, %v1659_v31  ;;  %v1572_v10 = vadd.f32 %v1571_v37, %v1482_v61  ;;  %5419 = vst [vmem:[#allocation29_spill] sm:$0xff] %v4852_v56  ;;  %v4854_v31 = vpack.c.bf16 %v604_v38, %v600_v60  ;;  %v4168_v60 = vld [vmem:[%s4533_s27 + $0x3f4] sm:$0xf0]  ;;  %2336 = vmatpush.bf16.msra.mxu2 %v3902_v16 }
 0x125   : > { %3297 = vst [vmem:[%s4757_s17 + $0x140] sm:$0xff] %v1748_v41  ;;  %v4856_v41 = vpack.c.bf16 %v605_v17, %v601_v62 }
 0x126   : > { %5420 = vst [vmem:[#allocation30_spill] sm:$0xff] %v4854_v31 }
 0x127   : > { %5421 = vst [vmem:[#allocation31_spill] sm:$0xff] %v4856_v41 }
 0x128   : > { %v1660_v28 = vpop.f32.mrf.mxu2 }
 0x129   : > { %v1661_v39 = vadd.f32 %v1660_v28, %v1572_v10  ;;  %v1749_v30 = vpop.f32.mrf.mxu3  ;;  %v1574_v5 = vpop.f32.mrf.mxu1  ;;  %v4030_v10 = vor.u32 %v4168_v60, %v4029_v8  ;;  %v3773_v8 = vld [vmem:[%s4533_s27 + $0x1e8] sm:$0xf] }
 0x12a   : > { %v1485_v7 = vpop.f32.mrf.mxu0 }
 0x12b   : > { %v1750_v61 = vadd.f32 %v1749_v30, %v1661_v39  ;;  %v1575_v37 = vadd.f32 %v1574_v5, %v1485_v7  ;;  %2425 = vmatpush.bf16.msra.mxu3 %v4030_v10  ;;  %v606_v7 = vld [vmem:[#allocation3 + $0x3c0] sm:$0xff] }
 0x12c   : > { %1613 = vmatmul.bf16.gmra.mxu1 %v4852_v56  ;;  %v610_v5 = vld [vmem:[#allocation3 + $0x3e0] sm:$0xff]  ;;  %v612_v56 = vld [vmem:[#allocation3 + $0x3f0] sm:$0xff] }
 0x12d   : > { %1524 = vmatmul.bf16.gmra.mxu0 %v4850_v18  ;;  %3301 = vst [vmem:[%s4757_s17 + $0x160] sm:$0xff] %v1750_v61  ;;  %1702 = vmatmul.bf16.gmra.mxu2 %v4854_v31  ;;  %v607_v61 = vld [vmem:[#allocation3 + $0x3c8] sm:$0xff]  ;;  %v4072_v31 = vld [vmem:[%s4533_s27 + $0xf4] sm:$0xf0]  ;;  %v4872_v10 = vpack.c.bf16 %v610_v5, %v606_v7  ;;  %v4876_v19 = vpack.c.bf16 %v612_v56, %v608_v9 }
 0x12e   : > { %1791 = vmatmul.bf16.gmra.mxu3 %v4856_v41  ;;  %v611_v41 = vld [vmem:[#allocation3 + $0x3e8] sm:$0xff]  ;;  %v3646_v18 = vor.u32 %v4072_v31, %v3645_v58 }
 0x130   : > { %v1663_v38 = vpop.f32.mrf.mxu2  ;;  %2158 = vmatpush.bf16.msra.mxu0 %v3646_v18 }
 0x131   : > { %v1664_v62 = vadd.f32 %v1663_v38, %v1575_v37  ;;  %v1752_v17 = vpop.f32.mrf.mxu3  ;;  %v1576_v39 = vpop.f32.mrf.mxu1  ;;  %v4104_v37 = vld [vmem:[%s4533_s27 + $0x1f4] sm:$0xf0] }
 0x132   : > { %v1487_v28 = vpop.f32.mrf.mxu0  ;;  %v609_v38 = vld [vmem:[#allocation3 + $0x3d8] sm:$0xff]  ;;  %v3774_v16 = vor.u32 %v4104_v37, %v3773_v8 }
 0x133   : > { %v1753_v30 = vadd.f32 %v1752_v17, %v1664_v62  ;;  %v1577_v60 = vadd.f32 %v1576_v39, %v1487_v28  ;;  %v4878_v58 = vpack.c.bf16 %v613_v11, %v609_v38 }
 0x134   : > { %2247 = vmatpush.bf16.msra.mxu1 %v3774_v16  ;;  %v3885_v16 = vld [vmem:[%s4533_s27 + $0x2c8] sm:$0xf] }
 0x135   : > { %3305 = vst [vmem:[%s4757_s17 + $0x180] sm:$0xff] %v1753_v30  ;;  %v4874_v30 = vpack.c.bf16 %v611_v41, %v607_v61 }
 0x138   : > { %v1665_v29 = vpop.f32.mrf.mxu2 }
 0x139   : > { %v1666_v62 = vadd.f32 %v1665_v29, %v1577_v60  ;;  %v1754_v17 = vpop.f32.mrf.mxu3  ;;  %v1579_v31 = vpop.f32.mrf.mxu1 }
 0x13a   : > { %v1490_v36 = vpop.f32.mrf.mxu0 }
 0x13b   : > { %v1755_v28 = vadd.f32 %v1754_v17, %v1666_v62  ;;  %v1580_v39 = vadd.f32 %v1579_v31, %v1490_v36  ;;  %v4132_v62 = vld [vmem:[%s4533_s27 + $0x2d4] sm:$0xf0]  ;;  %v4013_v17 = vld [vmem:[%s4533_s27 + $0x3c8] sm:$0xf] }
 0x13c   : > { %1618 = vmatmul.bf16.gmra.mxu1 %v4874_v30  ;;  %v3886_v31 = vor.u32 %v4132_v62, %v3885_v16 }
 0x13d   : > { %1529 = vmatmul.bf16.gmra.mxu0 %v4872_v10  ;;  %3309 = vst [vmem:[%s4757_s17 + $0x1a0] sm:$0xff] %v1755_v28  ;;  %1707 = vmatmul.bf16.gmra.mxu2 %v4876_v19  ;;  %v4164_v28 = vld [vmem:[%s4533_s27 + $0x3d4] sm:$0xf0] }
 0x13e   : > { %1796 = vmatmul.bf16.gmra.mxu3 %v4878_v58  ;;  %2337 = vmatpush.bf16.msra.mxu2 %v3886_v31 }
 0x140   : > { %v1668_v29 = vpop.f32.mrf.mxu2 }
 0x141   : > { %v1669_v18 = vadd.f32 %v1668_v29, %v1580_v39  ;;  %v1757_v56 = vpop.f32.mrf.mxu3  ;;  %v1581_v7 = vpop.f32.mrf.mxu1  ;;  %v4014_v29 = vor.u32 %v4164_v28, %v4013_v17 }
 0x142   : > { %v1492_v41 = vpop.f32.mrf.mxu0 }
 0x143   : > { %v1758_v11 = vadd.f32 %v1757_v56, %v1669_v18  ;;  %v1582_v5 = vadd.f32 %v1581_v7, %v1492_v41  ;;  %2426 = vmatpush.bf16.msra.mxu3 %v4014_v29 }
 0x145   : > { %3313 = vst [vmem:[%s4757_s17 + $0x1c0] sm:$0xff] %v1758_v11 }
 0x148   : > { %v1670_v61 = vpop.f32.mrf.mxu2 }
 0x149   : > { %v1671_v36 = vadd.f32 %v1670_v61, %v1582_v5  ;;  %v1759_v9 = vpop.f32.mrf.mxu3  ;;  %v1584_v37 = vpop.f32.mrf.mxu1  ;;  %v3629_v5 = vld [vmem:[%s4533_s27 + $0xc8] sm:$0xf]  ;;  %v4068_v61 = vld [vmem:[%s4533_s27 + $0xd4] sm:$0xf0] }
 0x14a   : > { %v1495_v8 = vpop.f32.mrf.mxu0 }
 0x14b   : > { %v1760_v60 = vadd.f32 %v1759_v9, %v1671_v36  ;;  %v1585_v38 = vadd.f32 %v1584_v37, %v1495_v8  ;;  %v3630_v36 = vor.u32 %v4068_v61, %v3629_v5  ;;  %v3757_v9 = vld [vmem:[%s4533_s27 + $0x1c8] sm:$0xf]  ;;  %v4100_v8 = vld [vmem:[%s4533_s27 + $0x1d4] sm:$0xf0] }
 0x14c   : > { %1899 = vmatmul.bf16.vlgmr.msrb.gmra.mxu1 %v4613_v51 }
 0x14d   : > { %1810 = vmatmul.bf16.vlgmr.msrb.gmra.mxu0 %v4609_v47  ;;  %3317 = vst [vmem:[%s4757_s17 + $0x1e0] sm:$0xff] %v1760_v60  ;;  %1988 = vmatmul.bf16.vlgmr.msrb.gmra.mxu2 %v4615_v52  ;;  %v3758_v60 = vor.u32 %v4100_v8, %v3757_v9 }
 0x14e   : > { %2077 = vmatmul.bf16.vlgmr.msrb.gmra.mxu3 %v4617_v53  ;;  %2159 = vmatpush.bf16.msra.mxu0 %v3630_v36 }
 0x14f   : > { %2248 = vmatpush.bf16.msra.mxu1 %v3758_v60 }
 0x150   : > { %v1673_v39 = vpop.f32.mrf.mxu2 }
 0x151   : > { %v1674_v18 = vadd.f32 %v1673_v39, %v1585_v38  ;;  %v1762_v56 = vpop.f32.mrf.mxu3  ;;  %v1586_v7 = vpop.f32.mrf.mxu1 }
 0x152   : > { %v1497_v41 = vpop.f32.mrf.mxu0 }
 0x153   : > { %v1763_v11 = vadd.f32 %v1762_v56, %v1674_v18  ;;  %v1587_v37 = vadd.f32 %v1586_v7, %v1497_v41 }
 0x155   : > { %3321 = vst [vmem:[%s4757_s17 + $0x200] sm:$0xff] %v1763_v11 }
 0x158   : > { %v1675_v16 = vpop.f32.mrf.mxu2 }
 0x159   : > { %v1676_v62 = vadd.f32 %v1675_v16, %v1587_v37  ;;  %v1764_v17 = vpop.f32.mrf.mxu3  ;;  %v1589_v31 = vpop.f32.mrf.mxu1 }
 0x15a   : > { %v1500_v38 = vpop.f32.mrf.mxu0 }
 0x15b   : > { %v1765_v28 = vadd.f32 %v1764_v17, %v1676_v62  ;;  %v1590_v39 = vadd.f32 %v1589_v31, %v1500_v38  ;;  %v3869_v62 = vld [vmem:[%s4533_s27 + $0x2a8] sm:$0xf]  ;;  %v4128_v17 = vld [vmem:[%s4533_s27 + $0x2b4] sm:$0xf0] }
 0x15c   : > { %1904 = vmatmul.bf16.gmra.mxu1 %v4633_v13  ;;  %v3997_v38 = vld [vmem:[%s4533_s27 + $0x3a8] sm:$0xf]  ;;  %v3870_v31 = vor.u32 %v4128_v17, %v3869_v62 }
 0x15d   : > { %1815 = vmatmul.bf16.gmra.mxu0 %v4631_v12  ;;  %3325 = vst [vmem:[%s4757_s17 + $0x220] sm:$0xff] %v1765_v28  ;;  %1993 = vmatmul.bf16.gmra.mxu2 %v4635_v14  ;;  %v4160_v28 = vld [vmem:[%s4533_s27 + $0x3b4] sm:$0xf0] }
 0x15e   : > { %2082 = vmatmul.bf16.gmra.mxu3 %v4637_v15  ;;  %2338 = vmatpush.bf16.msra.mxu2 %v3870_v31 }
 0x160   : > { %v1678_v29 = vpop.f32.mrf.mxu2 }
 0x161   : > { %v1679_v18 = vadd.f32 %v1678_v29, %v1590_v39  ;;  %v1767_v56 = vpop.f32.mrf.mxu3  ;;  %v1591_v7 = vpop.f32.mrf.mxu1  ;;  %v3998_v29 = vor.u32 %v4160_v28, %v3997_v38 }
 0x162   : > { %v1502_v41 = vpop.f32.mrf.mxu0 }
 0x163   : > { %v1768_v11 = vadd.f32 %v1767_v56, %v1679_v18  ;;  %v1592_v5 = vadd.f32 %v1591_v7, %v1502_v41  ;;  %2427 = vmatpush.bf16.msra.mxu3 %v3998_v29 }
 0x165   : > { %3329 = vst [vmem:[%s4757_s17 + $0x240] sm:$0xff] %v1768_v11 }
 0x168   : > { %v1680_v61 = vpop.f32.mrf.mxu2 }
 0x169   : > { %v1681_v36 = vadd.f32 %v1680_v61, %v1592_v5  ;;  %v1769_v9 = vpop.f32.mrf.mxu3  ;;  %v1594_v37 = vpop.f32.mrf.mxu1  ;;  %v3613_v5 = vld [vmem:[%s4533_s27 + $0xa8] sm:$0xf]  ;;  %v4064_v61 = vld [vmem:[%s4533_s27 + $0xb4] sm:$0xf0] }
 0x16a   : > { %v1505_v8 = vpop.f32.mrf.mxu0 }
 0x16b   : > { %v1770_v60 = vadd.f32 %v1769_v9, %v1681_v36  ;;  %v1595_v16 = vadd.f32 %v1594_v37, %v1505_v8  ;;  %v3614_v36 = vor.u32 %v4064_v61, %v3613_v5  ;;  %v3741_v9 = vld [vmem:[%s4533_s27 + $0x1a8] sm:$0xf]  ;;  %v4096_v8 = vld [vmem:[%s4533_s27 + $0x1b4] sm:$0xf0] }
 0x16c   : > { %1909 = vmatmul.bf16.gmra.mxu1 %v4645_v25 }
 0x16d   : > { %1820 = vmatmul.bf16.gmra.mxu0 %v4643_v24  ;;  %3333 = vst [vmem:[%s4757_s17 + $0x260] sm:$0xff] %v1770_v60  ;;  %1998 = vmatmul.bf16.gmra.mxu2 %v4647_v26  ;;  %v3742_v60 = vor.u32 %v4096_v8, %v3741_v9 }
 0x16e   : > { %2087 = vmatmul.bf16.gmra.mxu3 %v4649_v27  ;;  %2160 = vmatpush.bf16.msra.mxu0 %v3614_v36 }
 0x16f   : > { %2249 = vmatpush.bf16.msra.mxu1 %v3742_v60 }
 0x170   : > { %v1683_v39 = vpop.f32.mrf.mxu2 }
 0x171   : > { %v1684_v18 = vadd.f32 %v1683_v39, %v1595_v16  ;;  %v1772_v56 = vpop.f32.mrf.mxu3  ;;  %v1596_v7 = vpop.f32.mrf.mxu1 }
 0x172   : > { %v1507_v41 = vpop.f32.mrf.mxu0 }
 0x173   : > { %v1773_v11 = vadd.f32 %v1772_v56, %v1684_v18  ;;  %v1597_v37 = vadd.f32 %v1596_v7, %v1507_v41 }
 0x175   : > { %3337 = vst [vmem:[%s4757_s17 + $0x280] sm:$0xff] %v1773_v11 }
 0x178   : > { %v1685_v62 = vpop.f32.mrf.mxu2 }
 0x179   : > { %v1686_v17 = vadd.f32 %v1685_v62, %v1597_v37  ;;  %v1774_v38 = vpop.f32.mrf.mxu3  ;;  %v1599_v31 = vpop.f32.mrf.mxu1 }
 0x17a   : > { %v1510_v16 = vpop.f32.mrf.mxu0 }
 0x17b   : > { %v1775_v28 = vadd.f32 %v1774_v38, %v1686_v17  ;;  %v1600_v39 = vadd.f32 %v1599_v31, %v1510_v16  ;;  %v3853_v17 = vld [vmem:[%s4533_s27 + $0x288] sm:$0xf]  ;;  %v4124_v38 = vld [vmem:[%s4533_s27 + $0x294] sm:$0xf0] }
 0x17c   : > { %1914 = vmatmul.bf16.gmra.mxu1 %v4665_v50  ;;  %v3981_v16 = vld [vmem:[%s4533_s27 + $0x388] sm:$0xf]  ;;  %v3854_v31 = vor.u32 %v4124_v38, %v3853_v17 }
 0x17d   : > { %1825 = vmatmul.bf16.gmra.mxu0 %v4663_v49  ;;  %3341 = vst [vmem:[%s4757_s17 + $0x2a0] sm:$0xff] %v1775_v28  ;;  %2003 = vmatmul.bf16.gmra.mxu2 %v4667_v54  ;;  %v4156_v28 = vld [vmem:[%s4533_s27 + $0x394] sm:$0xf0] }
 0x17e   : > { %2092 = vmatmul.bf16.gmra.mxu3 %v4669_v55  ;;  %2339 = vmatpush.bf16.msra.mxu2 %v3854_v31 }
 0x180   : > { %v1688_v29 = vpop.f32.mrf.mxu2 }
 0x181   : > { %v1689_v18 = vadd.f32 %v1688_v29, %v1600_v39  ;;  %v1777_v56 = vpop.f32.mrf.mxu3  ;;  %v1601_v7 = vpop.f32.mrf.mxu1  ;;  %v3982_v29 = vor.u32 %v4156_v28, %v3981_v16 }
 0x182   : > { %v1512_v41 = vpop.f32.mrf.mxu0 }
 0x183   : > { %v1778_v11 = vadd.f32 %v1777_v56, %v1689_v18  ;;  %v1602_v5 = vadd.f32 %v1601_v7, %v1512_v41  ;;  %2428 = vmatpush.bf16.msra.mxu3 %v3982_v29 }
 0x185   : > { %3345 = vst [vmem:[%s4757_s17 + $0x2c0] sm:$0xff] %v1778_v11 }
 0x188   : > { %v1690_v61 = vpop.f32.mrf.mxu2 }
 0x189   : > { %v1691_v36 = vadd.f32 %v1690_v61, %v1602_v5  ;;  %v1779_v9 = vpop.f32.mrf.mxu3  ;;  %v1604_v37 = vpop.f32.mrf.mxu1  ;;  %v3597_v5 = vld [vmem:[%s4533_s27 + $0x88] sm:$0xf]  ;;  %v4060_v61 = vld [vmem:[%s4533_s27 + $0x94] sm:$0xf0] }
 0x18a   : > { %v1515_v8 = vpop.f32.mrf.mxu0 }
 0x18b   : > { %v1780_v60 = vadd.f32 %v1779_v9, %v1691_v36  ;;  %v1605_v62 = vadd.f32 %v1604_v37, %v1515_v8  ;;  %v3598_v36 = vor.u32 %v4060_v61, %v3597_v5  ;;  %v3725_v9 = vld [vmem:[%s4533_s27 + $0x188] sm:$0xf]  ;;  %v4092_v8 = vld [vmem:[%s4533_s27 + $0x194] sm:$0xf0] }
 0x18c   : > { %1919 = vmatmul.bf16.gmra.mxu1 %v4677_v1 }
 0x18d   : > { %1830 = vmatmul.bf16.gmra.mxu0 %v4675_v0  ;;  %3349 = vst [vmem:[%s4757_s17 + $0x2e0] sm:$0xff] %v1780_v60  ;;  %2008 = vmatmul.bf16.gmra.mxu2 %v4679_v2  ;;  %v3726_v60 = vor.u32 %v4092_v8, %v3725_v9 }
 0x18e   : > { %2097 = vmatmul.bf16.gmra.mxu3 %v4681_v3  ;;  %2161 = vmatpush.bf16.msra.mxu0 %v3598_v36 }
 0x18f   : > { %2250 = vmatpush.bf16.msra.mxu1 %v3726_v60 }
 0x190   : > { %v1693_v39 = vpop.f32.mrf.mxu2 }
 0x191   : > { %v1694_v18 = vadd.f32 %v1693_v39, %v1605_v62  ;;  %v1782_v56 = vpop.f32.mrf.mxu3  ;;  %v1606_v7 = vpop.f32.mrf.mxu1 }
 0x192   : > { %v1517_v41 = vpop.f32.mrf.mxu0 }
 0x193   : > { %v1783_v11 = vadd.f32 %v1782_v56, %v1694_v18  ;;  %v1607_v37 = vadd.f32 %v1606_v7, %v1517_v41 }
 0x195   : > { %3353 = vst [vmem:[%s4757_s17 + $0x300] sm:$0xff] %v1783_v11 }
 0x198   : > { %v1695_v17 = vpop.f32.mrf.mxu2 }
 0x199   : > { %v1696_v38 = vadd.f32 %v1695_v17, %v1607_v37  ;;  %v1784_v16 = vpop.f32.mrf.mxu3  ;;  %v1609_v31 = vpop.f32.mrf.mxu1 }
 0x19a   : > { %v1520_v62 = vpop.f32.mrf.mxu0 }
 0x19b   : > { %v1785_v28 = vadd.f32 %v1784_v16, %v1696_v38  ;;  %v1610_v39 = vadd.f32 %v1609_v31, %v1520_v62  ;;  %v3837_v38 = vld [vmem:[%s4533_s27 + $0x268] sm:$0xf]  ;;  %v4120_v16 = vld [vmem:[%s4533_s27 + $0x274] sm:$0xf0] }
 0x19c   : > { %1924 = vmatmul.bf16.gmra.mxu1 %v4697_v33  ;;  %v3965_v62 = vld [vmem:[%s4533_s27 + $0x368] sm:$0xf]  ;;  %v3838_v31 = vor.u32 %v4120_v16, %v3837_v38 }
 0x19d   : > { %1835 = vmatmul.bf16.gmra.mxu0 %v4695_v32  ;;  %3357 = vst [vmem:[%s4757_s17 + $0x320] sm:$0xff] %v1785_v28  ;;  %2013 = vmatmul.bf16.gmra.mxu2 %v4699_v34  ;;  %v4152_v28 = vld [vmem:[%s4533_s27 + $0x374] sm:$0xf0] }
 0x19e   : > { %2102 = vmatmul.bf16.gmra.mxu3 %v4701_v35  ;;  %2340 = vmatpush.bf16.msra.mxu2 %v3838_v31 }
 0x1a0   : > { %v1698_v29 = vpop.f32.mrf.mxu2 }
 0x1a1   : > { %v1699_v18 = vadd.f32 %v1698_v29, %v1610_v39  ;;  %v1787_v56 = vpop.f32.mrf.mxu3  ;;  %v1611_v7 = vpop.f32.mrf.mxu1  ;;  %v3966_v29 = vor.u32 %v4152_v28, %v3965_v62 }
 0x1a2   : > { %v1522_v41 = vpop.f32.mrf.mxu0 }
 0x1a3   : > { %v1788_v11 = vadd.f32 %v1787_v56, %v1699_v18  ;;  %v1612_v5 = vadd.f32 %v1611_v7, %v1522_v41  ;;  %2429 = vmatpush.bf16.msra.mxu3 %v3966_v29 }
 0x1a5   : > { %3361 = vst [vmem:[%s4757_s17 + $0x340] sm:$0xff] %v1788_v11 }
 0x1a8   : > { %v1700_v61 = vpop.f32.mrf.mxu2 }
 0x1a9   : > { %v1701_v36 = vadd.f32 %v1700_v61, %v1612_v5  ;;  %v1789_v9 = vpop.f32.mrf.mxu3  ;;  %v1614_v37 = vpop.f32.mrf.mxu1  ;;  %v3581_v5 = vld [vmem:[%s4533_s27 + $0x68] sm:$0xf]  ;;  %v4056_v61 = vld [vmem:[%s4533_s27 + $0x74] sm:$0xf0] }
 0x1aa   : > { %v1525_v8 = vpop.f32.mrf.mxu0 }
 0x1ab   : > { %v1790_v60 = vadd.f32 %v1789_v9, %v1701_v36  ;;  %v1615_v17 = vadd.f32 %v1614_v37, %v1525_v8  ;;  %v3582_v36 = vor.u32 %v4056_v61, %v3581_v5  ;;  %v3709_v9 = vld [vmem:[%s4533_s27 + $0x168] sm:$0xf]  ;;  %v4088_v8 = vld [vmem:[%s4533_s27 + $0x174] sm:$0xf0] }
 0x1ac   : > { %1929 = vmatmul.bf16.gmra.mxu1 %v4709_v45 }
 0x1ad   : > { %1840 = vmatmul.bf16.gmra.mxu0 %v4707_v44  ;;  %3365 = vst [vmem:[%s4757_s17 + $0x360] sm:$0xff] %v1790_v60  ;;  %2018 = vmatmul.bf16.gmra.mxu2 %v4711_v46  ;;  %v3710_v60 = vor.u32 %v4088_v8, %v3709_v9 }
 0x1ae   : > { %2107 = vmatmul.bf16.gmra.mxu3 %v4713_v48  ;;  %2162 = vmatpush.bf16.msra.mxu0 %v3582_v36 }
 0x1af   : > { %2251 = vmatpush.bf16.msra.mxu1 %v3710_v60 }
 0x1b0   : > { %v1703_v39 = vpop.f32.mrf.mxu2 }
 0x1b1   : > { %v1704_v18 = vadd.f32 %v1703_v39, %v1615_v17  ;;  %v1792_v56 = vpop.f32.mrf.mxu3  ;;  %v1616_v7 = vpop.f32.mrf.mxu1 }
 0x1b2   : > { %v1527_v41 = vpop.f32.mrf.mxu0 }
 0x1b3   : > { %v1793_v11 = vadd.f32 %v1792_v56, %v1704_v18  ;;  %v1617_v37 = vadd.f32 %v1616_v7, %v1527_v41 }
 0x1b5   : > { %3369 = vst [vmem:[%s4757_s17 + $0x380] sm:$0xff] %v1793_v11 }
 0x1b8   : > { %v1705_v38 = vpop.f32.mrf.mxu2 }
 0x1b9   : > { %v1706_v16 = vadd.f32 %v1705_v38, %v1617_v37  ;;  %v1794_v62 = vpop.f32.mrf.mxu3  ;;  %v1619_v31 = vpop.f32.mrf.mxu1 }
 0x1ba   : > { %v1530_v17 = vpop.f32.mrf.mxu0 }
 0x1bb   : > { %v1795_v28 = vadd.f32 %v1794_v62, %v1706_v16  ;;  %v1620_v39 = vadd.f32 %v1619_v31, %v1530_v17  ;;  %v3821_v16 = vld [vmem:[%s4533_s27 + $0x248] sm:$0xf]  ;;  %v4116_v62 = vld [vmem:[%s4533_s27 + $0x254] sm:$0xf0] }
 0x1bc   : > { %1934 = vmatmul.bf16.gmra.mxu1 %v4729_v21  ;;  %v3949_v17 = vld [vmem:[%s4533_s27 + $0x348] sm:$0xf]  ;;  %v3822_v31 = vor.u32 %v4116_v62, %v3821_v16 }
 0x1bd   : > { %1845 = vmatmul.bf16.gmra.mxu0 %v4727_v20  ;;  %3373 = vst [vmem:[%s4757_s17 + $0x3a0] sm:$0xff] %v1795_v28  ;;  %2023 = vmatmul.bf16.gmra.mxu2 %v4731_v22  ;;  %v4148_v28 = vld [vmem:[%s4533_s27 + $0x354] sm:$0xf0] }
 0x1be   : > { %2112 = vmatmul.bf16.gmra.mxu3 %v4733_v23  ;;  %2341 = vmatpush.bf16.msra.mxu2 %v3822_v31 }
 0x1c0   : > { %v1708_v29 = vpop.f32.mrf.mxu2 }
 0x1c1   : > { %v1709_v18 = vadd.f32 %v1708_v29, %v1620_v39  ;;  %v1797_v56 = vpop.f32.mrf.mxu3  ;;  %v1621_v7 = vpop.f32.mrf.mxu1  ;;  %v3950_v29 = vor.u32 %v4148_v28, %v3949_v17 }
 0x1c2   : > { %v1532_v41 = vpop.f32.mrf.mxu0 }
 0x1c3   : > { %v1798_v11 = vadd.f32 %v1797_v56, %v1709_v18  ;;  %v1622_v5 = vadd.f32 %v1621_v7, %v1532_v41  ;;  %2430 = vmatpush.bf16.msra.mxu3 %v3950_v29 }
 0x1c5   : > { %3377 = vst [vmem:[%s4757_s17 + $0x3c0] sm:$0xff] %v1798_v11 }
 0x1c8   : > { %v1710_v61 = vpop.f32.mrf.mxu2 }
 0x1c9   : > { %v1711_v36 = vadd.f32 %v1710_v61, %v1622_v5  ;;  %v1799_v9 = vpop.f32.mrf.mxu3  ;;  %v1900_v37 = vpop.f32.mrf.mxu1  ;;  %v3565_v5 = vld [vmem:[%s4533_s27 + $0x48] sm:$0xf]  ;;  %v4052_v61 = vld [vmem:[%s4533_s27 + $0x54] sm:$0xf0] }
 0x1ca   : > { %v1811_v8 = vpop.f32.mrf.mxu0 }
 0x1cb   : > { %v1800_v60 = vadd.f32 %v1799_v9, %v1711_v36  ;;  %v1901_v38 = vadd.f32 %v1900_v37, %v1811_v8  ;;  %v3566_v36 = vor.u32 %v4052_v61, %v3565_v5  ;;  %v3693_v9 = vld [vmem:[%s4533_s27 + $0x148] sm:$0xf]  ;;  %v4084_v8 = vld [vmem:[%s4533_s27 + $0x154] sm:$0xf0] }
 0x1cc   : > { %1939 = vmatmul.bf16.gmra.mxu1 %v4741_v42 }
 0x1cd   : > { %1850 = vmatmul.bf16.gmra.mxu0 %v4739_v40  ;;  %3381 = vst [vmem:[%s4757_s17 + $0x3e0] sm:$0xff] %v1800_v60  ;;  %2028 = vmatmul.bf16.gmra.mxu2 %v4743_v43  ;;  %v3694_v60 = vor.u32 %v4084_v8, %v3693_v9 }
 0x1ce   : > { %2117 = vmatmul.bf16.gmra.mxu3 %v4745_v57  ;;  %2163 = vmatpush.bf16.msra.mxu0 %v3566_v36 }
 0x1cf   : > { %2252 = vmatpush.bf16.msra.mxu1 %v3694_v60 }
 0x1d0   : > { %v1989_v39 = vpop.f32.mrf.mxu2 }
 0x1d1   : > { %v1990_v18 = vadd.f32 %v1989_v39, %v1901_v38  ;;  %v2078_v56 = vpop.f32.mrf.mxu3  ;;  %v1902_v7 = vpop.f32.mrf.mxu1 }
 0x1d2   : > { %v1813_v41 = vpop.f32.mrf.mxu0 }
 0x1d3   : > { %v2079_v11 = vadd.f32 %v2078_v56, %v1990_v18  ;;  %v1903_v37 = vadd.f32 %v1902_v7, %v1813_v41 }
 0x1d5   : > { %3258 = vst [vmem:[%s4757_s17 + $0x8] sm:$0xff] %v2079_v11 }
 0x1d8   : > { %v1991_v16 = vpop.f32.mrf.mxu2 }
 0x1d9   : > { %v1992_v62 = vadd.f32 %v1991_v16, %v1903_v37  ;;  %v2080_v17 = vpop.f32.mrf.mxu3  ;;  %v1905_v31 = vpop.f32.mrf.mxu1  ;;  %v5422_v16 = vld [vmem:[#allocation12_spill] sm:$0xff] }
 0x1da   : > { %v1816_v38 = vpop.f32.mrf.mxu0 }
 0x1db   : > { %v2081_v28 = vadd.f32 %v2080_v17, %v1992_v62  ;;  %v1906_v39 = vadd.f32 %v1905_v31, %v1816_v38  ;;  %v5423_v17 = vld [vmem:[#allocation13_spill] sm:$0xff]  ;;  %v5424_v38 = vld [vmem:[#allocation14_spill] sm:$0xff]  ;;  %v5425_v31 = vld [vmem:[#allocation15_spill] sm:$0xff] }
 0x1dc   : > { %1944 = vmatmul.bf16.gmra.mxu1 %v4766_v63 }
 0x1dd   : > { %1855 = vmatmul.bf16.gmra.mxu0 %v4764_v59  ;;  %3262 = vst [vmem:[%s4757_s17 + $0x28] sm:$0xff] %v2081_v28  ;;  %2033 = vmatmul.bf16.gmra.mxu2 %v4768_v4  ;;  %v3805_v28 = vld [vmem:[%s4533_s27 + $0x228] sm:$0xf] }
 0x1de   : > { %2122 = vmatmul.bf16.gmra.mxu3 %v4770_v6 }
 0x1e0   : > { %v1994_v29 = vpop.f32.mrf.mxu2 }
 0x1e1   : > { %v1995_v18 = vadd.f32 %v1994_v29, %v1906_v39  ;;  %v2083_v56 = vpop.f32.mrf.mxu3  ;;  %v1907_v7 = vpop.f32.mrf.mxu1  ;;  %v4112_v39 = vld [vmem:[%s4533_s27 + $0x234] sm:$0xf0]  ;;  %v3933_v29 = vld [vmem:[%s4533_s27 + $0x328] sm:$0xf] }
 0x1e2   : > { %v1818_v41 = vpop.f32.mrf.mxu0 }
 0x1e3   : > { %v2084_v11 = vadd.f32 %v2083_v56, %v1995_v18  ;;  %v1908_v5 = vadd.f32 %v1907_v7, %v1818_v41  ;;  %v3806_v18 = vor.u32 %v4112_v39, %v3805_v28  ;;  %v4144_v56 = vld [vmem:[%s4533_s27 + $0x334] sm:$0xf0] }
 0x1e4   : > { %v3934_v7 = vor.u32 %v4144_v56, %v3933_v29 }
 0x1e5   : > { %3266 = vst [vmem:[%s4757_s17 + $0x48] sm:$0xff] %v2084_v11  ;;  %2342 = vmatpush.bf16.msra.mxu2 %v3806_v18 }
 0x1e6   : > { %2431 = vmatpush.bf16.msra.mxu3 %v3934_v7 }
 0x1e8   : > { %v1996_v61 = vpop.f32.mrf.mxu2 }
 0x1e9   : > { %v1997_v36 = vadd.f32 %v1996_v61, %v1908_v5  ;;  %v2085_v9 = vpop.f32.mrf.mxu3  ;;  %v1910_v37 = vpop.f32.mrf.mxu1 }
 0x1ea   : > { %v1821_v8 = vpop.f32.mrf.mxu0 }
 0x1eb   : > { %v2086_v60 = vadd.f32 %v2085_v9, %v1997_v36  ;;  %v1911_v62 = vadd.f32 %v1910_v37, %v1821_v8  ;;  %v3549_v8 = vld [vmem:[%s4533_s27 + $0x28] sm:$0xf]  ;;  %v4048_v37 = vld [vmem:[%s4533_s27 + $0x34] sm:$0xf0] }
 0x1ec   : > { %1949 = vmatmul.bf16.gmra.mxu1 %v5423_v17 }
 0x1ed   : > { %1860 = vmatmul.bf16.gmra.mxu0 %v5422_v16  ;;  %3270 = vst [vmem:[%s4757_s17 + $0x68] sm:$0xff] %v2086_v60  ;;  %2038 = vmatmul.bf16.gmra.mxu2 %v5424_v38  ;;  %v3550_v60 = vor.u32 %v4048_v37, %v3549_v8  ;;  %v4080_v38 = vld [vmem:[%s4533_s27 + $0x134] sm:$0xf0] }
 0x1ee   : > { %2127 = vmatmul.bf16.gmra.mxu3 %v5425_v31  ;;  %v3677_v31 = vld [vmem:[%s4533_s27 + $0x128] sm:$0xf] }
 0x1ef   : > { %v3678_v28 = vor.u32 %v4080_v38, %v3677_v31  ;;  %2164 = vmatpush.bf16.msra.mxu0 %v3550_v60 }
 0x1f0   : > { %v1999_v41 = vpop.f32.mrf.mxu2 }
 0x1f1   : > { %v2000_v11 = vadd.f32 %v1999_v41, %v1911_v62  ;;  %v2088_v5 = vpop.f32.mrf.mxu3  ;;  %v1912_v36 = vpop.f32.mrf.mxu1  ;;  %2253 = vmatpush.bf16.msra.mxu1 %v3678_v28  ;;  %v5426_v41 = vld [vmem:[#allocation16_spill] sm:$0xff] }
 0x1f2   : > { %v1823_v61 = vpop.f32.mrf.mxu0 }
 0x1f3   : > { %v2089_v9 = vadd.f32 %v2088_v5, %v2000_v11  ;;  %v1913_v17 = vadd.f32 %v1912_v36, %v1823_v61  ;;  %v5427_v11 = vld [vmem:[#allocation17_spill] sm:$0xff]  ;;  %v5428_v5 = vld [vmem:[#allocation18_spill] sm:$0xff] }
 0x1f5   : > { %3274 = vst [vmem:[%s4757_s17 + $0x88] sm:$0xff] %v2089_v9  ;;  %v5429_v9 = vld [vmem:[#allocation19_spill] sm:$0xff] }
 0x1f8   : > { %v2001_v39 = vpop.f32.mrf.mxu2 }
 0x1f9   : > { %v2002_v16 = vadd.f32 %v2001_v39, %v1913_v17  ;;  %v2090_v29 = vpop.f32.mrf.mxu3  ;;  %v1915_v18 = vpop.f32.mrf.mxu1 }
 0x1fa   : > { %v1826_v62 = vpop.f32.mrf.mxu0 }
 0x1fb   : > { %v2091_v56 = vadd.f32 %v2090_v29, %v2002_v16  ;;  %v1916_v7 = vadd.f32 %v1915_v18, %v1826_v62  ;;  %v5430_v18 = vld [vmem:[#allocation20_spill] sm:$0xff] }
 0x1fc   : > { %1954 = vmatmul.bf16.gmra.mxu1 %v5427_v11 }
 0x1fd   : > { %1865 = vmatmul.bf16.gmra.mxu0 %v5426_v41  ;;  %3278 = vst [vmem:[%s4757_s17 + $0xa8] sm:$0xff] %v2091_v56  ;;  %2043 = vmatmul.bf16.gmra.mxu2 %v5428_v5  ;;  %v4076_v5 = vld [vmem:[%s4533_s27 + $0x114] sm:$0xf0] }
 0x1fe   : > { %2132 = vmatmul.bf16.gmra.mxu3 %v5429_v9  ;;  %v3661_v9 = vld [vmem:[%s4533_s27 + $0x108] sm:$0xf] }
 0x200   : > { %v2004_v38 = vpop.f32.mrf.mxu2 }
 0x201   : > { %v2005_v31 = vadd.f32 %v2004_v38, %v1916_v7  ;;  %v2093_v17 = vpop.f32.mrf.mxu3  ;;  %v1917_v36 = vpop.f32.mrf.mxu1  ;;  %v5431_v7 = vld [vmem:[#allocation21_spill] sm:$0xff]  ;;  %v5432_v38 = vld [vmem:[#allocation22_spill] sm:$0xff] }
 0x202   : > { %v1828_v61 = vpop.f32.mrf.mxu0 }
 0x203   : > { %v2094_v8 = vadd.f32 %v2093_v17, %v2005_v31  ;;  %v1918_v16 = vadd.f32 %v1917_v36, %v1828_v61  ;;  %v5433_v31 = vld [vmem:[#allocation23_spill] sm:$0xff]  ;;  %v3789_v17 = vld [vmem:[%s4533_s27 + $0x208] sm:$0xf] }
 0x204   : > { %v4108_v61 = vld [vmem:[%s4533_s27 + $0x214] sm:$0xf0]  ;;  %v3917_v36 = vld [vmem:[%s4533_s27 + $0x308] sm:$0xf] }
 0x205   : > { %3282 = vst [vmem:[%s4757_s17 + $0xc8] sm:$0xff] %v2094_v8  ;;  %v3790_v8 = vor.u32 %v4108_v61, %v3789_v17  ;;  %v3662_v17 = vor.u32 %v4076_v5, %v3661_v9 }
 0x207   : > { %2343 = vmatpush.bf16.msra.mxu2 %v3790_v8  ;;  %2254 = vmatpush.bf16.msra.mxu1 %v3662_v17 }
 0x208   : > { %v2006_v37 = vpop.f32.mrf.mxu2 }
 0x209   : > { %v2007_v60 = vadd.f32 %v2006_v37, %v1918_v16  ;;  %v2095_v28 = vpop.f32.mrf.mxu3  ;;  %v1920_v29 = vpop.f32.mrf.mxu1  ;;  %v4140_v16 = vld [vmem:[%s4533_s27 + $0x314] sm:$0xf0] }
 0x20a   : > { %v1831_v39 = vpop.f32.mrf.mxu0 }
 0x20b   : > { %v2096_v62 = vadd.f32 %v2095_v28, %v2007_v60  ;;  %v1921_v56 = vadd.f32 %v1920_v29, %v1831_v39  ;;  %v3918_v60 = vor.u32 %v4140_v16, %v3917_v36 }
 0x20c   : > { %1959 = vmatmul.bf16.gmra.mxu1 %v5431_v7  ;;  %v4044_v7 = vld [vmem:[%s4533_s27 + $0x14] sm:$0xf0] }
 0x20d   : > { %1870 = vmatmul.bf16.gmra.mxu0 %v5430_v18  ;;  %3286 = vst [vmem:[%s4757_s17 + $0xe8] sm:$0xff] %v2096_v62  ;;  %2048 = vmatmul.bf16.gmra.mxu2 %v5432_v38 }
 0x20e   : > { %2137 = vmatmul.bf16.gmra.mxu3 %v5433_v31  ;;  %v3533_v31 = vld [vmem:[%s4533_s27 + $0x8] sm:$0xf] }
 0x20f   : > { %2432 = vmatpush.bf16.msra.mxu3 %v3918_v60  ;;  %v3534_v18 = vor.u32 %v4044_v7, %v3533_v31  ;;  %v5435_v60 = vld [vmem:[#allocation25_spill] sm:$0xff]  ;;  %v5436_v7 = vld [vmem:[#allocation26_spill] sm:$0xff]  ;;  %v5437_v31 = vld [vmem:[#allocation27_spill] sm:$0xff] }
 0x210   : > { %v2009_v37 = vpop.f32.mrf.mxu2 }
 0x211   : > { %v2010_v28 = vadd.f32 %v2009_v37, %v1921_v56  ;;  %v2098_v39 = vpop.f32.mrf.mxu3  ;;  %v1922_v62 = vpop.f32.mrf.mxu1  ;;  %2165 = vmatpush.bf16.msra.mxu0 %v3534_v18  ;;  %v5434_v37 = vld [vmem:[#allocation24_spill] sm:$0xff] }
 0x212   : > { %v1833_v29 = vpop.f32.mrf.mxu0 }
 0x213   : > { %v2099_v38 = vadd.f32 %v2098_v39, %v2010_v28  ;;  %v1923_v11 = vadd.f32 %v1922_v62, %v1833_v29 }
 0x215   : > { %3290 = vst [vmem:[%s4757_s17 + $0x108] sm:$0xff] %v2099_v38 }
 0x218   : > { %v2011_v61 = vpop.f32.mrf.mxu2 }
 0x219   : > { %v2012_v41 = vadd.f32 %v2011_v61, %v1923_v11  ;;  %v2100_v36 = vpop.f32.mrf.mxu3  ;;  %v1925_v8 = vpop.f32.mrf.mxu1 }
 0x21a   : > { %v1836_v56 = vpop.f32.mrf.mxu0 }
 0x21b   : > { %v2101_v16 = vadd.f32 %v2100_v36, %v2012_v41  ;;  %v1926_v38 = vadd.f32 %v1925_v8, %v1836_v56  ;;  %v5438_v8 = vld [vmem:[#allocation28_spill] sm:$0xff] }
 0x21c   : > { %1964 = vmatmul.bf16.gmra.mxu1 %v5435_v60 }
 0x21d   : > { %1875 = vmatmul.bf16.gmra.mxu0 %v5434_v37  ;;  %3294 = vst [vmem:[%s4757_s17 + $0x128] sm:$0xff] %v2101_v16  ;;  %2053 = vmatmul.bf16.gmra.mxu2 %v5436_v7  ;;  %v3775_v7 = vld [vmem:[%s4533_s27 + $0x1f8] sm:$0xf0] }
 0x21e   : > { %2142 = vmatmul.bf16.gmra.mxu3 %v5437_v31  ;;  %v4102_v31 = vld [vmem:[%s4533_s27 + $0x1ec] sm:$0xf] }
 0x220   : > { %v2014_v5 = vpop.f32.mrf.mxu2 }
 0x221   : > { %v2015_v9 = vadd.f32 %v2014_v5, %v1926_v38  ;;  %v2103_v11 = vpop.f32.mrf.mxu3  ;;  %v1927_v28 = vpop.f32.mrf.mxu1  ;;  %v5439_v38 = vld [vmem:[#allocation29_spill] sm:$0xff]  ;;  %v5440_v5 = vld [vmem:[#allocation30_spill] sm:$0xff] }
 0x222   : > { %v1838_v18 = vpop.f32.mrf.mxu0 }
 0x223   : > { %v2104_v39 = vadd.f32 %v2103_v11, %v2015_v9  ;;  %v1928_v41 = vadd.f32 %v1927_v28, %v1838_v18  ;;  %v5441_v9 = vld [vmem:[#allocation31_spill] sm:$0xff]  ;;  %v4134_v11 = vld [vmem:[%s4533_s27 + $0x2ec] sm:$0xf] }
 0x224   : > { %v3903_v18 = vld [vmem:[%s4533_s27 + $0x2f8] sm:$0xf0]  ;;  %v4166_v28 = vld [vmem:[%s4533_s27 + $0x3ec] sm:$0xf] }
 0x225   : > { %3298 = vst [vmem:[%s4757_s17 + $0x148] sm:$0xff] %v2104_v39  ;;  %v3906_v39 = vor.u32 %v4134_v11, %v3903_v18  ;;  %v3778_v11 = vor.u32 %v4102_v31, %v3775_v7 }
 0x227   : > { %2692 = vmatpush.bf16.msrb.mxu2 %v3906_v39  ;;  %2603 = vmatpush.bf16.msrb.mxu1 %v3778_v11 }
 0x228   : > { %v2016_v29 = vpop.f32.mrf.mxu2 }
 0x229   : > { %v2017_v62 = vadd.f32 %v2016_v29, %v1928_v41  ;;  %v2105_v17 = vpop.f32.mrf.mxu3  ;;  %v1930_v36 = vpop.f32.mrf.mxu1  ;;  %v4031_v41 = vld [vmem:[%s4533_s27 + $0x3f8] sm:$0xf0] }
 0x22a   : > { %v1841_v61 = vpop.f32.mrf.mxu0 }
 0x22b   : > { %v2106_v56 = vadd.f32 %v2105_v17, %v2017_v62  ;;  %v1931_v16 = vadd.f32 %v1930_v36, %v1841_v61  ;;  %v4034_v62 = vor.u32 %v4166_v28, %v4031_v41 }
 0x22c   : > { %1969 = vmatmul.bf16.gmra.mxu1 %v5439_v38  ;;  %v3647_v38 = vld [vmem:[%s4533_s27 + $0xf8] sm:$0xf0] }
 0x22d   : > { %1880 = vmatmul.bf16.gmra.mxu0 %v5438_v8  ;;  %3302 = vst [vmem:[%s4757_s17 + $0x168] sm:$0xff] %v2106_v56  ;;  %2058 = vmatmul.bf16.gmra.mxu2 %v5440_v5 }
 0x22e   : > { %2147 = vmatmul.bf16.gmra.mxu3 %v5441_v9  ;;  %v4070_v9 = vld [vmem:[%s4533_s27 + $0xec] sm:$0xf] }
 0x22f   : > { %2781 = vmatpush.bf16.msrb.mxu3 %v4034_v62  ;;  %v3650_v8 = vor.u32 %v4070_v9, %v3647_v38 }
 0x230   : > { %v2019_v29 = vpop.f32.mrf.mxu2 }
 0x231   : > { %v2020_v17 = vadd.f32 %v2019_v29, %v1931_v16  ;;  %v2108_v61 = vpop.f32.mrf.mxu3  ;;  %v1932_v56 = vpop.f32.mrf.mxu1  ;;  %2514 = vmatpush.bf16.msrb.mxu0 %v3650_v8 }
 0x232   : > { %v1843_v36 = vpop.f32.mrf.mxu0 }
 0x233   : > { %v2109_v5 = vadd.f32 %v2108_v61, %v2020_v17  ;;  %v1933_v60 = vadd.f32 %v1932_v56, %v1843_v36 }
 0x235   : > { %3306 = vst [vmem:[%s4757_s17 + $0x188] sm:$0xff] %v2109_v5 }
 0x238   : > { %v2021_v18 = vpop.f32.mrf.mxu2 }
 0x239   : > { %v2022_v37 = vadd.f32 %v2021_v18, %v1933_v60  ;;  %v2110_v28 = vpop.f32.mrf.mxu3  ;;  %v1935_v39 = vpop.f32.mrf.mxu1  ;;  %v4130_v18 = vld [vmem:[%s4533_s27 + $0x2cc] sm:$0xf] }
 0x23a   : > { %v1846_v16 = vpop.f32.mrf.mxu0 }
 0x23b   : > { %v2111_v41 = vadd.f32 %v2110_v28, %v2022_v37  ;;  %v1936_v5 = vadd.f32 %v1935_v39, %v1846_v16  ;;  %v3887_v28 = vld [vmem:[%s4533_s27 + $0x2d8] sm:$0xf0]  ;;  %v4162_v16 = vld [vmem:[%s4533_s27 + $0x3cc] sm:$0xf] }
 0x23c   : > { %1974 = vmatmul.bf16.gmra.mxu1 %v4874_v30  ;;  %v3890_v39 = vor.u32 %v4130_v18, %v3887_v28 }
 0x23d   : > { %1885 = vmatmul.bf16.gmra.mxu0 %v4872_v10  ;;  %3310 = vst [vmem:[%s4757_s17 + $0x1a8] sm:$0xff] %v2111_v41  ;;  %2063 = vmatmul.bf16.gmra.mxu2 %v4876_v19  ;;  %v4015_v41 = vld [vmem:[%s4533_s27 + $0x3d8] sm:$0xf0] }
 0x23e   : > { %2152 = vmatmul.bf16.gmra.mxu3 %v4878_v58  ;;  %2693 = vmatpush.bf16.msrb.mxu2 %v3890_v39 }
 0x240   : > { %v2024_v7 = vpop.f32.mrf.mxu2 }
 0x241   : > { %v2025_v31 = vadd.f32 %v2024_v7, %v1936_v5  ;;  %v2113_v60 = vpop.f32.mrf.mxu3  ;;  %v1937_v38 = vpop.f32.mrf.mxu1  ;;  %v4018_v7 = vor.u32 %v4162_v16, %v4015_v41 }
 0x242   : > { %v1848_v8 = vpop.f32.mrf.mxu0 }
 0x243   : > { %v2114_v9 = vadd.f32 %v2113_v60, %v2025_v31  ;;  %v1938_v37 = vadd.f32 %v1937_v38, %v1848_v8  ;;  %2782 = vmatpush.bf16.msrb.mxu3 %v4018_v7 }
 0x245   : > { %3314 = vst [vmem:[%s4757_s17 + $0x1c8] sm:$0xff] %v2114_v9 }
 0x248   : > { %v2026_v29 = vpop.f32.mrf.mxu2 }
 0x249   : > { %v2027_v62 = vadd.f32 %v2026_v29, %v1938_v37  ;;  %v2115_v17 = vpop.f32.mrf.mxu3  ;;  %v1940_v36 = vpop.f32.mrf.mxu1  ;;  %v4066_v37 = vld [vmem:[%s4533_s27 + $0xcc] sm:$0xf]  ;;  %v3631_v29 = vld [vmem:[%s4533_s27 + $0xd8] sm:$0xf0] }
 0x24a   : > { %v1851_v61 = vpop.f32.mrf.mxu0 }
 0x24b   : > { %v2116_v56 = vadd.f32 %v2115_v17, %v2027_v62  ;;  %v1941_v11 = vadd.f32 %v1940_v36, %v1851_v61  ;;  %v3634_v62 = vor.u32 %v4066_v37, %v3631_v29  ;;  %v4098_v17 = vld [vmem:[%s4533_s27 + $0x1cc] sm:$0xf]  ;;  %v3759_v61 = vld [vmem:[%s4533_s27 + $0x1d8] sm:$0xf0] }
 0x24c   : > { %2255 = vmatmul.bf16.vlgmr.msra.gmra.mxu1 %v4613_v51 }
 0x24d   : > { %2166 = vmatmul.bf16.vlgmr.msra.gmra.mxu0 %v4609_v47  ;;  %3318 = vst [vmem:[%s4757_s17 + $0x1e8] sm:$0xff] %v2116_v56  ;;  %2344 = vmatmul.bf16.vlgmr.msra.gmra.mxu2 %v4615_v52  ;;  %v3762_v56 = vor.u32 %v4098_v17, %v3759_v61 }
 0x24e   : > { %2433 = vmatmul.bf16.vlgmr.msra.gmra.mxu3 %v4617_v53  ;;  %2515 = vmatpush.bf16.msrb.mxu0 %v3634_v62 }
 0x24f   : > { %2604 = vmatpush.bf16.msrb.mxu1 %v3762_v56 }
 0x250   : > { %v2029_v5 = vpop.f32.mrf.mxu2 }
 0x251   : > { %v2030_v31 = vadd.f32 %v2029_v5, %v1941_v11  ;;  %v2118_v60 = vpop.f32.mrf.mxu3  ;;  %v1942_v38 = vpop.f32.mrf.mxu1 }
 0x252   : > { %v1853_v8 = vpop.f32.mrf.mxu0 }
 0x253   : > { %v2119_v9 = vadd.f32 %v2118_v60, %v2030_v31  ;;  %v1943_v36 = vadd.f32 %v1942_v38, %v1853_v8 }
 0x255   : > { %3322 = vst [vmem:[%s4757_s17 + $0x208] sm:$0xff] %v2119_v9 }
 0x258   : > { %v2031_v18 = vpop.f32.mrf.mxu2 }
 0x259   : > { %v2032_v28 = vadd.f32 %v2031_v18, %v1943_v36  ;;  %v2120_v16 = vpop.f32.mrf.mxu3  ;;  %v1945_v39 = vpop.f32.mrf.mxu1 }
 0x25a   : > { %v1856_v11 = vpop.f32.mrf.mxu0 }
 0x25b   : > { %v2121_v41 = vadd.f32 %v2120_v16, %v2032_v28  ;;  %v1946_v5 = vadd.f32 %v1945_v39, %v1856_v11  ;;  %v4126_v28 = vld [vmem:[%s4533_s27 + $0x2ac] sm:$0xf]  ;;  %v3871_v16 = vld [vmem:[%s4533_s27 + $0x2b8] sm:$0xf0] }
 0x25c   : > { %2260 = vmatmul.bf16.gmra.mxu1 %v4633_v13  ;;  %v4158_v11 = vld [vmem:[%s4533_s27 + $0x3ac] sm:$0xf]  ;;  %v3874_v39 = vor.u32 %v4126_v28, %v3871_v16 }
 0x25d   : > { %2171 = vmatmul.bf16.gmra.mxu0 %v4631_v12  ;;  %3326 = vst [vmem:[%s4757_s17 + $0x228] sm:$0xff] %v2121_v41  ;;  %2349 = vmatmul.bf16.gmra.mxu2 %v4635_v14  ;;  %v3999_v41 = vld [vmem:[%s4533_s27 + $0x3b8] sm:$0xf0] }
 0x25e   : > { %2438 = vmatmul.bf16.gmra.mxu3 %v4637_v15  ;;  %2694 = vmatpush.bf16.msrb.mxu2 %v3874_v39 }
 0x260   : > { %v2034_v7 = vpop.f32.mrf.mxu2 }
 0x261   : > { %v2035_v31 = vadd.f32 %v2034_v7, %v1946_v5  ;;  %v2123_v60 = vpop.f32.mrf.mxu3  ;;  %v1947_v38 = vpop.f32.mrf.mxu1  ;;  %v4002_v7 = vor.u32 %v4158_v11, %v3999_v41 }
 0x262   : > { %v1858_v8 = vpop.f32.mrf.mxu0 }
 0x263   : > { %v2124_v9 = vadd.f32 %v2123_v60, %v2035_v31  ;;  %v1948_v37 = vadd.f32 %v1947_v38, %v1858_v8  ;;  %2783 = vmatpush.bf16.msrb.mxu3 %v4002_v7 }
 0x265   : > { %3330 = vst [vmem:[%s4757_s17 + $0x248] sm:$0xff] %v2124_v9 }
 0x268   : > { %v2036_v29 = vpop.f32.mrf.mxu2 }
 0x269   : > { %v2037_v62 = vadd.f32 %v2036_v29, %v1948_v37  ;;  %v2125_v17 = vpop.f32.mrf.mxu3  ;;  %v1950_v36 = vpop.f32.mrf.mxu1  ;;  %v4062_v37 = vld [vmem:[%s4533_s27 + $0xac] sm:$0xf]  ;;  %v3615_v29 = vld [vmem:[%s4533_s27 + $0xb8] sm:$0xf0] }
 0x26a   : > { %v1861_v61 = vpop.f32.mrf.mxu0 }
 0x26b   : > { %v2126_v56 = vadd.f32 %v2125_v17, %v2037_v62  ;;  %v1951_v18 = vadd.f32 %v1950_v36, %v1861_v61  ;;  %v3618_v62 = vor.u32 %v4062_v37, %v3615_v29  ;;  %v4094_v17 = vld [vmem:[%s4533_s27 + $0x1ac] sm:$0xf]  ;;  %v3743_v61 = vld [vmem:[%s4533_s27 + $0x1b8] sm:$0xf0] }
 0x26c   : > { %2265 = vmatmul.bf16.gmra.mxu1 %v4645_v25 }
 0x26d   : > { %2176 = vmatmul.bf16.gmra.mxu0 %v4643_v24  ;;  %3334 = vst [vmem:[%s4757_s17 + $0x268] sm:$0xff] %v2126_v56  ;;  %2354 = vmatmul.bf16.gmra.mxu2 %v4647_v26  ;;  %v3746_v56 = vor.u32 %v4094_v17, %v3743_v61 }
 0x26e   : > { %2443 = vmatmul.bf16.gmra.mxu3 %v4649_v27  ;;  %2516 = vmatpush.bf16.msrb.mxu0 %v3618_v62 }
 0x26f   : > { %2605 = vmatpush.bf16.msrb.mxu1 %v3746_v56 }
 0x270   : > { %v2039_v5 = vpop.f32.mrf.mxu2 }
 0x271   : > { %v2040_v31 = vadd.f32 %v2039_v5, %v1951_v18  ;;  %v2128_v60 = vpop.f32.mrf.mxu3  ;;  %v1952_v38 = vpop.f32.mrf.mxu1 }
 0x272   : > { %v1863_v8 = vpop.f32.mrf.mxu0 }
 0x273   : > { %v2129_v9 = vadd.f32 %v2128_v60, %v2040_v31  ;;  %v1953_v36 = vadd.f32 %v1952_v38, %v1863_v8 }
 0x275   : > { %3338 = vst [vmem:[%s4757_s17 + $0x288] sm:$0xff] %v2129_v9 }
 0x278   : > { %v2041_v28 = vpop.f32.mrf.mxu2 }
 0x279   : > { %v2042_v16 = vadd.f32 %v2041_v28, %v1953_v36  ;;  %v2130_v11 = vpop.f32.mrf.mxu3  ;;  %v1955_v39 = vpop.f32.mrf.mxu1 }
 0x27a   : > { %v1866_v18 = vpop.f32.mrf.mxu0 }
 0x27b   : > { %v2131_v41 = vadd.f32 %v2130_v11, %v2042_v16  ;;  %v1956_v5 = vadd.f32 %v1955_v39, %v1866_v18  ;;  %v4122_v16 = vld [vmem:[%s4533_s27 + $0x28c] sm:$0xf]  ;;  %v3855_v11 = vld [vmem:[%s4533_s27 + $0x298] sm:$0xf0] }
 0x27c   : > { %2270 = vmatmul.bf16.gmra.mxu1 %v4665_v50  ;;  %v4154_v18 = vld [vmem:[%s4533_s27 + $0x38c] sm:$0xf]  ;;  %v3858_v39 = vor.u32 %v4122_v16, %v3855_v11 }
 0x27d   : > { %2181 = vmatmul.bf16.gmra.mxu0 %v4663_v49  ;;  %3342 = vst [vmem:[%s4757_s17 + $0x2a8] sm:$0xff] %v2131_v41  ;;  %2359 = vmatmul.bf16.gmra.mxu2 %v4667_v54  ;;  %v3983_v41 = vld [vmem:[%s4533_s27 + $0x398] sm:$0xf0] }
 0x27e   : > { %2448 = vmatmul.bf16.gmra.mxu3 %v4669_v55  ;;  %2695 = vmatpush.bf16.msrb.mxu2 %v3858_v39 }
 0x280   : > { %v2044_v7 = vpop.f32.mrf.mxu2 }
 0x281   : > { %v2045_v31 = vadd.f32 %v2044_v7, %v1956_v5  ;;  %v2133_v60 = vpop.f32.mrf.mxu3  ;;  %v1957_v38 = vpop.f32.mrf.mxu1  ;;  %v3986_v7 = vor.u32 %v4154_v18, %v3983_v41 }
 0x282   : > { %v1868_v8 = vpop.f32.mrf.mxu0 }
 0x283   : > { %v2134_v9 = vadd.f32 %v2133_v60, %v2045_v31  ;;  %v1958_v37 = vadd.f32 %v1957_v38, %v1868_v8  ;;  %2784 = vmatpush.bf16.msrb.mxu3 %v3986_v7 }
 0x285   : > { %3346 = vst [vmem:[%s4757_s17 + $0x2c8] sm:$0xff] %v2134_v9 }
 0x288   : > { %v2046_v29 = vpop.f32.mrf.mxu2 }
 0x289   : > { %v2047_v62 = vadd.f32 %v2046_v29, %v1958_v37  ;;  %v2135_v17 = vpop.f32.mrf.mxu3  ;;  %v1960_v36 = vpop.f32.mrf.mxu1  ;;  %v4058_v37 = vld [vmem:[%s4533_s27 + $0x8c] sm:$0xf]  ;;  %v3599_v29 = vld [vmem:[%s4533_s27 + $0x98] sm:$0xf0] }
 0x28a   : > { %v1871_v61 = vpop.f32.mrf.mxu0 }
 0x28b   : > { %v2136_v56 = vadd.f32 %v2135_v17, %v2047_v62  ;;  %v1961_v28 = vadd.f32 %v1960_v36, %v1871_v61  ;;  %v3602_v62 = vor.u32 %v4058_v37, %v3599_v29  ;;  %v4090_v17 = vld [vmem:[%s4533_s27 + $0x18c] sm:$0xf]  ;;  %v3727_v61 = vld [vmem:[%s4533_s27 + $0x198] sm:$0xf0] }
 0x28c   : > { %2275 = vmatmul.bf16.gmra.mxu1 %v4677_v1 }
 0x28d   : > { %2186 = vmatmul.bf16.gmra.mxu0 %v4675_v0  ;;  %3350 = vst [vmem:[%s4757_s17 + $0x2e8] sm:$0xff] %v2136_v56  ;;  %2364 = vmatmul.bf16.gmra.mxu2 %v4679_v2  ;;  %v3730_v56 = vor.u32 %v4090_v17, %v3727_v61 }
 0x28e   : > { %2453 = vmatmul.bf16.gmra.mxu3 %v4681_v3  ;;  %2517 = vmatpush.bf16.msrb.mxu0 %v3602_v62 }
 0x28f   : > { %2606 = vmatpush.bf16.msrb.mxu1 %v3730_v56 }
 0x290   : > { %v2049_v5 = vpop.f32.mrf.mxu2 }
 0x291   : > { %v2050_v31 = vadd.f32 %v2049_v5, %v1961_v28  ;;  %v2138_v60 = vpop.f32.mrf.mxu3  ;;  %v1962_v38 = vpop.f32.mrf.mxu1 }
 0x292   : > { %v1873_v8 = vpop.f32.mrf.mxu0 }
 0x293   : > { %v2139_v9 = vadd.f32 %v2138_v60, %v2050_v31  ;;  %v1963_v36 = vadd.f32 %v1962_v38, %v1873_v8 }
 0x295   : > { %3354 = vst [vmem:[%s4757_s17 + $0x308] sm:$0xff] %v2139_v9 }
 0x298   : > { %v2051_v16 = vpop.f32.mrf.mxu2 }
 0x299   : > { %v2052_v11 = vadd.f32 %v2051_v16, %v1963_v36  ;;  %v2140_v18 = vpop.f32.mrf.mxu3  ;;  %v1965_v39 = vpop.f32.mrf.mxu1 }
 0x29a   : > { %v1876_v28 = vpop.f32.mrf.mxu0 }
 0x29b   : > { %v2141_v41 = vadd.f32 %v2140_v18, %v2052_v11  ;;  %v1966_v5 = vadd.f32 %v1965_v39, %v1876_v28  ;;  %v4118_v11 = vld [vmem:[%s4533_s27 + $0x26c] sm:$0xf]  ;;  %v3839_v18 = vld [vmem:[%s4533_s27 + $0x278] sm:$0xf0] }
 0x29c   : > { %2280 = vmatmul.bf16.gmra.mxu1 %v4697_v33  ;;  %v4150_v28 = vld [vmem:[%s4533_s27 + $0x36c] sm:$0xf]  ;;  %v3842_v39 = vor.u32 %v4118_v11, %v3839_v18 }
 0x29d   : > { %2191 = vmatmul.bf16.gmra.mxu0 %v4695_v32  ;;  %3358 = vst [vmem:[%s4757_s17 + $0x328] sm:$0xff] %v2141_v41  ;;  %2369 = vmatmul.bf16.gmra.mxu2 %v4699_v34  ;;  %v3967_v41 = vld [vmem:[%s4533_s27 + $0x378] sm:$0xf0] }
 0x29e   : > { %2458 = vmatmul.bf16.gmra.mxu3 %v4701_v35  ;;  %2696 = vmatpush.bf16.msrb.mxu2 %v3842_v39 }
 0x2a0   : > { %v2054_v7 = vpop.f32.mrf.mxu2 }
 0x2a1   : > { %v2055_v31 = vadd.f32 %v2054_v7, %v1966_v5  ;;  %v2143_v60 = vpop.f32.mrf.mxu3  ;;  %v1967_v38 = vpop.f32.mrf.mxu1  ;;  %v3970_v7 = vor.u32 %v4150_v28, %v3967_v41 }
 0x2a2   : > { %v1878_v8 = vpop.f32.mrf.mxu0 }
 0x2a3   : > { %v2144_v9 = vadd.f32 %v2143_v60, %v2055_v31  ;;  %v1968_v37 = vadd.f32 %v1967_v38, %v1878_v8  ;;  %2785 = vmatpush.bf16.msrb.mxu3 %v3970_v7 }
 0x2a5   : > { %3362 = vst [vmem:[%s4757_s17 + $0x348] sm:$0xff] %v2144_v9 }
 0x2a8   : > { %v2056_v29 = vpop.f32.mrf.mxu2 }
 0x2a9   : > { %v2057_v62 = vadd.f32 %v2056_v29, %v1968_v37  ;;  %v2145_v17 = vpop.f32.mrf.mxu3  ;;  %v1970_v36 = vpop.f32.mrf.mxu1  ;;  %v4054_v37 = vld [vmem:[%s4533_s27 + $0x6c] sm:$0xf]  ;;  %v3583_v29 = vld [vmem:[%s4533_s27 + $0x78] sm:$0xf0] }
 0x2aa   : > { %v1881_v61 = vpop.f32.mrf.mxu0 }
 0x2ab   : > { %v2146_v56 = vadd.f32 %v2145_v17, %v2057_v62  ;;  %v1971_v16 = vadd.f32 %v1970_v36, %v1881_v61  ;;  %v3586_v62 = vor.u32 %v4054_v37, %v3583_v29  ;;  %v4086_v17 = vld [vmem:[%s4533_s27 + $0x16c] sm:$0xf]  ;;  %v3711_v61 = vld [vmem:[%s4533_s27 + $0x178] sm:$0xf0] }
 0x2ac   : > { %2285 = vmatmul.bf16.gmra.mxu1 %v4709_v45 }
 0x2ad   : > { %2196 = vmatmul.bf16.gmra.mxu0 %v4707_v44  ;;  %3366 = vst [vmem:[%s4757_s17 + $0x368] sm:$0xff] %v2146_v56  ;;  %2374 = vmatmul.bf16.gmra.mxu2 %v4711_v46  ;;  %v3714_v56 = vor.u32 %v4086_v17, %v3711_v61 }
 0x2ae   : > { %2463 = vmatmul.bf16.gmra.mxu3 %v4713_v48  ;;  %2518 = vmatpush.bf16.msrb.mxu0 %v3586_v62 }
 0x2af   : > { %2607 = vmatpush.bf16.msrb.mxu1 %v3714_v56 }
 0x2b0   : > { %v2059_v5 = vpop.f32.mrf.mxu2 }
 0x2b1   : > { %v2060_v31 = vadd.f32 %v2059_v5, %v1971_v16  ;;  %v2148_v60 = vpop.f32.mrf.mxu3  ;;  %v1972_v38 = vpop.f32.mrf.mxu1 }
 0x2b2   : > { %v1883_v8 = vpop.f32.mrf.mxu0 }
 0x2b3   : > { %v2149_v9 = vadd.f32 %v2148_v60, %v2060_v31  ;;  %v1973_v36 = vadd.f32 %v1972_v38, %v1883_v8 }
 0x2b5   : > { %3370 = vst [vmem:[%s4757_s17 + $0x388] sm:$0xff] %v2149_v9 }
 0x2b8   : > { %v2061_v11 = vpop.f32.mrf.mxu2 }
 0x2b9   : > { %v2062_v18 = vadd.f32 %v2061_v11, %v1973_v36  ;;  %v2150_v28 = vpop.f32.mrf.mxu3  ;;  %v1975_v39 = vpop.f32.mrf.mxu1 }
 0x2ba   : > { %v1886_v16 = vpop.f32.mrf.mxu0 }
 0x2bb   : > { %v2151_v41 = vadd.f32 %v2150_v28, %v2062_v18  ;;  %v1976_v5 = vadd.f32 %v1975_v39, %v1886_v16  ;;  %v4114_v18 = vld [vmem:[%s4533_s27 + $0x24c] sm:$0xf]  ;;  %v3823_v28 = vld [vmem:[%s4533_s27 + $0x258] sm:$0xf0] }
 0x2bc   : > { %2290 = vmatmul.bf16.gmra.mxu1 %v4729_v21  ;;  %v4146_v16 = vld [vmem:[%s4533_s27 + $0x34c] sm:$0xf]  ;;  %v3826_v39 = vor.u32 %v4114_v18, %v3823_v28 }
 0x2bd   : > { %2201 = vmatmul.bf16.gmra.mxu0 %v4727_v20  ;;  %3374 = vst [vmem:[%s4757_s17 + $0x3a8] sm:$0xff] %v2151_v41  ;;  %2379 = vmatmul.bf16.gmra.mxu2 %v4731_v22  ;;  %v3951_v41 = vld [vmem:[%s4533_s27 + $0x358] sm:$0xf0] }
 0x2be   : > { %2468 = vmatmul.bf16.gmra.mxu3 %v4733_v23  ;;  %2697 = vmatpush.bf16.msrb.mxu2 %v3826_v39 }
 0x2c0   : > { %v2064_v7 = vpop.f32.mrf.mxu2 }
 0x2c1   : > { %v2065_v31 = vadd.f32 %v2064_v7, %v1976_v5  ;;  %v2153_v60 = vpop.f32.mrf.mxu3  ;;  %v1977_v38 = vpop.f32.mrf.mxu1  ;;  %v3954_v7 = vor.u32 %v4146_v16, %v3951_v41 }
 0x2c2   : > { %v1888_v8 = vpop.f32.mrf.mxu0 }
 0x2c3   : > { %v2154_v9 = vadd.f32 %v2153_v60, %v2065_v31  ;;  %v1978_v37 = vadd.f32 %v1977_v38, %v1888_v8  ;;  %2786 = vmatpush.bf16.msrb.mxu3 %v3954_v7 }
 0x2c5   : > { %3378 = vst [vmem:[%s4757_s17 + $0x3c8] sm:$0xff] %v2154_v9 }
 0x2c8   : > { %v2066_v29 = vpop.f32.mrf.mxu2 }
 0x2c9   : > { %v2067_v62 = vadd.f32 %v2066_v29, %v1978_v37  ;;  %v2155_v17 = vpop.f32.mrf.mxu3  ;;  %v2256_v36 = vpop.f32.mrf.mxu1  ;;  %v4050_v37 = vld [vmem:[%s4533_s27 + $0x4c] sm:$0xf]  ;;  %v3567_v29 = vld [vmem:[%s4533_s27 + $0x58] sm:$0xf0] }
 0x2ca   : > { %v2167_v61 = vpop.f32.mrf.mxu0 }
 0x2cb   : > { %v2156_v56 = vadd.f32 %v2155_v17, %v2067_v62  ;;  %v2257_v11 = vadd.f32 %v2256_v36, %v2167_v61  ;;  %v3570_v62 = vor.u32 %v4050_v37, %v3567_v29  ;;  %v4082_v17 = vld [vmem:[%s4533_s27 + $0x14c] sm:$0xf]  ;;  %v3695_v61 = vld [vmem:[%s4533_s27 + $0x158] sm:$0xf0] }
 0x2cc   : > { %2295 = vmatmul.bf16.gmra.mxu1 %v4741_v42 }
 0x2cd   : > { %2206 = vmatmul.bf16.gmra.mxu0 %v4739_v40  ;;  %3382 = vst [vmem:[%s4757_s17 + $0x3e8] sm:$0xff] %v2156_v56  ;;  %2384 = vmatmul.bf16.gmra.mxu2 %v4743_v43  ;;  %v3698_v56 = vor.u32 %v4082_v17, %v3695_v61 }
 0x2ce   : > { %2473 = vmatmul.bf16.gmra.mxu3 %v4745_v57  ;;  %2519 = vmatpush.bf16.msrb.mxu0 %v3570_v62 }
 0x2cf   : > { %2608 = vmatpush.bf16.msrb.mxu1 %v3698_v56 }
 0x2d0   : > { %v2345_v5 = vpop.f32.mrf.mxu2 }
 0x2d1   : > { %v2346_v31 = vadd.f32 %v2345_v5, %v2257_v11  ;;  %v2434_v60 = vpop.f32.mrf.mxu3  ;;  %v2258_v38 = vpop.f32.mrf.mxu1 }
 0x2d2   : > { %v2169_v8 = vpop.f32.mrf.mxu0 }
 0x2d3   : > { %v2435_v9 = vadd.f32 %v2434_v60, %v2346_v31  ;;  %v2259_v36 = vadd.f32 %v2258_v38, %v2169_v8 }
 0x2d5   : > { %3259 = vst [vmem:[%s4757_s17 + $0x10] sm:$0xff] %v2435_v9 }
 0x2d8   : > { %v2347_v18 = vpop.f32.mrf.mxu2 }
 0x2d9   : > { %v2348_v28 = vadd.f32 %v2347_v18, %v2259_v36  ;;  %v2436_v16 = vpop.f32.mrf.mxu3  ;;  %v2261_v39 = vpop.f32.mrf.mxu1  ;;  %v5442_v18 = vld [vmem:[#allocation12_spill] sm:$0xff] }
 0x2da   : > { %v2172_v11 = vpop.f32.mrf.mxu0 }
 0x2db   : > { %v2437_v41 = vadd.f32 %v2436_v16, %v2348_v28  ;;  %v2262_v5 = vadd.f32 %v2261_v39, %v2172_v11  ;;  %v5443_v16 = vld [vmem:[#allocation13_spill] sm:$0xff]  ;;  %v5444_v11 = vld [vmem:[#allocation14_spill] sm:$0xff]  ;;  %v5445_v39 = vld [vmem:[#allocation15_spill] sm:$0xff] }
 0x2dc   : > { %2300 = vmatmul.bf16.gmra.mxu1 %v4766_v63 }
 0x2dd   : > { %2211 = vmatmul.bf16.gmra.mxu0 %v4764_v59  ;;  %3263 = vst [vmem:[%s4757_s17 + $0x30] sm:$0xff] %v2437_v41  ;;  %2389 = vmatmul.bf16.gmra.mxu2 %v4768_v4  ;;  %v4110_v41 = vld [vmem:[%s4533_s27 + $0x22c] sm:$0xf] }
 0x2de   : > { %2478 = vmatmul.bf16.gmra.mxu3 %v4770_v6 }
 0x2e0   : > { %v2350_v7 = vpop.f32.mrf.mxu2 }
 0x2e1   : > { %v2351_v31 = vadd.f32 %v2350_v7, %v2262_v5  ;;  %v2439_v60 = vpop.f32.mrf.mxu3  ;;  %v2263_v38 = vpop.f32.mrf.mxu1  ;;  %v3807_v5 = vld [vmem:[%s4533_s27 + $0x238] sm:$0xf0]  ;;  %v4142_v7 = vld [vmem:[%s4533_s27 + $0x32c] sm:$0xf] }
 0x2e2   : > { %v2174_v8 = vpop.f32.mrf.mxu0 }
 0x2e3   : > { %v2440_v9 = vadd.f32 %v2439_v60, %v2351_v31  ;;  %v2264_v37 = vadd.f32 %v2263_v38, %v2174_v8  ;;  %v3810_v31 = vor.u32 %v4110_v41, %v3807_v5  ;;  %v3935_v60 = vld [vmem:[%s4533_s27 + $0x338] sm:$0xf0] }
 0x2e4   : > { %v3938_v38 = vor.u32 %v4142_v7, %v3935_v60 }
 0x2e5   : > { %3267 = vst [vmem:[%s4757_s17 + $0x50] sm:$0xff] %v2440_v9  ;;  %2698 = vmatpush.bf16.msrb.mxu2 %v3810_v31 }
 0x2e6   : > { %2787 = vmatpush.bf16.msrb.mxu3 %v3938_v38 }
 0x2e8   : > { %v2352_v29 = vpop.f32.mrf.mxu2 }
 0x2e9   : > { %v2353_v62 = vadd.f32 %v2352_v29, %v2264_v37  ;;  %v2441_v17 = vpop.f32.mrf.mxu3  ;;  %v2266_v36 = vpop.f32.mrf.mxu1 }
 0x2ea   : > { %v2177_v61 = vpop.f32.mrf.mxu0 }
 0x2eb   : > { %v2442_v56 = vadd.f32 %v2441_v17, %v2353_v62  ;;  %v2267_v28 = vadd.f32 %v2266_v36, %v2177_v61  ;;  %v4046_v61 = vld [vmem:[%s4533_s27 + $0x2c] sm:$0xf]  ;;  %v3551_v36 = vld [vmem:[%s4533_s27 + $0x38] sm:$0xf0] }
 0x2ec   : > { %2305 = vmatmul.bf16.gmra.mxu1 %v5443_v16 }
 0x2ed   : > { %2216 = vmatmul.bf16.gmra.mxu0 %v5442_v18  ;;  %3271 = vst [vmem:[%s4757_s17 + $0x70] sm:$0xff] %v2442_v56  ;;  %2394 = vmatmul.bf16.gmra.mxu2 %v5444_v11  ;;  %v3554_v56 = vor.u32 %v4046_v61, %v3551_v36  ;;  %v3679_v11 = vld [vmem:[%s4533_s27 + $0x138] sm:$0xf0] }
 0x2ee   : > { %2483 = vmatmul.bf16.gmra.mxu3 %v5445_v39  ;;  %v4078_v39 = vld [vmem:[%s4533_s27 + $0x12c] sm:$0xf] }
 0x2ef   : > { %v3682_v41 = vor.u32 %v4078_v39, %v3679_v11  ;;  %2520 = vmatpush.bf16.msrb.mxu0 %v3554_v56 }
 0x2f0   : > { %v2355_v8 = vpop.f32.mrf.mxu2 }
 0x2f1   : > { %v2356_v9 = vadd.f32 %v2355_v8, %v2267_v28  ;;  %v2444_v37 = vpop.f32.mrf.mxu3  ;;  %v2268_v62 = vpop.f32.mrf.mxu1  ;;  %2609 = vmatpush.bf16.msrb.mxu1 %v3682_v41  ;;  %v5446_v8 = vld [vmem:[#allocation16_spill] sm:$0xff] }
 0x2f2   : > { %v2179_v29 = vpop.f32.mrf.mxu0 }
 0x2f3   : > { %v2445_v17 = vadd.f32 %v2444_v37, %v2356_v9  ;;  %v2269_v16 = vadd.f32 %v2268_v62, %v2179_v29  ;;  %v5447_v9 = vld [vmem:[#allocation17_spill] sm:$0xff]  ;;  %v5448_v37 = vld [vmem:[#allocation18_spill] sm:$0xff] }
 0x2f5   : > { %3275 = vst [vmem:[%s4757_s17 + $0x90] sm:$0xff] %v2445_v17  ;;  %v5449_v17 = vld [vmem:[#allocation19_spill] sm:$0xff] }
 0x2f8   : > { %v2357_v5 = vpop.f32.mrf.mxu2 }
 0x2f9   : > { %v2358_v18 = vadd.f32 %v2357_v5, %v2269_v16  ;;  %v2446_v7 = vpop.f32.mrf.mxu3  ;;  %v2271_v31 = vpop.f32.mrf.mxu1 }
 0x2fa   : > { %v2182_v28 = vpop.f32.mrf.mxu0 }
 0x2fb   : > { %v2447_v60 = vadd.f32 %v2446_v7, %v2358_v18  ;;  %v2272_v38 = vadd.f32 %v2271_v31, %v2182_v28  ;;  %v5450_v31 = vld [vmem:[#allocation20_spill] sm:$0xff] }
 0x2fc   : > { %2310 = vmatmul.bf16.gmra.mxu1 %v5447_v9 }
 0x2fd   : > { %2221 = vmatmul.bf16.gmra.mxu0 %v5446_v8  ;;  %3279 = vst [vmem:[%s4757_s17 + $0xb0] sm:$0xff] %v2447_v60  ;;  %2399 = vmatmul.bf16.gmra.mxu2 %v5448_v37  ;;  %v3663_v37 = vld [vmem:[%s4533_s27 + $0x118] sm:$0xf0] }
 0x2fe   : > { %2488 = vmatmul.bf16.gmra.mxu3 %v5449_v17  ;;  %v4074_v17 = vld [vmem:[%s4533_s27 + $0x10c] sm:$0xf] }
 0x300   : > { %v2360_v11 = vpop.f32.mrf.mxu2 }
 0x301   : > { %v2361_v39 = vadd.f32 %v2360_v11, %v2272_v38  ;;  %v2449_v16 = vpop.f32.mrf.mxu3  ;;  %v2273_v62 = vpop.f32.mrf.mxu1  ;;  %v5451_v38 = vld [vmem:[#allocation21_spill] sm:$0xff]  ;;  %v5452_v11 = vld [vmem:[#allocation22_spill] sm:$0xff] }
 0x302   : > { %v2184_v29 = vpop.f32.mrf.mxu0 }
 0x303   : > { %v2450_v61 = vadd.f32 %v2449_v16, %v2361_v39  ;;  %v2274_v18 = vadd.f32 %v2273_v62, %v2184_v29  ;;  %v5453_v39 = vld [vmem:[#allocation23_spill] sm:$0xff]  ;;  %v4106_v16 = vld [vmem:[%s4533_s27 + $0x20c] sm:$0xf] }
 0x304   : > { %v3791_v29 = vld [vmem:[%s4533_s27 + $0x218] sm:$0xf0]  ;;  %v4138_v62 = vld [vmem:[%s4533_s27 + $0x30c] sm:$0xf] }
 0x305   : > { %3283 = vst [vmem:[%s4757_s17 + $0xd0] sm:$0xff] %v2450_v61  ;;  %v3794_v61 = vor.u32 %v4106_v16, %v3791_v29  ;;  %v3666_v16 = vor.u32 %v4074_v17, %v3663_v37 }
 0x307   : > { %2699 = vmatpush.bf16.msrb.mxu2 %v3794_v61  ;;  %2610 = vmatpush.bf16.msrb.mxu1 %v3666_v16 }
 0x308   : > { %v2362_v36 = vpop.f32.mrf.mxu2 }
 0x309   : > { %v2363_v56 = vadd.f32 %v2362_v36, %v2274_v18  ;;  %v2451_v41 = vpop.f32.mrf.mxu3  ;;  %v2276_v7 = vpop.f32.mrf.mxu1  ;;  %v3919_v18 = vld [vmem:[%s4533_s27 + $0x318] sm:$0xf0] }
 0x30a   : > { %v2187_v5 = vpop.f32.mrf.mxu0 }
 0x30b   : > { %v2452_v28 = vadd.f32 %v2451_v41, %v2363_v56  ;;  %v2277_v60 = vadd.f32 %v2276_v7, %v2187_v5  ;;  %v3922_v56 = vor.u32 %v4138_v62, %v3919_v18 }
 0x30c   : > { %2315 = vmatmul.bf16.gmra.mxu1 %v5451_v38  ;;  %v3535_v38 = vld [vmem:[%s4533_s27 + $0x18] sm:$0xf0] }
 0x30d   : > { %2226 = vmatmul.bf16.gmra.mxu0 %v5450_v31  ;;  %3287 = vst [vmem:[%s4757_s17 + $0xf0] sm:$0xff] %v2452_v28  ;;  %2404 = vmatmul.bf16.gmra.mxu2 %v5452_v11 }
 0x30e   : > { %2493 = vmatmul.bf16.gmra.mxu3 %v5453_v39  ;;  %v4042_v39 = vld [vmem:[%s4533_s27 + $0xc] sm:$0xf] }
 0x30f   : > { %2788 = vmatpush.bf16.msrb.mxu3 %v3922_v56  ;;  %v3538_v31 = vor.u32 %v4042_v39, %v3535_v38  ;;  %v5455_v56 = vld [vmem:[#allocation25_spill] sm:$0xff]  ;;  %v5456_v38 = vld [vmem:[#allocation26_spill] sm:$0xff]  ;;  %v5457_v39 = vld [vmem:[#allocation27_spill] sm:$0xff] }
 0x310   : > { %v2365_v36 = vpop.f32.mrf.mxu2 }
 0x311   : > { %v2366_v41 = vadd.f32 %v2365_v36, %v2277_v60  ;;  %v2454_v5 = vpop.f32.mrf.mxu3  ;;  %v2278_v28 = vpop.f32.mrf.mxu1  ;;  %2521 = vmatpush.bf16.msrb.mxu0 %v3538_v31  ;;  %v5454_v36 = vld [vmem:[#allocation24_spill] sm:$0xff] }
 0x312   : > { %v2189_v7 = vpop.f32.mrf.mxu0 }
 0x313   : > { %v2455_v11 = vadd.f32 %v2454_v5, %v2366_v41  ;;  %v2279_v9 = vadd.f32 %v2278_v28, %v2189_v7 }
 0x315   : > { %3291 = vst [vmem:[%s4757_s17 + $0x110] sm:$0xff] %v2455_v11 }
 0x318   : > { %v2367_v29 = vpop.f32.mrf.mxu2 }
 0x319   : > { %v2368_v8 = vadd.f32 %v2367_v29, %v2279_v9  ;;  %v2456_v62 = vpop.f32.mrf.mxu3  ;;  %v2281_v61 = vpop.f32.mrf.mxu1 }
 0x31a   : > { %v2192_v60 = vpop.f32.mrf.mxu0 }
 0x31b   : > { %v2457_v18 = vadd.f32 %v2456_v62, %v2368_v8  ;;  %v2282_v11 = vadd.f32 %v2281_v61, %v2192_v60  ;;  %v5458_v61 = vld [vmem:[#allocation28_spill] sm:$0xff] }
 0x31c   : > { %2320 = vmatmul.bf16.gmra.mxu1 %v5455_v56 }
 0x31d   : > { %2231 = vmatmul.bf16.gmra.mxu0 %v5454_v36  ;;  %3295 = vst [vmem:[%s4757_s17 + $0x130] sm:$0xff] %v2457_v18  ;;  %2409 = vmatmul.bf16.gmra.mxu2 %v5456_v38 }
 0x31e   : > { %2498 = vmatmul.bf16.gmra.mxu3 %v5457_v39  ;;  %v5459_v39 = vld [vmem:[#allocation29_spill] sm:$0xff] }
 0x320   : > { %v2370_v37 = vpop.f32.mrf.mxu2 }
 0x321   : > { %v2371_v17 = vadd.f32 %v2370_v37, %v2282_v11  ;;  %v2459_v9 = vpop.f32.mrf.mxu3  ;;  %v2283_v41 = vpop.f32.mrf.mxu1  ;;  %v5460_v11 = vld [vmem:[#allocation30_spill] sm:$0xff]  ;;  %v5461_v37 = vld [vmem:[#allocation31_spill] sm:$0xff] }
 0x322   : > { %v2194_v31 = vpop.f32.mrf.mxu0 }
 0x323   : > { %v2460_v5 = vadd.f32 %v2459_v9, %v2371_v17  ;;  %v2284_v7 = vadd.f32 %v2283_v41, %v2194_v31 }
 0x325   : > { %3299 = vst [vmem:[%s4757_s17 + $0x150] sm:$0xff] %v2460_v5 }
 0x328   : > { %v2372_v8 = vpop.f32.mrf.mxu2 }
 0x329   : > { %v2373_v28 = vadd.f32 %v2372_v8, %v2284_v7  ;;  %v2461_v16 = vpop.f32.mrf.mxu3  ;;  %v2286_v62 = vpop.f32.mrf.mxu1 }
 0x32a   : > { %v2197_v29 = vpop.f32.mrf.mxu0 }
 0x32b   : > { %v2462_v60 = vadd.f32 %v2461_v16, %v2373_v28  ;;  %v2287_v18 = vadd.f32 %v2286_v62, %v2197_v29 }
 0x32c   : > { %2325 = vmatmul.bf16.gmra.mxu1 %v5459_v39 }
 0x32d   : > { %2236 = vmatmul.bf16.gmra.mxu0 %v5458_v61  ;;  %3303 = vst [vmem:[%s4757_s17 + $0x170] sm:$0xff] %v2462_v60  ;;  %2414 = vmatmul.bf16.gmra.mxu2 %v5460_v11 }
 0x32e   : > { %2503 = vmatmul.bf16.gmra.mxu3 %v5461_v37 }
 0x330   : > { %v2375_v17 = vpop.f32.mrf.mxu2 }
 0x331   : > { %v2376_v9 = vadd.f32 %v2375_v17, %v2287_v18  ;;  %v2464_v31 = vpop.f32.mrf.mxu3  ;;  %v2288_v5 = vpop.f32.mrf.mxu1 }
 0x332   : > { %v2199_v41 = vpop.f32.mrf.mxu0 }
 0x333   : > { %v2465_v7 = vadd.f32 %v2464_v31, %v2376_v9  ;;  %v2289_v8 = vadd.f32 %v2288_v5, %v2199_v41 }
 0x335   : > { %3307 = vst [vmem:[%s4757_s17 + $0x190] sm:$0xff] %v2465_v7 }
 0x338   : > { %v2377_v28 = vpop.f32.mrf.mxu2 }
 0x339   : > { %v2378_v16 = vadd.f32 %v2377_v28, %v2289_v8  ;;  %v2466_v61 = vpop.f32.mrf.mxu3  ;;  %v2291_v62 = vpop.f32.mrf.mxu1 }
 0x33a   : > { %v2202_v29 = vpop.f32.mrf.mxu0 }
 0x33b   : > { %v2467_v60 = vadd.f32 %v2466_v61, %v2378_v16  ;;  %v2292_v37 = vadd.f32 %v2291_v62, %v2202_v29 }
 0x33c   : > { %2330 = vmatmul.bf16.gmra.mxu1 %v4874_v30 }
 0x33d   : > { %2241 = vmatmul.bf16.gmra.mxu0 %v4872_v10  ;;  %3311 = vst [vmem:[%s4757_s17 + $0x1b0] sm:$0xff] %v2467_v60  ;;  %2419 = vmatmul.bf16.gmra.mxu2 %v4876_v19 }
 0x33e   : > { %2508 = vmatmul.bf16.gmra.mxu3 %v4878_v58 }
 0x340   : > { %v2380_v18 = vpop.f32.mrf.mxu2 }
 0x341   : > { %v2381_v17 = vadd.f32 %v2380_v18, %v2292_v37  ;;  %v2469_v9 = vpop.f32.mrf.mxu3  ;;  %v2293_v41 = vpop.f32.mrf.mxu1 }
 0x342   : > { %v2204_v31 = vpop.f32.mrf.mxu0 }
 0x343   : > { %v2470_v5 = vadd.f32 %v2469_v9, %v2381_v17  ;;  %v2294_v7 = vadd.f32 %v2293_v41, %v2204_v31 }
 0x345   : > { %3315 = vst [vmem:[%s4757_s17 + $0x1d0] sm:$0xff] %v2470_v5 }
 0x348   : > { %v2382_v61 = vpop.f32.mrf.mxu2 }
 0x349   : > { %v2383_v8 = vadd.f32 %v2382_v61, %v2294_v7  ;;  %v2471_v28 = vpop.f32.mrf.mxu3  ;;  %v2296_v29 = vpop.f32.mrf.mxu1 }
 0x34a   : > { %v2207_v16 = vpop.f32.mrf.mxu0 }
 0x34b   : > { %v2472_v62 = vadd.f32 %v2471_v28, %v2383_v8  ;;  %v2297_v60 = vadd.f32 %v2296_v29, %v2207_v16 }
 0x34c   : > { %2611 = vmatmul.bf16.vlgmr.msrb.gmra.mxu1 %v4613_v51 }
 0x34d   : > { %2522 = vmatmul.bf16.vlgmr.msrb.gmra.mxu0 %v4609_v47  ;;  %3319 = vst [vmem:[%s4757_s17 + $0x1f0] sm:$0xff] %v2472_v62  ;;  %2700 = vmatmul.bf16.vlgmr.msrb.gmra.mxu2 %v4615_v52 }
 0x34e   : > { %2789 = vmatmul.bf16.vlgmr.msrb.gmra.mxu3 %v4617_v53 }
 0x350   : > { %v2385_v37 = vpop.f32.mrf.mxu2 }
 0x351   : > { %v2386_v18 = vadd.f32 %v2385_v37, %v2297_v60  ;;  %v2474_v17 = vpop.f32.mrf.mxu3  ;;  %v2298_v31 = vpop.f32.mrf.mxu1 }
 0x352   : > { %v2209_v9 = vpop.f32.mrf.mxu0 }
 0x353   : > { %v2475_v41 = vadd.f32 %v2474_v17, %v2386_v18  ;;  %v2299_v5 = vadd.f32 %v2298_v31, %v2209_v9 }
 0x355   : > { %3323 = vst [vmem:[%s4757_s17 + $0x210] sm:$0xff] %v2475_v41 }
 0x358   : > { %v2387_v7 = vpop.f32.mrf.mxu2 }
 0x359   : > { %v2388_v61 = vadd.f32 %v2387_v7, %v2299_v5  ;;  %v2476_v47 = vpop.f32.mrf.mxu3  ;;  %v2301_v28 = vpop.f32.mrf.mxu1 }
 0x35a   : > { %v2212_v8 = vpop.f32.mrf.mxu0 }
 0x35b   : > { %v2477_v51 = vadd.f32 %v2476_v47, %v2388_v61  ;;  %v2302_v52 = vadd.f32 %v2301_v28, %v2212_v8 }
 0x35c   : > { %2616 = vmatmul.bf16.gmra.mxu1 %v4633_v13 }
 0x35d   : > { %2527 = vmatmul.bf16.gmra.mxu0 %v4631_v12  ;;  %3327 = vst [vmem:[%s4757_s17 + $0x230] sm:$0xff] %v2477_v51  ;;  %2705 = vmatmul.bf16.gmra.mxu2 %v4635_v14 }
 0x35e   : > { %2794 = vmatmul.bf16.gmra.mxu3 %v4637_v15 }
 0x360   : > { %v2390_v53 = vpop.f32.mrf.mxu2 }
 0x361   : > { %v2391_v16 = vadd.f32 %v2390_v53, %v2302_v52  ;;  %v2479_v29 = vpop.f32.mrf.mxu3  ;;  %v2303_v60 = vpop.f32.mrf.mxu1 }
 0x362   : > { %v2214_v62 = vpop.f32.mrf.mxu0 }
 0x363   : > { %v2480_v37 = vadd.f32 %v2479_v29, %v2391_v16  ;;  %v2304_v18 = vadd.f32 %v2303_v60, %v2214_v62 }
 0x365   : > { %3331 = vst [vmem:[%s4757_s17 + $0x250] sm:$0xff] %v2480_v37 }
 0x368   : > { %v2392_v17 = vpop.f32.mrf.mxu2 }
 0x369   : > { %v2393_v9 = vadd.f32 %v2392_v17, %v2304_v18  ;;  %v2481_v12 = vpop.f32.mrf.mxu3  ;;  %v2306_v41 = vpop.f32.mrf.mxu1 }
 0x36a   : > { %v2217_v31 = vpop.f32.mrf.mxu0 }
 0x36b   : > { %v2482_v13 = vadd.f32 %v2481_v12, %v2393_v9  ;;  %v2307_v14 = vadd.f32 %v2306_v41, %v2217_v31 }
 0x36c   : > { %2621 = vmatmul.bf16.gmra.mxu1 %v4645_v25 }
 0x36d   : > { %2532 = vmatmul.bf16.gmra.mxu0 %v4643_v24  ;;  %3335 = vst [vmem:[%s4757_s17 + $0x270] sm:$0xff] %v2482_v13  ;;  %2710 = vmatmul.bf16.gmra.mxu2 %v4647_v26 }
 0x36e   : > { %2799 = vmatmul.bf16.gmra.mxu3 %v4649_v27 }
 0x370   : > { %v2395_v15 = vpop.f32.mrf.mxu2 }
 0x371   : > { %v2396_v5 = vadd.f32 %v2395_v15, %v2307_v14  ;;  %v2484_v7 = vpop.f32.mrf.mxu3  ;;  %v2308_v47 = vpop.f32.mrf.mxu1 }
 0x372   : > { %v2219_v61 = vpop.f32.mrf.mxu0 }
 0x373   : > { %v2485_v8 = vadd.f32 %v2484_v7, %v2396_v5  ;;  %v2309_v28 = vadd.f32 %v2308_v47, %v2219_v61 }
 0x375   : > { %3339 = vst [vmem:[%s4757_s17 + $0x290] sm:$0xff] %v2485_v8 }
 0x378   : > { %v2397_v51 = vpop.f32.mrf.mxu2 }
 0x379   : > { %v2398_v52 = vadd.f32 %v2397_v51, %v2309_v28  ;;  %v2486_v24 = vpop.f32.mrf.mxu3  ;;  %v2311_v16 = vpop.f32.mrf.mxu1 }
 0x37a   : > { %v2222_v53 = vpop.f32.mrf.mxu0 }
 0x37b   : > { %v2487_v25 = vadd.f32 %v2486_v24, %v2398_v52  ;;  %v2312_v26 = vadd.f32 %v2311_v16, %v2222_v53 }
 0x37c   : > { %2626 = vmatmul.bf16.gmra.mxu1 %v4665_v50 }
 0x37d   : > { %2537 = vmatmul.bf16.gmra.mxu0 %v4663_v49  ;;  %3343 = vst [vmem:[%s4757_s17 + $0x2b0] sm:$0xff] %v2487_v25  ;;  %2715 = vmatmul.bf16.gmra.mxu2 %v4667_v54 }
 0x37e   : > { %2804 = vmatmul.bf16.gmra.mxu3 %v4669_v55 }
 0x380   : > { %v2400_v27 = vpop.f32.mrf.mxu2 }
 0x381   : > { %v2401_v29 = vadd.f32 %v2400_v27, %v2312_v26  ;;  %v2489_v62 = vpop.f32.mrf.mxu3  ;;  %v2313_v37 = vpop.f32.mrf.mxu1 }
 0x382   : > { %v2224_v60 = vpop.f32.mrf.mxu0 }
 0x383   : > { %v2490_v18 = vadd.f32 %v2489_v62, %v2401_v29  ;;  %v2314_v17 = vadd.f32 %v2313_v37, %v2224_v60 }
 0x385   : > { %3347 = vst [vmem:[%s4757_s17 + $0x2d0] sm:$0xff] %v2490_v18 }
 0x388   : > { %v2402_v9 = vpop.f32.mrf.mxu2 }
 0x389   : > { %v2403_v12 = vadd.f32 %v2402_v9, %v2314_v17  ;;  %v2491_v49 = vpop.f32.mrf.mxu3  ;;  %v2316_v41 = vpop.f32.mrf.mxu1 }
 0x38a   : > { %v2227_v31 = vpop.f32.mrf.mxu0 }
 0x38b   : > { %v2492_v50 = vadd.f32 %v2491_v49, %v2403_v12  ;;  %v2317_v54 = vadd.f32 %v2316_v41, %v2227_v31 }
 0x38c   : > { %2631 = vmatmul.bf16.gmra.mxu1 %v4677_v1 }
 0x38d   : > { %2542 = vmatmul.bf16.gmra.mxu0 %v4675_v0  ;;  %3351 = vst [vmem:[%s4757_s17 + $0x2f0] sm:$0xff] %v2492_v50  ;;  %2720 = vmatmul.bf16.gmra.mxu2 %v4679_v2 }
 0x38e   : > { %2809 = vmatmul.bf16.gmra.mxu3 %v4681_v3 }
 0x390   : > { %v2405_v55 = vpop.f32.mrf.mxu2 }
 0x391   : > { %v2406_v13 = vadd.f32 %v2405_v55, %v2317_v54  ;;  %v2494_v14 = vpop.f32.mrf.mxu3  ;;  %v2318_v5 = vpop.f32.mrf.mxu1 }
 0x392   : > { %v2229_v15 = vpop.f32.mrf.mxu0 }
 0x393   : > { %v2495_v7 = vadd.f32 %v2494_v14, %v2406_v13  ;;  %v2319_v61 = vadd.f32 %v2318_v5, %v2229_v15 }
 0x395   : > { %3355 = vst [vmem:[%s4757_s17 + $0x310] sm:$0xff] %v2495_v7 }
 0x398   : > { %v2407_v47 = vpop.f32.mrf.mxu2 }
 0x399   : > { %v2408_v8 = vadd.f32 %v2407_v47, %v2319_v61  ;;  %v2496_v0 = vpop.f32.mrf.mxu3  ;;  %v2321_v51 = vpop.f32.mrf.mxu1 }
 0x39a   : > { %v2232_v28 = vpop.f32.mrf.mxu0 }
 0x39b   : > { %v2497_v1 = vadd.f32 %v2496_v0, %v2408_v8  ;;  %v2322_v2 = vadd.f32 %v2321_v51, %v2232_v28 }
 0x39c   : > { %2636 = vmatmul.bf16.gmra.mxu1 %v4697_v33 }
 0x39d   : > { %2547 = vmatmul.bf16.gmra.mxu0 %v4695_v32  ;;  %3359 = vst [vmem:[%s4757_s17 + $0x330] sm:$0xff] %v2497_v1  ;;  %2725 = vmatmul.bf16.gmra.mxu2 %v4699_v34 }
 0x39e   : > { %2814 = vmatmul.bf16.gmra.mxu3 %v4701_v35 }
 0x3a0   : > { %v2410_v3 = vpop.f32.mrf.mxu2 }
 0x3a1   : > { %v2411_v52 = vadd.f32 %v2410_v3, %v2322_v2  ;;  %v2499_v24 = vpop.f32.mrf.mxu3  ;;  %v2323_v16 = vpop.f32.mrf.mxu1 }
 0x3a2   : > { %v2234_v53 = vpop.f32.mrf.mxu0 }
 0x3a3   : > { %v2500_v25 = vadd.f32 %v2499_v24, %v2411_v52  ;;  %v2324_v26 = vadd.f32 %v2323_v16, %v2234_v53 }
 0x3a5   : > { %3363 = vst [vmem:[%s4757_s17 + $0x350] sm:$0xff] %v2500_v25 }
 0x3a8   : > { %v2412_v27 = vpop.f32.mrf.mxu2 }
 0x3a9   : > { %v2413_v29 = vadd.f32 %v2412_v27, %v2324_v26  ;;  %v2501_v32 = vpop.f32.mrf.mxu3  ;;  %v2326_v60 = vpop.f32.mrf.mxu1 }
 0x3aa   : > { %v2237_v62 = vpop.f32.mrf.mxu0 }
 0x3ab   : > { %v2502_v33 = vadd.f32 %v2501_v32, %v2413_v29  ;;  %v2327_v34 = vadd.f32 %v2326_v60, %v2237_v62 }
 0x3ac   : > { %2641 = vmatmul.bf16.gmra.mxu1 %v4709_v45 }
 0x3ad   : > { %2552 = vmatmul.bf16.gmra.mxu0 %v4707_v44  ;;  %3367 = vst [vmem:[%s4757_s17 + $0x370] sm:$0xff] %v2502_v33  ;;  %2730 = vmatmul.bf16.gmra.mxu2 %v4711_v46 }
 0x3ae   : > { %2819 = vmatmul.bf16.gmra.mxu3 %v4713_v48 }
 0x3b0   : > { %v2415_v35 = vpop.f32.mrf.mxu2 }
 0x3b1   : > { %v2416_v37 = vadd.f32 %v2415_v35, %v2327_v34  ;;  %v2504_v18 = vpop.f32.mrf.mxu3  ;;  %v2328_v9 = vpop.f32.mrf.mxu1 }
 0x3b2   : > { %v2239_v17 = vpop.f32.mrf.mxu0 }
 0x3b3   : > { %v2505_v12 = vadd.f32 %v2504_v18, %v2416_v37  ;;  %v2329_v49 = vadd.f32 %v2328_v9, %v2239_v17  ;;  %v5462_v18 = vld [vmem:[#allocation12_spill] sm:$0xff]  ;;  %v5464_v17 = vld [vmem:[#allocation14_spill] sm:$0xff]  ;;  %v5465_v9 = vld [vmem:[#allocation15_spill] sm:$0xff] }
 0x3b5   : > { %3371 = vst [vmem:[%s4757_s17 + $0x390] sm:$0xff] %v2505_v12 }
 0x3b8   : > { %v2417_v31 = vpop.f32.mrf.mxu2 }
 0x3b9   : > { %v2418_v41 = vadd.f32 %v2417_v31, %v2329_v49  ;;  %v2506_v44 = vpop.f32.mrf.mxu3  ;;  %v2331_v54 = vpop.f32.mrf.mxu1 }
 0x3ba   : > { %v2242_v50 = vpop.f32.mrf.mxu0 }
 0x3bb   : > { %v2507_v45 = vadd.f32 %v2506_v44, %v2418_v41  ;;  %v2332_v46 = vadd.f32 %v2331_v54, %v2242_v50 }
 0x3bc   : > { %2646 = vmatmul.bf16.gmra.mxu1 %v4729_v21 }
 0x3bd   : > { %2557 = vmatmul.bf16.gmra.mxu0 %v4727_v20  ;;  %3375 = vst [vmem:[%s4757_s17 + $0x3b0] sm:$0xff] %v2507_v45  ;;  %2735 = vmatmul.bf16.gmra.mxu2 %v4731_v22 }
 0x3be   : > { %2824 = vmatmul.bf16.gmra.mxu3 %v4733_v23 }
 0x3c0   : > { %v2420_v48 = vpop.f32.mrf.mxu2 }
 0x3c1   : > { %v2421_v55 = vadd.f32 %v2420_v48, %v2332_v46  ;;  %v2509_v13 = vpop.f32.mrf.mxu3  ;;  %v2333_v15 = vpop.f32.mrf.mxu1 }
 0x3c2   : > { %v2244_v14 = vpop.f32.mrf.mxu0 }
 0x3c3   : > { %v2510_v5 = vadd.f32 %v2509_v13, %v2421_v55  ;;  %v2334_v7 = vadd.f32 %v2333_v15, %v2244_v14  ;;  %v5466_v15 = vld [vmem:[#allocation16_spill] sm:$0xff] }
 0x3c5   : > { %3379 = vst [vmem:[%s4757_s17 + $0x3d0] sm:$0xff] %v2510_v5 }
 0x3c8   : > { %v2422_v61 = vpop.f32.mrf.mxu2 }
 0x3c9   : > { %v2423_v47 = vadd.f32 %v2422_v61, %v2334_v7  ;;  %v2511_v20 = vpop.f32.mrf.mxu3  ;;  %v2612_v0 = vpop.f32.mrf.mxu1  ;;  %v5467_v7 = vld [vmem:[#allocation17_spill] sm:$0xff]  ;;  %v5468_v61 = vld [vmem:[#allocation18_spill] sm:$0xff] }
 0x3ca   : > { %v2523_v8 = vpop.f32.mrf.mxu0 }
 0x3cb   : > { %v2512_v21 = vadd.f32 %v2511_v20, %v2423_v47  ;;  %v2613_v22 = vadd.f32 %v2612_v0, %v2523_v8  ;;  %v5469_v47 = vld [vmem:[#allocation19_spill] sm:$0xff] }
 0x3cc   : > { %2651 = vmatmul.bf16.gmra.mxu1 %v4741_v42 }
 0x3cd   : > { %2562 = vmatmul.bf16.gmra.mxu0 %v4739_v40  ;;  %3383 = vst [vmem:[%s4757_s17 + $0x3f0] sm:$0xff] %v2512_v21  ;;  %2740 = vmatmul.bf16.gmra.mxu2 %v4743_v43 }
 0x3ce   : > { %2829 = vmatmul.bf16.gmra.mxu3 %v4745_v57 }
 0x3d0   : > { %v2701_v23 = vpop.f32.mrf.mxu2 }
 0x3d1   : > { %v2702_v28 = vadd.f32 %v2701_v23, %v2613_v22  ;;  %v2790_v51 = vpop.f32.mrf.mxu3  ;;  %v2614_v2 = vpop.f32.mrf.mxu1 }
 0x3d2   : > { %v2525_v1 = vpop.f32.mrf.mxu0 }
 0x3d3   : > { %v2791_v3 = vadd.f32 %v2790_v51, %v2702_v28  ;;  %v2615_v52 = vadd.f32 %v2614_v2, %v2525_v1 }
 0x3d5   : > { %3260 = vst [vmem:[%s4757_s17 + $0x18] sm:$0xff] %v2791_v3 }
 0x3d8   : > { %v2703_v24 = vpop.f32.mrf.mxu2 }
 0x3d9   : > { %v2704_v53 = vadd.f32 %v2703_v24, %v2615_v52  ;;  %v2792_v40 = vpop.f32.mrf.mxu3  ;;  %v2617_v25 = vpop.f32.mrf.mxu1 }
 0x3da   : > { %v2528_v16 = vpop.f32.mrf.mxu0 }
 0x3db   : > { %v2793_v42 = vadd.f32 %v2792_v40, %v2704_v53  ;;  %v2618_v43 = vadd.f32 %v2617_v25, %v2528_v16  ;;  %v5470_v53 = vld [vmem:[#allocation20_spill] sm:$0xff]  ;;  %v5471_v16 = vld [vmem:[#allocation21_spill] sm:$0xff]  ;;  %v5472_v25 = vld [vmem:[#allocation22_spill] sm:$0xff] }
 0x3dc   : > { %2656 = vmatmul.bf16.gmra.mxu1 %v4766_v63 }
 0x3dd   : > { %2567 = vmatmul.bf16.gmra.mxu0 %v4764_v59  ;;  %3264 = vst [vmem:[%s4757_s17 + $0x38] sm:$0xff] %v2793_v42  ;;  %2745 = vmatmul.bf16.gmra.mxu2 %v4768_v4  ;;  %v5473_v42 = vld [vmem:[#allocation23_spill] sm:$0xff] }
 0x3de   : > { %2834 = vmatmul.bf16.gmra.mxu3 %v4770_v6  ;;  %v5463_v6 = vld [vmem:[#allocation13_spill] sm:$0xff] }
 0x3e0   : > { %v2706_v57 = vpop.f32.mrf.mxu2 }
 0x3e1   : > { %v2707_v26 = vadd.f32 %v2706_v57, %v2618_v43  ;;  %v2795_v27 = vpop.f32.mrf.mxu3  ;;  %v2619_v32 = vpop.f32.mrf.mxu1 }
 0x3e2   : > { %v2530_v29 = vpop.f32.mrf.mxu0 }
 0x3e3   : > { %v2796_v62 = vadd.f32 %v2795_v27, %v2707_v26  ;;  %v2620_v60 = vadd.f32 %v2619_v32, %v2530_v29 }
 0x3e5   : > { %3268 = vst [vmem:[%s4757_s17 + $0x58] sm:$0xff] %v2796_v62 }
 0x3e8   : > { %v2708_v33 = vpop.f32.mrf.mxu2 }
 0x3e9   : > { %v2709_v34 = vadd.f32 %v2708_v33, %v2620_v60  ;;  %v2797_v59 = vpop.f32.mrf.mxu3  ;;  %v2622_v37 = vpop.f32.mrf.mxu1 }
 0x3ea   : > { %v2533_v35 = vpop.f32.mrf.mxu0 }
 0x3eb   : > { %v2798_v63 = vadd.f32 %v2797_v59, %v2709_v34  ;;  %v2623_v4 = vadd.f32 %v2622_v37, %v2533_v35 }
 0x3ec   : > { %2661 = vmatmul.bf16.gmra.mxu1 %v5463_v6 }
 0x3ed   : > { %2572 = vmatmul.bf16.gmra.mxu0 %v5462_v18  ;;  %3272 = vst [vmem:[%s4757_s17 + $0x78] sm:$0xff] %v2798_v63  ;;  %2750 = vmatmul.bf16.gmra.mxu2 %v5464_v17  ;;  %v5474_v18 = vld [vmem:[#allocation27_spill] sm:$0xff] }
 0x3ee   : > { %2839 = vmatmul.bf16.gmra.mxu3 %v5465_v9 }
 0x3f0   : > { %v2711_v12 = vpop.f32.mrf.mxu2 }
 0x3f1   : > { %v2712_v49 = vadd.f32 %v2711_v12, %v2623_v4  ;;  %v2800_v31 = vpop.f32.mrf.mxu3  ;;  %v2624_v44 = vpop.f32.mrf.mxu1 }
 0x3f2   : > { %v2535_v41 = vpop.f32.mrf.mxu0 }
 0x3f3   : > { %v2801_v50 = vadd.f32 %v2800_v31, %v2712_v49  ;;  %v2625_v54 = vadd.f32 %v2624_v44, %v2535_v41 }
 0x3f5   : > { %3276 = vst [vmem:[%s4757_s17 + $0x98] sm:$0xff] %v2801_v50 }
 0x3f8   : > { %v2713_v45 = vpop.f32.mrf.mxu2 }
 0x3f9   : > { %v2714_v46 = vadd.f32 %v2713_v45, %v2625_v54  ;;  %v2802_v48 = vpop.f32.mrf.mxu3  ;;  %v2627_v13 = vpop.f32.mrf.mxu1  ;;  %v5475_v45 = vld [vmem:[#allocation28_spill] sm:$0xff] }
 0x3fa   : > { %v2538_v55 = vpop.f32.mrf.mxu0 }
 0x3fb   : > { %v2803_v14 = vadd.f32 %v2802_v48, %v2714_v46  ;;  %v2628_v5 = vadd.f32 %v2627_v13, %v2538_v55  ;;  %v5476_v46 = vld [vmem:[#allocation31_spill] sm:$0xff] }
 0x3fc   : > { %2666 = vmatmul.bf16.gmra.mxu1 %v5467_v7 }
 0x3fd   : > { %2577 = vmatmul.bf16.gmra.mxu0 %v5466_v15  ;;  %3280 = vst [vmem:[%s4757_s17 + $0xb8] sm:$0xff] %v2803_v14  ;;  %2755 = vmatmul.bf16.gmra.mxu2 %v5468_v61 }
 0x3fe   : > { %2844 = vmatmul.bf16.gmra.mxu3 %v5469_v47 }
 0x400   : > { %v2716_v20 = vpop.f32.mrf.mxu2 }
 0x401   : > { %v2717_v8 = vadd.f32 %v2716_v20, %v2628_v5  ;;  %v2805_v0 = vpop.f32.mrf.mxu3  ;;  %v2629_v22 = vpop.f32.mrf.mxu1 }
 0x402   : > { %v2540_v21 = vpop.f32.mrf.mxu0 }
 0x403   : > { %v2806_v23 = vadd.f32 %v2805_v0, %v2717_v8  ;;  %v2630_v28 = vadd.f32 %v2629_v22, %v2540_v21 }
 0x405   : > { %3284 = vst [vmem:[%s4757_s17 + $0xd8] sm:$0xff] %v2806_v23 }
 0x408   : > { %v2718_v51 = vpop.f32.mrf.mxu2 }
 0x409   : > { %v2719_v1 = vadd.f32 %v2718_v51, %v2630_v28  ;;  %v2807_v2 = vpop.f32.mrf.mxu3  ;;  %v2632_v52 = vpop.f32.mrf.mxu1 }
 0x40a   : > { %v2543_v3 = vpop.f32.mrf.mxu0 }
 0x40b   : > { %v2808_v24 = vadd.f32 %v2807_v2, %v2719_v1  ;;  %v2633_v40 = vadd.f32 %v2632_v52, %v2543_v3 }
 0x40c   : > { %2671 = vmatmul.bf16.gmra.mxu1 %v5471_v16 }
 0x40d   : > { %2582 = vmatmul.bf16.gmra.mxu0 %v5470_v53  ;;  %3288 = vst [vmem:[%s4757_s17 + $0xf8] sm:$0xff] %v2808_v24  ;;  %2760 = vmatmul.bf16.gmra.mxu2 %v5472_v25 }
 0x40e   : > { %2849 = vmatmul.bf16.gmra.mxu3 %v5473_v42 }
 0x410   : > { %v2721_v43 = vpop.f32.mrf.mxu2 }
 0x411   : > { %v2722_v57 = vadd.f32 %v2721_v43, %v2633_v40  ;;  %v2810_v26 = vpop.f32.mrf.mxu3  ;;  %v2634_v29 = vpop.f32.mrf.mxu1 }
 0x412   : > { %v2545_v27 = vpop.f32.mrf.mxu0 }
 0x413   : > { %v2811_v32 = vadd.f32 %v2810_v26, %v2722_v57  ;;  %v2635_v62 = vadd.f32 %v2634_v29, %v2545_v27 }
 0x415   : > { %3292 = vst [vmem:[%s4757_s17 + $0x118] sm:$0xff] %v2811_v32 }
 0x418   : > { %v2723_v60 = vpop.f32.mrf.mxu2 }
 0x419   : > { %v2724_v33 = vadd.f32 %v2723_v60, %v2635_v62  ;;  %v2812_v34 = vpop.f32.mrf.mxu3  ;;  %v2637_v35 = vpop.f32.mrf.mxu1 }
 0x41a   : > { %v2548_v59 = vpop.f32.mrf.mxu0 }
 0x41b   : > { %v2813_v37 = vadd.f32 %v2812_v34, %v2724_v33  ;;  %v2638_v63 = vadd.f32 %v2637_v35, %v2548_v59 }
 0x41c   : > { %2676 = vmatmul.bf16.gmra.mxu1 %v5455_v56 }
 0x41d   : > { %2587 = vmatmul.bf16.gmra.mxu0 %v5454_v36  ;;  %3296 = vst [vmem:[%s4757_s17 + $0x138] sm:$0xff] %v2813_v37  ;;  %2765 = vmatmul.bf16.gmra.mxu2 %v5456_v38 }
 0x41e   : > { %2854 = vmatmul.bf16.gmra.mxu3 %v5474_v18 }
 0x420   : > { %v2726_v4 = vpop.f32.mrf.mxu2 }
 0x421   : > { %v2727_v6 = vadd.f32 %v2726_v4, %v2638_v63  ;;  %v2815_v17 = vpop.f32.mrf.mxu3  ;;  %v2639_v12 = vpop.f32.mrf.mxu1 }
 0x422   : > { %v2550_v9 = vpop.f32.mrf.mxu0 }
 0x423   : > { %v2816_v49 = vadd.f32 %v2815_v17, %v2727_v6  ;;  %v2640_v31 = vadd.f32 %v2639_v12, %v2550_v9 }
 0x425   : > { %3300 = vst [vmem:[%s4757_s17 + $0x158] sm:$0xff] %v2816_v49 }
 0x428   : > { %v2728_v41 = vpop.f32.mrf.mxu2 }
 0x429   : > { %v2729_v44 = vadd.f32 %v2728_v41, %v2640_v31  ;;  %v2817_v36 = vpop.f32.mrf.mxu3  ;;  %v2642_v54 = vpop.f32.mrf.mxu1 }
 0x42a   : > { %v2553_v50 = vpop.f32.mrf.mxu0 }
 0x42b   : > { %v2818_v56 = vadd.f32 %v2817_v36, %v2729_v44  ;;  %v2643_v38 = vadd.f32 %v2642_v54, %v2553_v50 }
 0x42c   : > { %2681 = vmatmul.bf16.gmra.mxu1 %v5459_v39 }
 0x42d   : > { %2592 = vmatmul.bf16.gmra.mxu0 %v5475_v45  ;;  %3304 = vst [vmem:[%s4757_s17 + $0x178] sm:$0xff] %v2818_v56  ;;  %2770 = vmatmul.bf16.gmra.mxu2 %v5460_v11 }
 0x42e   : > { %2859 = vmatmul.bf16.gmra.mxu3 %v5476_v46 }
 0x430   : > { %v2731_v48 = vpop.f32.mrf.mxu2 }
 0x431   : > { %v2732_v55 = vadd.f32 %v2731_v48, %v2643_v38  ;;  %v2820_v13 = vpop.f32.mrf.mxu3  ;;  %v2644_v15 = vpop.f32.mrf.mxu1 }
 0x432   : > { %v2555_v14 = vpop.f32.mrf.mxu0 }
 0x433   : > { %v2821_v5 = vadd.f32 %v2820_v13, %v2732_v55  ;;  %v2645_v7 = vadd.f32 %v2644_v15, %v2555_v14 }
 0x435   : > { %3308 = vst [vmem:[%s4757_s17 + $0x198] sm:$0xff] %v2821_v5 }
 0x438   : > { %v2733_v61 = vpop.f32.mrf.mxu2 }
 0x439   : > { %v2734_v47 = vadd.f32 %v2733_v61, %v2645_v7  ;;  %v2822_v20 = vpop.f32.mrf.mxu3  ;;  %v2647_v0 = vpop.f32.mrf.mxu1 }
 0x43a   : > { %v2558_v8 = vpop.f32.mrf.mxu0 }
 0x43b   : > { %v2823_v39 = vadd.f32 %v2822_v20, %v2734_v47  ;;  %v2648_v11 = vadd.f32 %v2647_v0, %v2558_v8 }
 0x43c   : > { %2686 = vmatmul.bf16.gmra.mxu1 %v4874_v30 }
 0x43d   : > { %2597 = vmatmul.bf16.gmra.mxu0 %v4872_v10  ;;  %3312 = vst [vmem:[%s4757_s17 + $0x1b8] sm:$0xff] %v2823_v39  ;;  %2775 = vmatmul.bf16.gmra.mxu2 %v4876_v19 }
 0x43e   : > { %2864 = vmatmul.bf16.gmra.mxu3 %v4878_v58 }
 0x440   : > { %v2736_v21 = vpop.f32.mrf.mxu2 }
 0x441   : > { %v2737_v22 = vadd.f32 %v2736_v21, %v2648_v11  ;;  %v2825_v23 = vpop.f32.mrf.mxu3  ;;  %v2649_v51 = vpop.f32.mrf.mxu1 }
 0x442   : > { %v2560_v28 = vpop.f32.mrf.mxu0 }
 0x443   : > { %v2826_v1 = vadd.f32 %v2825_v23, %v2737_v22  ;;  %v2650_v2 = vadd.f32 %v2649_v51, %v2560_v28 }
 0x445   : > { %3316 = vst [vmem:[%s4757_s17 + $0x1d8] sm:$0xff] %v2826_v1 }
 0x448   : > { %v2738_v3 = vpop.f32.mrf.mxu2 }
 0x449   : > { %v2739_v10 = vadd.f32 %v2738_v3, %v2650_v2  ;;  %v2827_v52 = vpop.f32.mrf.mxu3  ;;  %v2652_v53 = vpop.f32.mrf.mxu1 }
 0x44a   : > { %v2563_v24 = vpop.f32.mrf.mxu0 }
 0x44b   : > { %v2828_v30 = vadd.f32 %v2827_v52, %v2739_v10  ;;  %v2653_v19 = vadd.f32 %v2652_v53, %v2563_v24 }
 0x44d   : > { %3320 = vst [vmem:[%s4757_s17 + $0x1f8] sm:$0xff] %v2828_v30 }
 0x450   : > { %v2741_v40 = vpop.f32.mrf.mxu2 }
 0x451   : > { %v2742_v58 = vadd.f32 %v2741_v40, %v2653_v19  ;;  %v2830_v16 = vpop.f32.mrf.mxu3  ;;  %v2654_v42 = vpop.f32.mrf.mxu1 }
 0x452   : > { %v2565_v25 = vpop.f32.mrf.mxu0 }
 0x453   : > { %v2831_v43 = vadd.f32 %v2830_v16, %v2742_v58  ;;  %v2655_v57 = vadd.f32 %v2654_v42, %v2565_v25 }
 0x455   : > { %3324 = vst [vmem:[%s4757_s17 + $0x218] sm:$0xff] %v2831_v43 }
 0x458   : > { %v2743_v26 = vpop.f32.mrf.mxu2 }
 0x459   : > { %v2744_v27 = vadd.f32 %v2743_v26, %v2655_v57  ;;  %v2832_v29 = vpop.f32.mrf.mxu3  ;;  %v2657_v62 = vpop.f32.mrf.mxu1 }
 0x45a   : > { %v2568_v32 = vpop.f32.mrf.mxu0 }
 0x45b   : > { %v2833_v60 = vadd.f32 %v2832_v29, %v2744_v27  ;;  %v2658_v33 = vadd.f32 %v2657_v62, %v2568_v32 }
 0x45d   : > { %3328 = vst [vmem:[%s4757_s17 + $0x238] sm:$0xff] %v2833_v60 }
 0x460   : > { %v2746_v34 = vpop.f32.mrf.mxu2 }
 0x461   : > { %v2747_v59 = vadd.f32 %v2746_v34, %v2658_v33  ;;  %v2835_v35 = vpop.f32.mrf.mxu3  ;;  %v2659_v63 = vpop.f32.mrf.mxu1 }
 0x462   : > { %v2570_v37 = vpop.f32.mrf.mxu0 }
 0x463   : > { %v2836_v18 = vadd.f32 %v2835_v35, %v2747_v59  ;;  %v2660_v4 = vadd.f32 %v2659_v63, %v2570_v37 }
 0x465   : > { %3332 = vst [vmem:[%s4757_s17 + $0x258] sm:$0xff] %v2836_v18 }
 0x468   : > { %v2748_v6 = vpop.f32.mrf.mxu2 }
 0x469   : > { %v2749_v17 = vadd.f32 %v2748_v6, %v2660_v4  ;;  %v2837_v9 = vpop.f32.mrf.mxu3  ;;  %v2662_v49 = vpop.f32.mrf.mxu1 }
 0x46a   : > { %v2573_v12 = vpop.f32.mrf.mxu0 }
 0x46b   : > { %v2838_v31 = vadd.f32 %v2837_v9, %v2749_v17  ;;  %v2663_v41 = vadd.f32 %v2662_v49, %v2573_v12 }
 0x46d   : > { %3336 = vst [vmem:[%s4757_s17 + $0x278] sm:$0xff] %v2838_v31 }
 0x470   : > { %v2751_v44 = vpop.f32.mrf.mxu2 }
 0x471   : > { %v2752_v36 = vadd.f32 %v2751_v44, %v2663_v41  ;;  %v2840_v50 = vpop.f32.mrf.mxu3  ;;  %v2664_v56 = vpop.f32.mrf.mxu1 }
 0x472   : > { %v2575_v54 = vpop.f32.mrf.mxu0 }
 0x473   : > { %v2841_v45 = vadd.f32 %v2840_v50, %v2752_v36  ;;  %v2665_v38 = vadd.f32 %v2664_v56, %v2575_v54 }
 0x475   : > { %3340 = vst [vmem:[%s4757_s17 + $0x298] sm:$0xff] %v2841_v45 }
 0x478   : > { %v2753_v46 = vpop.f32.mrf.mxu2 }
 0x479   : > { %v2754_v48 = vadd.f32 %v2753_v46, %v2665_v38  ;;  %v2842_v55 = vpop.f32.mrf.mxu3  ;;  %v2667_v14 = vpop.f32.mrf.mxu1 }
 0x47a   : > { %v2578_v13 = vpop.f32.mrf.mxu0 }
 0x47b   : > { %v2843_v15 = vadd.f32 %v2842_v55, %v2754_v48  ;;  %v2668_v5 = vadd.f32 %v2667_v14, %v2578_v13 }
 0x47d   : > { %3344 = vst [vmem:[%s4757_s17 + $0x2b8] sm:$0xff] %v2843_v15 }
 0x480   : > { %v2756_v7 = vpop.f32.mrf.mxu2 }
 0x481   : > { %v2757_v61 = vadd.f32 %v2756_v7, %v2668_v5  ;;  %v2845_v47 = vpop.f32.mrf.mxu3  ;;  %v2669_v8 = vpop.f32.mrf.mxu1 }
 0x482   : > { %v2580_v20 = vpop.f32.mrf.mxu0 }
 0x483   : > { %v2846_v0 = vadd.f32 %v2845_v47, %v2757_v61  ;;  %v2670_v39 = vadd.f32 %v2669_v8, %v2580_v20 }
 0x485   : > { %3348 = vst [vmem:[%s4757_s17 + $0x2d8] sm:$0xff] %v2846_v0 }
 0x488   : > { %v2758_v11 = vpop.f32.mrf.mxu2 }
 0x489   : > { %v2759_v21 = vadd.f32 %v2758_v11, %v2670_v39  ;;  %v2847_v22 = vpop.f32.mrf.mxu3  ;;  %v2672_v28 = vpop.f32.mrf.mxu1 }
 0x48a   : > { %v2583_v23 = vpop.f32.mrf.mxu0 }
 0x48b   : > { %v2848_v51 = vadd.f32 %v2847_v22, %v2759_v21  ;;  %v2673_v1 = vadd.f32 %v2672_v28, %v2583_v23 }
 0x48d   : > { %3352 = vst [vmem:[%s4757_s17 + $0x2f8] sm:$0xff] %v2848_v51 }
 0x490   : > { %v2761_v2 = vpop.f32.mrf.mxu2 }
 0x491   : > { %v2762_v3 = vadd.f32 %v2761_v2, %v2673_v1  ;;  %v2850_v10 = vpop.f32.mrf.mxu3  ;;  %v2674_v24 = vpop.f32.mrf.mxu1 }
 0x492   : > { %v2585_v52 = vpop.f32.mrf.mxu0 }
 0x493   : > { %v2851_v53 = vadd.f32 %v2850_v10, %v2762_v3  ;;  %v2675_v30 = vadd.f32 %v2674_v24, %v2585_v52 }
 0x495   : > { %3356 = vst [vmem:[%s4757_s17 + $0x318] sm:$0xff] %v2851_v53 }
 0x498   : > { %v2763_v19 = vpop.f32.mrf.mxu2 }
 0x499   : > { %v2764_v40 = vadd.f32 %v2763_v19, %v2675_v30  ;;  %v2852_v58 = vpop.f32.mrf.mxu3  ;;  %v2677_v25 = vpop.f32.mrf.mxu1 }
 0x49a   : > { %v2588_v16 = vpop.f32.mrf.mxu0 }
 0x49b   : > { %v2853_v42 = vadd.f32 %v2852_v58, %v2764_v40  ;;  %v2678_v43 = vadd.f32 %v2677_v25, %v2588_v16 }
 0x49d   : > { %3360 = vst [vmem:[%s4757_s17 + $0x338] sm:$0xff] %v2853_v42 }
 0x4a0   : > { %v2766_v57 = vpop.f32.mrf.mxu2 }
 0x4a1   : > { %v2767_v26 = vadd.f32 %v2766_v57, %v2678_v43  ;;  %v2855_v27 = vpop.f32.mrf.mxu3  ;;  %v2679_v32 = vpop.f32.mrf.mxu1 }
 0x4a2   : > { %v2590_v29 = vpop.f32.mrf.mxu0 }
 0x4a3   : > { %v2856_v62 = vadd.f32 %v2855_v27, %v2767_v26  ;;  %v2680_v60 = vadd.f32 %v2679_v32, %v2590_v29 }
 0x4a5   : > { %3364 = vst [vmem:[%s4757_s17 + $0x358] sm:$0xff] %v2856_v62 }
 0x4a8   : > { %v2768_v33 = vpop.f32.mrf.mxu2 }
 0x4a9   : > { %v2769_v34 = vadd.f32 %v2768_v33, %v2680_v60  ;;  %v2857_v59 = vpop.f32.mrf.mxu3  ;;  %v2682_v37 = vpop.f32.mrf.mxu1 }
 0x4aa   : > { %v2593_v35 = vpop.f32.mrf.mxu0 }
 0x4ab   : > { %v2858_v63 = vadd.f32 %v2857_v59, %v2769_v34  ;;  %v2683_v18 = vadd.f32 %v2682_v37, %v2593_v35 }
 0x4ad   : > { %3368 = vst [vmem:[%s4757_s17 + $0x378] sm:$0xff] %v2858_v63 }
 0x4b0   : > { %v2771_v4 = vpop.f32.mrf.mxu2 }
 0x4b1   : > { %v2772_v6 = vadd.f32 %v2771_v4, %v2683_v18  ;;  %v2860_v17 = vpop.f32.mrf.mxu3  ;;  %v2684_v12 = vpop.f32.mrf.mxu1 }
 0x4b2   : > { %v2595_v9 = vpop.f32.mrf.mxu0 }
 0x4b3   : > { %v2861_v49 = vadd.f32 %v2860_v17, %v2772_v6  ;;  %v2685_v31 = vadd.f32 %v2684_v12, %v2595_v9 }
 0x4b5   : > { %3372 = vst [vmem:[%s4757_s17 + $0x398] sm:$0xff] %v2861_v49 }
 0x4b8   : > { %v2773_v41 = vpop.f32.mrf.mxu2 }
 0x4b9   : > { %v2774_v44 = vadd.f32 %v2773_v41, %v2685_v31  ;;  %v2862_v36 = vpop.f32.mrf.mxu3  ;;  %v2687_v54 = vpop.f32.mrf.mxu1 }
 0x4ba   : > { %v2598_v50 = vpop.f32.mrf.mxu0 }
 0x4bb   : > { %v2863_v56 = vadd.f32 %v2862_v36, %v2774_v44  ;;  %v2688_v45 = vadd.f32 %v2687_v54, %v2598_v50 }
 0x4bd   : > { %3376 = vst [vmem:[%s4757_s17 + $0x3b8] sm:$0xff] %v2863_v56 }
 0x4c0   : > { %v2776_v38 = vpop.f32.mrf.mxu2 }
 0x4c1   : > { %v2777_v46 = vadd.f32 %v2776_v38, %v2688_v45  ;;  %v2865_v48 = vpop.f32.mrf.mxu3  ;;  %v2689_v14 = vpop.f32.mrf.mxu1 }
 0x4c2   : > { %v2600_v13 = vpop.f32.mrf.mxu0 }
 0x4c3   : > { %v2866_v55 = vadd.f32 %v2865_v48, %v2777_v46  ;;  %v2690_v15 = vadd.f32 %v2689_v14, %v2600_v13 }
 0x4c5   : > { %3380 = vst [vmem:[%s4757_s17 + $0x3d8] sm:$0xff] %v2866_v55 }
 0x4c8   : > { %v2778_v5 = vpop.f32.mrf.mxu2 }
 0x4c9   : > { %v2779_v7 = vadd.f32 %v2778_v5, %v2690_v15  ;;  %v2867_v61 = vpop.f32.mrf.mxu3 }
 0x4cb   : > { %v2868_v47 = vadd.f32 %v2867_v61, %v2779_v7 }
 0x4cd   : > { %3384 = vst [vmem:[%s4757_s17 + $0x3f8] sm:$0xff] %v2868_v47 }
 0x4ce   : > { %4337 = shalt.err (!%p4334_p0)
}
 0x4cf   : > { %s4403_s30 = smov 512   ;;  %s4404_s3 = smov 1024  }
 0x4d0   : > { %s4405_s6 = smov 32  }
 0x4d1   : > { %4176 = dma.vmem_to_hbm [thread:$0]  (%p4502_p5), %s3402_s16, 16384, %s3404_s21, %s3386_s12, %s4403_s30, %s4404_s3, %s4405_s6  }
 0x4d2 PF: > { %s3418_s27 = sand.u32 1, %s4376_s9   ;;  %p4187_p3 = pnand %p3515_p11, %p4470_p6 }
 0x4d3   : > { %s3419_s17 = scalar_lea.sflag [#allocation5], %s3418_s27 }
 0x4d4   : > { %p4188_p7 = pneg %p4187_p3 }
 0x4d6   : > { %4371 = dma.done.wait (%p4188_p7), %s3419_s17, 16384  }
 0x4d7   : > { %4373 = vsyncadd (%p4188_p7), %s3419_s17, 4294950912  ;;  %s19_s14 = sadd.s32 1, %s4396_s14   ;;  %s5477_s9 = smov %s4380_s10 }
 0x4d8   : > { %p16_p9 = scmp.ge.s32.totalorder %s19_s14, 4   ;;  %s5478_s10 = smov %s4384_s11 }
 0x4d9   : > { %s5479_s11 = smov %s4511_s8  ;;  %s5480_s12 = smov %s4392_s13 }
 0x4da   : > { %s5481_s13 = smov %s5483_s29  ;;  %18 = sbr.rel (!%p16_p9) target bundleno = 7 (0x7), region = 87 }
 0x4df   :  { %3425 = vsyncpa [#allocation4], 1 }
 0x4e0   :  { %3427 = vsyncpa [#allocation4 + $0x1], 1 }
 0x4e1   :  { %3428 = vsyncpa [#allocation7], 1 }
 0x4e2   :  { %3430 = vsyncpa [#allocation7 + $0x1], 1 }
 0x4e3   :  { %3431 = vsyncpa [#allocation5], 1 }
 0x4e4   :  { %3433 = vsyncpa [#allocation5 + $0x1], 1 }

</bundles_post_ra>
